<compile_context>
chip_gen: v6e
topology: v6e:2x2x1
jax: 0.10.0
libtpu: 0.0.40
codegen_flags: <defaults>
</compile_context>

<pallas_src>
import jax
import jax.numpy as jnp
from jax.experimental import pallas as pl
from jax.experimental.pallas import tpu as pltpu

TOP_SONG_COUNT = 2000           # matches the module's global `top_song_count`
H1, H2, H3 = 128, 64, 64


def vnet_kernel(x_ref, w1_ref, b1_ref, w2_ref, b2_ref,
                w3_ref, b3_ref, w4_ref, b4_ref, o_ref):
    # In-kernel VPU cast (no-op if the caller already streams bf16).
    x = x_ref[...].astype(jnp.bfloat16)
    # layer 1: [TB, 2000](bf16) @ [2000, 128](bf16) -> f32 acc, +bias, relu
    h = jnp.dot(x, w1_ref[...], preferred_element_type=jnp.float32)
    h = jnp.maximum(h + b1_ref[...], 0.0)
    # layer 2: [TB, 128] @ [128, 64]
    h = jnp.dot(h.astype(jnp.bfloat16), w2_ref[...],
                preferred_element_type=jnp.float32)
    h = jnp.maximum(h + b2_ref[...], 0.0)
    # layer 3: [TB, 64] @ [64, 64]
    h = jnp.dot(h.astype(jnp.bfloat16), w3_ref[...],
                preferred_element_type=jnp.float32)
    h = jnp.maximum(h + b3_ref[...], 0.0)
    # layer 4: [TB, 64] . [64] -> [TB, 1]  (VPU multiply + lane reduce, no MXU)
    h = jnp.sum(h * w4_ref[...], axis=-1, keepdims=True) + b4_ref[...]
    o_ref[...] = jnp.maximum(h, 0.0).astype(o_ref.dtype)


def vnet_forward(x, params, *, tb=1024):
    """VNet forward.  x: [B, 2000] (f32 or bf16, streamed as-is).  Returns [B, 1] f32.

    x is never padded or copied in the wrapper; the bf16 cast happens inside
    the kernel.  Passing bf16 x halves the streamed HBM bytes again.
    """
    (w1, b1, w2, b2, w3, b3, w4, b4) = params
    B, F_in = x.shape
    assert F_in == w1.shape[0], (F_in, w1.shape)
    h1, h2, h3 = w1.shape[1], w2.shape[1], w3.shape[1]

    n_tiles = pl.cdiv(B, tb)
    itemsize = jnp.dtype(x.dtype).itemsize

    # Advisory cost for XLA's scheduler (mem-bound custom call).
    w_bytes = sum(int(a.size) * jnp.dtype(a.dtype).itemsize
                  for a in (w1, b1, w2, b2, w3, b3, w4, b4))
    cost = pl.CostEstimate(
        flops=2 * B * (F_in * h1 + h1 * h2 + h2 * h3 + h3),
        transcendentals=0,
        bytes_accessed=B * F_in * itemsize + w_bytes + B * 4,
    )

    # Double-buffered x tile + resident weights + headroom; capped for v7x.
    vmem_limit = min(int(2 * tb * F_in * itemsize) + (16 << 20), 96 << 20)

    out = pl.pallas_call(
        vnet_kernel,
        out_shape=jax.ShapeDtypeStruct((B, 1), jnp.float32),
        grid=(n_tiles,),
        in_specs=[
            pl.BlockSpec((tb, F_in), lambda i: (i, 0)),    # x tile: streams
            pl.BlockSpec((F_in, h1), lambda i: (0, 0)),    # w1: resident
            pl.BlockSpec((1, h1), lambda i: (0, 0)),       # b1
            pl.BlockSpec((h1, h2), lambda i: (0, 0)),      # w2
            pl.BlockSpec((1, h2), lambda i: (0, 0)),       # b2
            pl.BlockSpec((h2, h3), lambda i: (0, 0)),      # w3
            pl.BlockSpec((1, h3), lambda i: (0, 0)),       # b3
            pl.BlockSpec((1, h3), lambda i: (0, 0)),       # w4 (row vector)
            pl.BlockSpec((1, 1), lambda i: (0, 0)),        # b4
        ],
        out_specs=pl.BlockSpec((tb, 1), lambda i: (i, 0)),
        compiler_params=pltpu.CompilerParams(
            dimension_semantics=("parallel",),
            vmem_limit_bytes=vmem_limit),
        cost_estimate=cost,
    )(x, w1, b1, w2, b2, w3, b3, w4, b4)
    return out


def init_linear(key, fan_in, fan_out, *, w_dtype=jnp.float32):
    """nn.Linear-style init (uniform +/- 1/sqrt(fan_in)); weight stored [in, out]."""
    kw, kb = jax.random.split(key)
    bound = 1.0 / jnp.sqrt(jnp.float32(fan_in))
    w = jax.random.uniform(kw, (fan_in, fan_out), jnp.float32, -bound, bound)
    b = jax.random.uniform(kb, (1, fan_out), jnp.float32, -bound, bound)
    return w.astype(w_dtype), b


def make_params(key):
    k1, k2, k3, k4 = jax.random.split(key, 4)
    w1, b1 = init_linear(k1, TOP_SONG_COUNT, H1, w_dtype=jnp.bfloat16)
    w2, b2 = init_linear(k2, H1, H2, w_dtype=jnp.bfloat16)
    w3, b3 = init_linear(k3, H2, H3, w_dtype=jnp.bfloat16)
    w4_t, b4 = init_linear(k4, H3, 1, w_dtype=jnp.float32)   # [64, 1]
    w4 = w4_t.T                                              # stored as [1, 64]
    return (w1, b1, w2, b2, w3, b3, w4, b4)


def vnet_ref(x, params):
    """Pure-JAX reference mirroring the kernel's bf16 rounding.  x: [B, 2000]."""
    (w1, b1, w2, b2, w3, b3, w4, b4) = params
    h = jnp.dot(x.astype(jnp.bfloat16), w1, preferred_element_type=jnp.float32)
    h = jnp.maximum(h + b1, 0.0)
    h = jnp.dot(h.astype(jnp.bfloat16), w2, preferred_element_type=jnp.float32)
    h = jnp.maximum(h + b2, 0.0)
    h = jnp.dot(h.astype(jnp.bfloat16), w3, preferred_element_type=jnp.float32)
    h = jnp.maximum(h + b3, 0.0)
    h = jnp.sum(h * w4, axis=-1, keepdims=True) + b4
    return jnp.maximum(h, 0.0)


if __name__ == "__main__":
    key = jax.random.PRNGKey(0)
    kx, kp = jax.random.split(key)
    # B deliberately not a multiple of the tile: exercises the masked boundary
    # block (no batch padding is done anywhere).
    B = 300
    x = jax.random.normal(kx, (B, TOP_SONG_COUNT), jnp.float32)
    params = make_params(kp)

    out = vnet_forward(x, params, tb=256)   # small tile for the smoke test
    out = jax.block_until_ready(out)

    ref = vnet_ref(x, params)

    assert out.shape == (B, 1)
    err = float(jnp.max(jnp.abs(out - ref)))
    assert jnp.allclose(out, ref, atol=1e-2, rtol=1e-2), err
    print("KERNEL_OK")
</pallas_src>

<mosaic_0001>
module attributes {stable_mosaic.version = 11 : i64} {
  func.func @vnet_kernel(%arg0: i32, %arg1: memref<256x2000xf32, #tpu.memory_space<vmem>>, %arg2: memref<2000x128xbf16, #tpu.memory_space<vmem>>, %arg3: memref<1x128xf32, #tpu.memory_space<vmem>>, %arg4: memref<128x64xbf16, #tpu.memory_space<vmem>>, %arg5: memref<1x64xf32, #tpu.memory_space<vmem>>, %arg6: memref<64x64xbf16, #tpu.memory_space<vmem>>, %arg7: memref<1x64xf32, #tpu.memory_space<vmem>>, %arg8: memref<1x64xf32, #tpu.memory_space<vmem>>, %arg9: memref<1x1xf32, #tpu.memory_space<vmem>>, %arg10: memref<256x1xf32, #tpu.memory_space<vmem>>) attributes {dimension_semantics = [#tpu.dimension_semantics<parallel>], iteration_bounds = array<i64: 2>, scalar_prefetch = 0 : i64, scratch_operands = 0 : i64, tpu.core_type = #tpu.core_type<tc>, window_params = [{transform_indices = @transform_0, window_bounds = array<i64: 256, 2000>}, {pipeline_mode = #tpu.pipeline_mode<synchronous>, transform_indices = @transform_1, window_bounds = array<i64: 2000, 128>}, {pipeline_mode = #tpu.pipeline_mode<synchronous>, transform_indices = @transform_2, window_bounds = array<i64: 1, 128>}, {pipeline_mode = #tpu.pipeline_mode<synchronous>, transform_indices = @transform_3, window_bounds = array<i64: 128, 64>}, {pipeline_mode = #tpu.pipeline_mode<synchronous>, transform_indices = @transform_4, window_bounds = array<i64: 1, 64>}, {pipeline_mode = #tpu.pipeline_mode<synchronous>, transform_indices = @transform_5, window_bounds = array<i64: 64, 64>}, {pipeline_mode = #tpu.pipeline_mode<synchronous>, transform_indices = @transform_6, window_bounds = array<i64: 1, 64>}, {pipeline_mode = #tpu.pipeline_mode<synchronous>, transform_indices = @transform_7, window_bounds = array<i64: 1, 64>}, {pipeline_mode = #tpu.pipeline_mode<synchronous>, transform_indices = @transform_8, window_bounds = array<i64: 1, 1>}, {transform_indices = @transform_9, window_bounds = array<i64: 256, 1>}]} {
    %c0 = arith.constant 0 : index
    %c0_0 = arith.constant 0 : index
    %0 = vector.load %arg1[%c0, %c0_0] : memref<256x2000xf32, #tpu.memory_space<vmem>>, vector<256x2000xf32>
    %1 = arith.truncf %0 : vector<256x2000xf32> to vector<256x2000xbf16>
    %c0_1 = arith.constant 0 : index
    %c0_2 = arith.constant 0 : index
    %2 = vector.load %arg2[%c0_1, %c0_2] : memref<2000x128xbf16, #tpu.memory_space<vmem>>, vector<2000x128xbf16>
    %cst = arith.constant dense<0.000000e+00> : vector<256x128xf32>
    %3 = tpu.matmul %1, %2, %cst {dimension_numbers = #tpu.dot_dimension_numbers<[1], [0], [0], [1], [0, 0, 1, 1], [], []>} : vector<256x2000xbf16>, vector<2000x128xbf16>, vector<256x128xf32> -> vector<256x128xf32>
    %c0_3 = arith.constant 0 : index
    %c0_4 = arith.constant 0 : index
    %4 = vector.load %arg3[%c0_3, %c0_4] : memref<1x128xf32, #tpu.memory_space<vmem>>, vector<1x128xf32>
    %5 = vector.broadcast %4 : vector<1x128xf32> to vector<256x128xf32>
    %6 = arith.addf %3, %5 : vector<256x128xf32>
    %cst_5 = arith.constant 0.000000e+00 : f32
    %7 = vector.broadcast %cst_5 : f32 to vector<256x128xf32>
    %8 = arith.maximumf %6, %7 : vector<256x128xf32>
    %9 = arith.truncf %8 : vector<256x128xf32> to vector<256x128xbf16>
    %c0_6 = arith.constant 0 : index
    %c0_7 = arith.constant 0 : index
    %10 = vector.load %arg4[%c0_6, %c0_7] : memref<128x64xbf16, #tpu.memory_space<vmem>>, vector<128x64xbf16>
    %cst_8 = arith.constant dense<0.000000e+00> : vector<256x64xf32>
    %11 = tpu.matmul %9, %10, %cst_8 {dimension_numbers = #tpu.dot_dimension_numbers<[1], [0], [0], [1], [0, 0, 1, 1], [], []>} : vector<256x128xbf16>, vector<128x64xbf16>, vector<256x64xf32> -> vector<256x64xf32>
    %c0_9 = arith.constant 0 : index
    %c0_10 = arith.constant 0 : index
    %12 = vector.load %arg5[%c0_9, %c0_10] : memref<1x64xf32, #tpu.memory_space<vmem>>, vector<1x64xf32>
    %13 = vector.broadcast %12 : vector<1x64xf32> to vector<256x64xf32>
    %14 = arith.addf %11, %13 : vector<256x64xf32>
    %cst_11 = arith.constant 0.000000e+00 : f32
    %15 = vector.broadcast %cst_11 : f32 to vector<256x64xf32>
    %16 = arith.maximumf %14, %15 : vector<256x64xf32>
    %17 = arith.truncf %16 : vector<256x64xf32> to vector<256x64xbf16>
    %c0_12 = arith.constant 0 : index
    %c0_13 = arith.constant 0 : index
    %18 = vector.load %arg6[%c0_12, %c0_13] : memref<64x64xbf16, #tpu.memory_space<vmem>>, vector<64x64xbf16>
    %cst_14 = arith.constant dense<0.000000e+00> : vector<256x64xf32>
    %19 = tpu.matmul %17, %18, %cst_14 {dimension_numbers = #tpu.dot_dimension_numbers<[1], [0], [0], [1], [0, 0, 1, 1], [], []>} : vector<256x64xbf16>, vector<64x64xbf16>, vector<256x64xf32> -> vector<256x64xf32>
    %c0_15 = arith.constant 0 : index
    %c0_16 = arith.constant 0 : index
    %20 = vector.load %arg7[%c0_15, %c0_16] : memref<1x64xf32, #tpu.memory_space<vmem>>, vector<1x64xf32>
    %21 = vector.broadcast %20 : vector<1x64xf32> to vector<256x64xf32>
    %22 = arith.addf %19, %21 : vector<256x64xf32>
    %cst_17 = arith.constant 0.000000e+00 : f32
    %23 = vector.broadcast %cst_17 : f32 to vector<256x64xf32>
    %24 = arith.maximumf %22, %23 : vector<256x64xf32>
    %c0_18 = arith.constant 0 : index
    %c0_19 = arith.constant 0 : index
    %25 = vector.load %arg8[%c0_18, %c0_19] : memref<1x64xf32, #tpu.memory_space<vmem>>, vector<1x64xf32>
    %26 = vector.broadcast %25 : vector<1x64xf32> to vector<256x64xf32>
    %27 = arith.mulf %24, %26 : vector<256x64xf32>
    %cst_20 = arith.constant dense<0.000000e+00> : vector<256xf32>
    %28 = vector.multi_reduction <add>, %27, %cst_20 [1] : vector<256x64xf32> to vector<256xf32>
    %29 = vector.shape_cast %28 : vector<256xf32> to vector<256x1xf32>
    %c0_21 = arith.constant 0 : index
    %c0_22 = arith.constant 0 : index
    %30 = vector.load %arg9[%c0_21, %c0_22] : memref<1x1xf32, #tpu.memory_space<vmem>>, vector<1x1xf32>
    %31 = vector.broadcast %30 : vector<1x1xf32> to vector<256x1xf32>
    %32 = arith.addf %29, %31 : vector<256x1xf32>
    %cst_23 = arith.constant 0.000000e+00 : f32
    %33 = vector.broadcast %cst_23 : f32 to vector<256x1xf32>
    %34 = arith.maximumf %32, %33 : vector<256x1xf32>
    %c0_24 = arith.constant 0 : index
    %c0_25 = arith.constant 0 : index
    %35 = vector.load %arg10[%c0_24, %c0_25] : memref<256x1xf32, #tpu.memory_space<vmem>>, vector<256x1xf32>
    tpu.vector_store %arg10[%c0_24, %c0_25], %34 {strides = array<i32>} : memref<256x1xf32, #tpu.memory_space<vmem>>, vector<256x1xf32>,
    return
  }
  func.func @transform_0(%arg0: i32) -> (i32, i32) {
    %c0_i32 = arith.constant 0 : i32
    %c0_i32_0 = arith.constant 0 : i32
    return %arg0, %c0_i32 : i32, i32
  }
  func.func @transform_1(%arg0: i32) -> (i32, i32) {
    %c0_i32 = arith.constant 0 : i32
    %c0_i32_0 = arith.constant 0 : i32
    %c0_i32_1 = arith.constant 0 : i32
    return %c0_i32, %c0_i32_0 : i32, i32
  }
  func.func @transform_2(%arg0: i32) -> (i32, i32) {
    %c0_i32 = arith.constant 0 : i32
    %c0_i32_0 = arith.constant 0 : i32
    %c0_i32_1 = arith.constant 0 : i32
    return %c0_i32, %c0_i32_0 : i32, i32
  }
  func.func @transform_3(%arg0: i32) -> (i32, i32) {
    %c0_i32 = arith.constant 0 : i32
    %c0_i32_0 = arith.constant 0 : i32
    %c0_i32_1 = arith.constant 0 : i32
    return %c0_i32, %c0_i32_0 : i32, i32
  }
  func.func @transform_4(%arg0: i32) -> (i32, i32) {
    %c0_i32 = arith.constant 0 : i32
    %c0_i32_0 = arith.constant 0 : i32
    %c0_i32_1 = arith.constant 0 : i32
    return %c0_i32, %c0_i32_0 : i32, i32
  }
  func.func @transform_5(%arg0: i32) -> (i32, i32) {
    %c0_i32 = arith.constant 0 : i32
    %c0_i32_0 = arith.constant 0 : i32
    %c0_i32_1 = arith.constant 0 : i32
    return %c0_i32, %c0_i32_0 : i32, i32
  }
  func.func @transform_6(%arg0: i32) -> (i32, i32) {
    %c0_i32 = arith.constant 0 : i32
    %c0_i32_0 = arith.constant 0 : i32
    %c0_i32_1 = arith.constant 0 : i32
    return %c0_i32, %c0_i32_0 : i32, i32
  }
  func.func @transform_7(%arg0: i32) -> (i32, i32) {
    %c0_i32 = arith.constant 0 : i32
    %c0_i32_0 = arith.constant 0 : i32
    %c0_i32_1 = arith.constant 0 : i32
    return %c0_i32, %c0_i32_0 : i32, i32
  }
  func.func @transform_8(%arg0: i32) -> (i32, i32) {
    %c0_i32 = arith.constant 0 : i32
    %c0_i32_0 = arith.constant 0 : i32
    %c0_i32_1 = arith.constant 0 : i32
    return %c0_i32, %c0_i32_0 : i32, i32
  }
  func.func @transform_9(%arg0: i32) -> (i32, i32) {
    %c0_i32 = arith.constant 0 : i32
    %c0_i32_0 = arith.constant 0 : i32
    return %arg0, %c0_i32 : i32, i32
  }
}

</mosaic_0001>

<bundles_post_ra>
// kernel: tpu_custom_call.1
= control target key start
LH: loop header
LB: loop body
LE: loop exit
PB: predicated region body
PF: predicated region fallthrough
CT: control target
= control target key end

     0   :  { %s8085_s0 = inlined_call_operand.hbm [shape: f32[300,2000], index: 0, kind: input, shape index: {}]   ;;  %s8086_s1 = inlined_call_operand.hbm [shape: bf16[2000,128], index: 1, kind: input, shape index: {}]   ;;  %s8087_s2 = inlined_call_operand.hbm [shape: f32[1,128], index: 2, kind: input, shape index: {}]   ;;  %s8088_s3 = inlined_call_operand.vmem [shape: bf16[128,64], index: 3, kind: input, shape index: {}]   ;;  %s8089_s4 = inlined_call_operand.hbm [shape: f32[1,64], index: 4, kind: input, shape index: {}]   ;;  %s8090_s5 = inlined_call_operand.hbm [shape: bf16[64,64], index: 5, kind: input, shape index: {}]   ;;  %s8091_s6 = inlined_call_operand.hbm [shape: f32[1,64], index: 6, kind: input, shape index: {}]   ;;  %s8092_s7 = inlined_call_operand.hbm [shape: f32[1,64], index: 7, kind: input, shape index: {}]   ;;  %s8093_s8 = inlined_call_operand.<no memory space> [shape: f32[1,1], index: 8, kind: input, shape index: {}]   ;;  %s8094_s9 = inlined_call_operand.vmem [shape: f32[300,1], index: 9, kind: output, shape index: {}]  }
   0x1   :  { %v14_v0 = vstv %s8093_s8 }
   0x2   :  { %15 = vst [vmem:[#allocation2] sm:$0x1] %v14_v0 }
   0x3   :  { %16 = vsyncpa [#allocation4], 0 }
   0x4   :  { %18 = vsyncpa [#allocation4 + $0x1], 0 }
   0x5   :  { %19 = vsyncpa [#allocation6], 0 }
   0x6   :  { %20 = vsyncpa [#allocation9], 0 }
   0x7   :  { %21 = vsyncpa [#allocation12], 0  ;;  %s6616_s11 = smov 0   ;;  %s6618_s12 = smov 0  }
   0x8   :  { %s6620_s13 = smov 0   ;;  %s6622_s14 = smov 0  }
   0x9 LB: > { %s6635_s8 = sadd.s32 4294967295, %s6517_s14   ;;  %s6638_s15 = sadd.s32 1, %s6517_s14   ;;  %s6517_s14 = sphi %s6622_s14, %s8126_s14   ;;  %s6513_s13 = sphi %s6620_s13, %s8125_s13   ;;  %s6509_s12 = sphi %s6618_s12, %s8124_s12   ;;  %s6505_s11 = sphi %s6616_s11, %s8123_s11  }
   0xa   : > { %s31_s16 = ssub.s32 %s6517_s14, %s6638_s15  ;;  %s34_s17 = sadd.s32 1, %s6513_s13 }
   0xb   : > { %p32_p0 = scmp.eq.s32.totalorder %s31_s16, 0  ;;  %p41_p1 = scmp.ne.s32.totalorder %s6513_s13, %s6509_s12 }
   0xc   : > { %p42_p2 = scmp.eq.s32.totalorder %s6517_s14, 0  ;;  %p47_p3 = scmp.ne.s32.totalorder %s6509_s12, %s6505_s11 }
   0xd   : > { %s6648_s18 = scalar_select %p32_p0, %s6513_s13, %s34_s17  }
   0xe   : > { %p6650_p4 = por %p42_p2, %p41_p1  ;;  %p8095_p5 = scmp.eq.s32.totalorder %s6635_s8, 0 }
   0xf   : > { %8099 = sst [smem:[#allocation19_spill]] %s6648_s18  ;;  %p239_p6 = scmp.eq.s32.totalorder %s6635_s8, 1 }
  0x10   : > { %s8100_s19 = scalar_select %p6650_p4, 1, 0 }
  0x11   : > { %p4817_p7 = scmp.ge.s32.totalorder %s6517_s14, 1  ;;  %p6659_p8 = por %p8095_p5, %p47_p3 }
  0x12   : > { %p252_p9 = scmp.lt.s32.totalorder %s6517_s14, 3  ;;  %p6664_p10 = por %p239_p6, %p41_p1 }
  0x13   : > { %s8101_s20 = scalar_select %p6659_p8, 1, 0 }
  0x14   : > { %s8102_s21 = scalar_select %p6664_p10, 1, 0 }
  0x15   : > { %p6668_p11 = pnand %p4817_p7, %p252_p9  ;;  %s6551_s23 = smov [#allocation5]  }
  0x16   : > { %s264_s24 = sshll.u32 %s6551_s23, 4  ;;  %s6552_s26 = smov [#allocation8]   ;;  %s265_s24 = int_to_ptr.vmem [resolvable:$true] %s264_s24 }
  0x17   : > { %s8103_s22 = scalar_select %p6668_p11, 1, 0 }
  0x18   : > { %p5981_p12 = pneg %p6668_p11  ;;  %s292_s27 = sshll.u32 %s6552_s26, 4  ;;  %s293_s27 = int_to_ptr.vmem [resolvable:$true] %s292_s27 }
  0x19   : > { %s6553_s28 = smov [#allocation11]   ;;  %s6268_s10 = scalar_lea.vmem %s265_s24, 16000 }
  0x1a   : > { %p6676_p13 = pnand %p5981_p12, %p8095_p5  ;;  %s316_s29 = sshll.u32 %s6553_s28, 4  ;;  %s317_s29 = int_to_ptr.vmem [resolvable:$true] %s316_s29 }
  0x1b   : > { %p6269_p1 = scmp.ne.s32.totalorder %s265_s24, %s6268_s10  ;;  %p6276_p6 = scmp.lt.s32.totalorder %s265_s24, %s265_s24 }
  0x1c   : > { %p6682_p0 = pneg %p6676_p13  ;;  %p6277_p7 = scmp.lt.s32.totalorder %s6268_s10, %s6268_s10 }
  0x1e   : > { %p6271_p2 = pnand %p6269_p1, %p6682_p0  ;;  %p6278_p9 = por %p6277_p7, %p6276_p6 }
  0x20   : > { %p6272_p3 = pneg %p6271_p2 }
  0x22   : > { %p6279_p12 = pnand %p6278_p9, %p6272_p3 }
  0x24   : > { %6282 = shalt.err (!%p6279_p12)
}
  0x25   : > { %s8098_s11 = smov 64   ;;  %s6555_s16 = smov 4  }
  0x26   : > { %5984 = dma.hbm_to_vmem [thread:$0]  (!%p6676_p13), %s8086_s1, 16000, %s265_s24, [#allocation6], %s8098_s11, %s8098_s11, %s6555_s16  }
  0x27   : > { %s6294_s26 = scalar_lea.vmem %s293_s27, 16  ;;  %s6301_s28 = scalar_lea.vmem %s293_s27, 32 }
  0x28   : > { %p6295_p1 = scmp.ne.s32.totalorder %s293_s27, %s6294_s26  ;;  %p6302_p3 = scmp.lt.s32.totalorder %s293_s27, %s293_s27 }
  0x29   : > { %p6303_p6 = scmp.lt.s32.totalorder %s6301_s28, %s6294_s26 }
  0x2a   : > { %p6297_p2 = pnand %p6295_p1, %p6682_p0 }
  0x2b   : > { %p6304_p7 = por %p6303_p6, %p6302_p3 }
  0x2c   : > { %p6298_p5 = pneg %p6297_p2 }
  0x2e   : > { %p6305_p9 = pnand %p6304_p7, %p6298_p5 }
  0x30   : > { %6308 = shalt.err (!%p6305_p9)
}
  0x31   : > { %5990 = dma.hbm_to_vmem [thread:$0]  (!%p6676_p13), %s8089_s4, 16, %s293_s27, [#allocation9]  }
  0x32   : > { %s6320_s24 = scalar_lea.vmem %s317_s29, 16  ;;  %s6327_s17 = scalar_lea.vmem %s317_s29, 32 }
  0x33   : > { %p6321_p12 = scmp.ne.s32.totalorder %s317_s29, %s6320_s24  ;;  %p6328_p2 = scmp.lt.s32.totalorder %s317_s29, %s317_s29 }
  0x34   : > { %p6329_p8 = scmp.lt.s32.totalorder %s6327_s17, %s6320_s24 }
  0x35   : > { %p6323_p10 = pnand %p6321_p12, %p6682_p0 }
  0x36   : > { %p6330_p11 = por %p6329_p8, %p6328_p2 }
  0x37   : > { %p6324_p1 = pneg %p6323_p10 }
  0x39   : > { %p6331_p3 = pnand %p6330_p11, %p6324_p1 }
  0x3b   : > { %6334 = shalt.err (!%p6331_p3)
}
  0x3c   : > { %5996 = dma.hbm_to_vmem [thread:$0]  (!%p6676_p13), %s8091_s6, 16, %s317_s29, [#allocation12]  }
  0x3d   : > { %s6556_s18 = smov [#allocation7]   ;;  %s6557_s28 = smov [#allocation10]  }
  0x3e   : > { %s278_s27 = sshll.u32 %s6556_s18, 4  ;;  %s302_s10 = sshll.u32 %s6557_s28, 4  ;;  %s279_s27 = int_to_ptr.vmem [resolvable:$true] %s278_s27  ;;  %s303_s10 = int_to_ptr.vmem [resolvable:$true] %s302_s10 }
  0x3f   : > { %s6346_s11 = scalar_lea.vmem %s279_s27, 16  ;;  %s6353_s24 = scalar_lea.vmem %s279_s27, 32 }
  0x40   : > { %p6347_p5 = scmp.ne.s32.totalorder %s279_s27, %s6346_s11  ;;  %p6354_p8 = scmp.lt.s32.totalorder %s279_s27, %s279_s27 }
  0x41   : > { %p6355_p11 = scmp.lt.s32.totalorder %s6353_s24, %s6346_s11 }
  0x42   : > { %p6349_p10 = pnand %p6347_p5, %p6682_p0 }
  0x43   : > { %p6356_p7 = por %p6355_p11, %p6354_p8 }
  0x44   : > { %p6350_p6 = pneg %p6349_p10 }
  0x46   : > { %p6357_p9 = pnand %p6356_p7, %p6350_p6 }
  0x48   : > { %6360 = shalt.err (!%p6357_p9)
}
  0x49   : > { %5987 = dma.hbm_to_vmem [thread:$0]  (!%p6676_p13), %s8087_s2, 16, %s279_s27, [#allocation6]  }
  0x4a   : > { %s6372_s23 = scalar_lea.vmem %s303_s10, 512  ;;  %p6380_p3 = scmp.lt.s32.totalorder %s303_s10, %s303_s10 }
  0x4b   : > { %p6373_p12 = scmp.ne.s32.totalorder %s303_s10, %s6372_s23  ;;  %p6381_p5 = scmp.lt.s32.totalorder %s6372_s23, %s6372_s23 }
  0x4d   : > { %p6375_p1 = pnand %p6373_p12, %p6682_p0  ;;  %p6382_p10 = por %p6381_p5, %p6380_p3 }
  0x4f   : > { %p6376_p2 = pneg %p6375_p1 }
  0x51   : > { %p6383_p4 = pnand %p6382_p10, %p6376_p2 }
  0x53   : > { %6386 = shalt.err (!%p6383_p4)
}
  0x54   : > { %s8106_s11 = smov 64   ;;  %s6558_s27 = smov [#allocation13]  }
  0x55   : > { %5993 = dma.hbm_to_vmem [thread:$0]  (!%p6676_p13), %s8090_s5, 512, %s303_s10, [#allocation9], %s8106_s11, %s8106_s11, %s6555_s16  }
  0x56   : > { %s327_s28 = sshll.u32 %s6558_s27, 4  ;;  %s328_s28 = int_to_ptr.vmem [resolvable:$true] %s327_s28 }
  0x57   : > { %s6398_s24 = scalar_lea.vmem %s328_s28, 16  ;;  %s6405_s17 = scalar_lea.vmem %s328_s28, 32 }
  0x58   : > { %p6399_p6 = scmp.ne.s32.totalorder %s328_s28, %s6398_s24  ;;  %p6406_p4 = scmp.lt.s32.totalorder %s328_s28, %s328_s28 }
  0x59   : > { %p6407_p7 = scmp.lt.s32.totalorder %s6405_s17, %s6398_s24 }
  0x5a   : > { %p6401_p8 = pnand %p6399_p6, %p6682_p0 }
  0x5b   : > { %p6408_p9 = por %p6407_p7, %p6406_p4 }
  0x5c   : > { %p6402_p11 = pneg %p6401_p8 }
  0x5e   : > { %p6409_p12 = pnand %p6408_p9, %p6402_p11 }
  0x60   : > { %6412 = shalt.err (!%p6409_p12)
}
  0x61   : > { %5999 = dma.hbm_to_vmem [thread:$0]  (!%p6676_p13), %s8092_s7, 16, %s328_s28, [#allocation12]  }
  0x62   : > { %p4824_p1 = scmp.ge.s32.totalorder %s6517_s14, 2 }
  0x63   : > { %p8107_p2 = scmp.ne.s32.totalorder (!%p4824_p1), %s8100_s19, 0 }
  0x64   : > { %337 = sbr.rel (%p4824_p1) target bundleno = 137 (0x89), region = 48 }
  0x69   : > { %340 = sbr.rel (!%p8107_p2) target bundleno = 137 (0x89), region = 52  ;;  %s341_s30 = sand.u32 (%p8107_p2), 1, %s6513_s13  }
  0x6a   : > { %s4826_s16 = sshll.u32 (%p8107_p2), %s6517_s14, 5  ;;  %s4825_s10 = sshll.u32 (%p8107_p2), %s341_s30, 12 }
  0x6b   : > { %s347_s11 = ssub.s32 (%p8107_p2), 38, %s4826_s16  ;;  %s6742_s18 = scalar_lea.sflag (%p8107_p2), [#allocation4], %s341_s30 }
  0x6c   : > { %p348_p0 = scmp.lt.s32.totalorder (%p8107_p2), %s347_s11, 32  ;;  %s345_s27 = scalar_lea.vmem (%p8107_p2), [#allocation3], %s4825_s10 }
  0x6e   : > { %s8128_s11 = smov (!%p348_p0, %s347_s11), 32 }
  0x6f   : > { %s6739_s26 = sshll.u32 %s8128_s11, 11 }
  0x70   : > { %s353_s25 = ssub.s32 65536, %s6739_s26 }
  0x71   : > { %354 = vsyncadd %s6742_s18, %s353_s25  ;;  %p4829_p13 = scmp.ne.s32.totalorder %s6739_s26, 0  ;;  %s5036_s19 = sshll.u32 %s6517_s14, 16 }
  0x72   : > { %s6750_s17 = scalar_lea.hbm %s8085_s0, %s5036_s19  ;;  %s360_s29 = sshll.u32 %s345_s27, 4  ;;  %s6752_s29 = int_to_ptr.vmem [resolvable:$true] %s360_s29 }
  0x73   : > { %s6413_s23 = scalar_lea.hbm %s6750_s17, %s6739_s26  ;;  %s6417_s14 = scalar_lea.hbm %s8085_s0, 77824 }
  0x74   : > { %p6414_p3 = scmp.ne.s32.totalorder %s6750_s17, %s6413_s23  ;;  %p6418_p6 = scmp.lt.s32.totalorder %s6750_s17, %s8085_s0 }
  0x75   : > { %p6419_p8 = scmp.lt.s32.totalorder %s6417_s14, %s6413_s23 }
  0x76   : > { %p6415_p5 = pnand %p6414_p3, %p4829_p13 }
  0x77   : > { %p6420_p11 = por %p6419_p8, %p6418_p6 }
  0x78   : > { %p6416_p10 = pneg %p6415_p5 }
  0x7a   : > { %p6421_p4 = pnand %p6420_p11, %p6416_p10 }
  0x7c   : > { %6424 = shalt.err (!%p6421_p4)
}
  0x7d   : > { %s6425_s25 = scalar_lea.vmem %s6752_s29, %s6739_s26  ;;  %s6559_s27 = smov [#allocation3]  }
  0x7e   : > { %p6426_p7 = scmp.ne.s32.totalorder %s6752_s29, %s6425_s25  ;;  %s6429_s19 = sshll.u32 %s6559_s27, 4  ;;  %s6430_s19 = int_to_ptr.vmem [resolvable:$false] %s6429_s19 }
  0x7f   : > { %s6431_s28 = scalar_lea.vmem %s6430_s19, 131072  ;;  %p6432_p1 = scmp.lt.s32.totalorder %s6752_s29, %s6430_s19 }
  0x80   : > { %p6427_p9 = pnand %p6426_p7, %p4829_p13  ;;  %p6433_p2 = scmp.lt.s32.totalorder %s6431_s28, %s6425_s25 }
  0x82   : > { %p6428_p12 = pneg %p6427_p9  ;;  %p6434_p0 = por %p6433_p2, %p6432_p1 }
  0x84   : > { %p6435_p3 = pnand %p6434_p0, %p6428_p12 }
  0x86   : > { %6438 = shalt.err (!%p6435_p3)
}
  0x87   : > { %s6560_s24 = smov 2048   ;;  %s6561_s23 = smov 128  }
  0x88   : > { %366 = dma.hbm_to_vmem [thread:$0]  (%p4829_p13), %s6750_s17, %s6739_s26, %s6752_s29, %s6742_s18, %s6560_s24, %s6560_s24, %s6561_s23  }
  0x89 PF: > { %p8108_p5 = scmp.ne.s32.totalorder %s8103_s22, 0 }
  0x8a   : > { %s6781_s30 = sand.u32 (!%p8108_p5), 1, %s6509_s12   ;;  %p8109_p10 = scmp.ne.s32.totalorder (!%p8108_p5), %s8101_s20, 0 }
  0x8b   : > { %372 = sbr.rel (%p8108_p5) target bundleno = 1508 (0x5e4), region = 56  ;;  %s4835_s16 = sshll.u32 (!%p8108_p5), %s6781_s30, 12 }
  0x8c   : > { %s375_s14 = scalar_lea.sflag (!%p8108_p5), [#allocation4], %s6781_s30  ;;  %s6785_s10 = scalar_lea.vmem (!%p8108_p5), [#allocation3], %s4835_s16 }
  0x90   : > { %6488 = dma.done.wait (%p8109_p10), %s375_s14, 65536  }
  0x91   : > { %6490 = vsyncadd (%p8109_p10), %s375_s14, 4294901760  ;;  %p8110_p13 = scmp.eq.s32.totalorder %s6635_s8, 0 }
  0x93   : > { %6492 = dma.done.wait (%p8110_p13), [#allocation6], 16016   ;;  %p8111_p6 = pmov %p8110_p13 }
  0x95   : > { %6494 = vsyncadd (%p8111_p6), [#allocation6], 4294951280  ;;  %p8112_p8 = pmov %p8111_p6 }
  0x96   : > { %p8113_p11 = pmov %p8111_p6 }
  0x97   : > { %6496 = dma.done.wait (%p8112_p8), [#allocation9], 528  }
  0x98   : > { %6498 = vsyncadd (%p8113_p11), [#allocation9], 4294966768  ;;  %p8114_p4 = pmov %p8111_p6 }
  0x9a   : > { %6500 = dma.done.wait (%p8114_p4), [#allocation12], 32   ;;  %p8115_p7 = pmov %p8114_p4 }
  0x9b   : > { %v6119_v1 = vld [vmem:[#allocation5 + $0x78] sm:$0xff]   ;;  %v6123_v5 = vld [vmem:[#allocation5 + $0x70] sm:$0xff]   ;;  %v6127_v9 = vld [vmem:[#allocation5 + $0x68] sm:$0xff]   ;;  %vm2223_vm0 = vcmask 654336   ;;  %vm3927_vm1 = vcmask 523264   ;;  %vm4375_vm2 = vcmask 7168  }
  0x9c   : > { %6502 = vsyncadd (%p8115_p7), [#allocation12], 4294967264  ;;  %v6120_v2 = vld [vmem:[#allocation5 + $0x38] sm:$0xff]   ;;  %5040 = vmatprep.subr.bf16.mxu0 %v6119_v1  ;;  %v6124_v6 = vld [vmem:[#allocation5 + $0x30] sm:$0xff]   ;;  %p8116_p9 = scmp.ne.s32.totalorder %s8102_s21, 0 }
  0x9d   : > { %v6121_v3 = vld [vmem:[#allocation5 + $0xf8] sm:$0xff]   ;;  %5041 = vmatpush3.bf16.msra.mxu0 %v6120_v2  ;;  %v6125_v7 = vld [vmem:[#allocation5 + $0xf0] sm:$0xff]   ;;  %v6128_v10 = vld [vmem:[#allocation5 + $0x28] sm:$0xff]   ;;  %s5037_s26 = sshll.u32 (%p8116_p9), %s6635_s8, 8 }
  0x9e   : > { %v6122_v4 = vld [vmem:[#allocation5 + $0xb8] sm:$0xff]   ;;  %5152 = vmatprep.subr.bf16.mxu1 %v6121_v3  ;;  %5042 = vmatprep.subr.bf16.mxu0 %v6123_v5  ;;  %v6126_v8 = vld [vmem:[#allocation5 + $0xb0] sm:$0xff]   ;;  %v6129_v11 = vld [vmem:[#allocation5 + $0xe8] sm:$0xff]   ;;  %s7950_s11 = scalar_lea.vmem (%p8116_p9), %s8094_s9, %s5037_s26  }
  0x9f   : > { %5153 = vmatpush3.bf16.msra.mxu1 %v6122_v4  ;;  %v6130_v12 = vld [vmem:[#allocation5 + $0xa8] sm:$0xff]   ;;  %v6131_v13 = vld [vmem:[#allocation5 + $0x60] sm:$0xff]   ;;  %v6135_v17 = vld [vmem:[#allocation5 + $0x58] sm:$0xff]  }
  0xa0   : > { %5154 = vmatprep.subr.bf16.mxu1 %v6125_v7  ;;  %v6132_v14 = vld [vmem:[#allocation5 + $0x20] sm:$0xff]   ;;  %v6136_v18 = vld [vmem:[#allocation5 + $0x18] sm:$0xff]   ;;  %v6139_v21 = vld [vmem:[#allocation5 + $0x50] sm:$0xff]  }
  0xa1   : > { %5043 = vmatpush3.bf16.msra.mxu0 %v6124_v6  ;;  %v6133_v15 = vld [vmem:[#allocation5 + $0xe0] sm:$0xff]   ;;  %v6137_v19 = vld [vmem:[#allocation5 + $0xd8] sm:$0xff]   ;;  %v6140_v22 = vld [vmem:[#allocation5 + $0x10] sm:$0xff]  }
  0xa2   : > { %5044 = vmatprep.subr.bf16.mxu0 %v6127_v9  ;;  %v6134_v16 = vld [vmem:[#allocation5 + $0xa0] sm:$0xff]   ;;  %v6138_v20 = vld [vmem:[#allocation5 + $0x98] sm:$0xff]   ;;  %v6141_v23 = vld [vmem:[#allocation5 + $0xd0] sm:$0xff]  }
  0xa3   : > { %5155 = vmatpush3.bf16.msra.mxu1 %v6126_v8  ;;  %v6142_v24 = vld [vmem:[#allocation5 + $0x90] sm:$0xff]   ;;  %v6143_v25 = vld [vmem:[#allocation5 + $0x48] sm:$0xff]   ;;  %v6147_v29 = vld [vmem:[#allocation5 + $0x40] sm:$0xff]  }
  0xa4   : > { %5156 = vmatprep.subr.bf16.mxu1 %v6129_v11  ;;  %v6144_v26 = vld [vmem:[#allocation5 + $0x8] sm:$0xff]   ;;  %v6148_v30 = vld [vmem:[#allocation5] sm:$0xff]   ;;  %v451_v38 = vld [vmem:[%s6785_s10 + $0x18] sm:$0xff] }
  0xa5   : > { %5045 = vmatpush3.bf16.msra.mxu0 %v6128_v10  ;;  %v6145_v27 = vld [vmem:[#allocation5 + $0xc8] sm:$0xff]   ;;  %v6149_v31 = vld [vmem:[#allocation5 + $0xc0] sm:$0xff]   ;;  %v467_v39 = vld [vmem:[%s6785_s10 + $0x98] sm:$0xff] }
  0xa6   : > { %5046 = vmatprep.subr.bf16.mxu0 %v6131_v13  ;;  %v6146_v28 = vld [vmem:[#allocation5 + $0x88] sm:$0xff]   ;;  %v6150_v32 = vld [vmem:[#allocation5 + $0x80] sm:$0xff]   ;;  %v963_v41 = vpack.c.bf16 %v467_v39, %v451_v38  ;;  %v6151_v42 = vld [vmem:[#allocation5 + $0x178] sm:$0xff]  }
  0xa7   : > { %5157 = vmatpush3.bf16.msra.mxu1 %v6130_v12  ;;  %v449_v33 = vld [vmem:[%s6785_s10 + $0x8] sm:$0xff]  ;;  %v448_v35 = vld [vmem:[%s6785_s10] sm:$0xff]  ;;  %v450_v43 = vld [vmem:[%s6785_s10 + $0x10] sm:$0xff] }
  0xa8   : > { %5158 = vmatprep.subr.bf16.mxu1 %v6133_v15  ;;  %v465_v34 = vld [vmem:[%s6785_s10 + $0x88] sm:$0xff]  ;;  %v464_v37 = vld [vmem:[%s6785_s10 + $0x80] sm:$0xff]  ;;  %v466_v44 = vld [vmem:[%s6785_s10 + $0x90] sm:$0xff]  ;;  %2465 = vmatprep.mubr.bf16.mxu1 %v963_v41 }
  0xa9   : > { %5047 = vmatpush3.bf16.msra.mxu0 %v6132_v14  ;;  %v961_v36 = vpack.c.bf16 %v465_v34, %v449_v33  ;;  %v960_v40 = vpack.c.bf16 %v464_v37, %v448_v35  ;;  %v962_v45 = vpack.c.bf16 %v466_v44, %v450_v43  ;;  %v6152_v46 = vld [vmem:[#allocation5 + $0x138] sm:$0xff]   ;;  %v481_v48 = vld [vmem:[%s6785_s10 + $0x108] sm:$0xff]  ;;  %v480_v52 = vld [vmem:[%s6785_s10 + $0x100] sm:$0xff] }
  0xaa   : > { %5048 = vmatprep.subr.bf16.mxu0 %v6135_v17  ;;  %v6153_v47 = vld [vmem:[#allocation5 + $0x1f8] sm:$0xff]   ;;  %v497_v49 = vld [vmem:[%s6785_s10 + $0x188] sm:$0xff]  ;;  %v496_v53 = vld [vmem:[%s6785_s10 + $0x180] sm:$0xff] }
  0xab   : > { %5159 = vmatpush3.bf16.msra.mxu1 %v6134_v16  ;;  %2304 = vmatprep.mubr.bf16.mxu0 %v961_v36  ;;  %v977_v50 = vpack.c.bf16 %v497_v49, %v481_v48  ;;  %v6154_v51 = vld [vmem:[#allocation5 + $0x1b8] sm:$0xff]   ;;  %v976_v54 = vpack.c.bf16 %v496_v53, %v480_v52  ;;  %v482_v57 = vld [vmem:[%s6785_s10 + $0x110] sm:$0xff]  ;;  %v513_v60 = vld [vmem:[%s6785_s10 + $0x208] sm:$0xff] }
  0xac   : > { %5160 = vmatprep.subr.bf16.mxu1 %v6137_v19  ;;  %v483_v55 = vld [vmem:[%s6785_s10 + $0x118] sm:$0xff]  ;;  %v498_v59 = vld [vmem:[%s6785_s10 + $0x190] sm:$0xff]  ;;  %v529_v61 = vld [vmem:[%s6785_s10 + $0x288] sm:$0xff] }
  0xad   : > { %5049 = vmatpush3.bf16.msra.mxu0 %v6136_v18  ;;  %v499_v56 = vld [vmem:[%s6785_s10 + $0x198] sm:$0xff]  ;;  %v978_v62 = vpack.c.bf16 %v498_v59, %v482_v57  ;;  %v993_v63 = vpack.c.bf16 %v529_v61, %v513_v60  ;;  %v512_v2 = vld [vmem:[%s6785_s10 + $0x200] sm:$0xff]  ;;  %v6155_v5 = vld [vmem:[#allocation5 + $0x170] sm:$0xff]  }
  0xae   : > { %5050 = vmatprep.subr.bf16.mxu0 %v6139_v21  ;;  %v979_v58 = vpack.c.bf16 %v499_v56, %v483_v55  ;;  %v515_v0 = vld [vmem:[%s6785_s10 + $0x218] sm:$0xff]  ;;  %v528_v3 = vld [vmem:[%s6785_s10 + $0x280] sm:$0xff]  ;;  %v514_v6 = vld [vmem:[%s6785_s10 + $0x210] sm:$0xff] }
  0xaf   : > { %5161 = vmatpush3.bf16.msra.mxu1 %v6138_v20  ;;  %v531_v1 = vld [vmem:[%s6785_s10 + $0x298] sm:$0xff]  ;;  %v530_v7 = vld [vmem:[%s6785_s10 + $0x290] sm:$0xff]  ;;  %v545_v10 = vld [vmem:[%s6785_s10 + $0x308] sm:$0xff]  ;;  %v992_v12 = vpack.c.bf16 %v528_v3, %v512_v2 }
  0xb0   : > { %5162 = vmatprep.subr.bf16.mxu1 %v6141_v23  ;;  %v995_v4 = vpack.c.bf16 %v531_v1, %v515_v0  ;;  %v6156_v8 = vld [vmem:[#allocation5 + $0x130] sm:$0xff]   ;;  %v561_v11 = vld [vmem:[%s6785_s10 + $0x388] sm:$0xff]  ;;  %v547_v15 = vld [vmem:[%s6785_s10 + $0x318] sm:$0xff]  ;;  %v994_v17 = vpack.c.bf16 %v530_v7, %v514_v6 }
  0xb1   : > { %5051 = vmatpush3.bf16.msra.mxu0 %v6140_v22  ;;  %v6157_v9 = vld [vmem:[#allocation5 + $0x1f0] sm:$0xff]   ;;  %v1009_v14 = vpack.c.bf16 %v561_v11, %v545_v10  ;;  %v563_v16 = vld [vmem:[%s6785_s10 + $0x398] sm:$0xff]  ;;  %v544_v19 = vld [vmem:[%s6785_s10 + $0x300] sm:$0xff] }
  0xb2   : > { %5052 = vmatprep.subr.bf16.mxu0 %v6143_v25  ;;  %v6158_v13 = vld [vmem:[#allocation5 + $0x1b0] sm:$0xff]   ;;  %v1011_v18 = vpack.c.bf16 %v563_v16, %v547_v15  ;;  %v560_v20 = vld [vmem:[%s6785_s10 + $0x380] sm:$0xff]  ;;  %v577_v23 = vld [vmem:[%s6785_s10 + $0x408] sm:$0xff] }
  0xb3   : > { %5163 = vmatpush3.bf16.msra.mxu1 %v6142_v24  ;;  %v546_v21 = vld [vmem:[%s6785_s10 + $0x310] sm:$0xff]  ;;  %v6159_v24 = vld [vmem:[#allocation5 + $0x168] sm:$0xff]   ;;  %v576_v35 = vld [vmem:[%s6785_s10 + $0x400] sm:$0xff] }
  0xb4   : > { %5164 = vmatprep.subr.bf16.mxu1 %v6145_v27  ;;  %v562_v22 = vld [vmem:[%s6785_s10 + $0x390] sm:$0xff]  ;;  %v593_v25 = vld [vmem:[%s6785_s10 + $0x488] sm:$0xff]  ;;  %v1008_v27 = vpack.c.bf16 %v560_v20, %v544_v19  ;;  %v592_v36 = vld [vmem:[%s6785_s10 + $0x480] sm:$0xff] }
  0xb5   : > { %5053 = vmatpush3.bf16.msra.mxu0 %v6144_v26  ;;  %v6160_v26 = vld [vmem:[#allocation5 + $0x128] sm:$0xff]   ;;  %v1010_v33 = vpack.c.bf16 %v562_v22, %v546_v21  ;;  %v578_v37 = vld [vmem:[%s6785_s10 + $0x410] sm:$0xff]  ;;  %v6163_v41 = vld [vmem:[#allocation5 + $0x160] sm:$0xff]   ;;  %v1024_v44 = vpack.c.bf16 %v592_v36, %v576_v35 }
  0xb6   : > { %5054 = vmatprep.subr.bf16.mxu0 %v6147_v29  ;;  %v595_v29 = vld [vmem:[%s6785_s10 + $0x498] sm:$0xff]  ;;  %v594_v38 = vld [vmem:[%s6785_s10 + $0x490] sm:$0xff]  ;;  %v609_v39 = vld [vmem:[%s6785_s10 + $0x508] sm:$0xff] }
  0xb7   : > { %5165 = vmatpush3.bf16.msra.mxu1 %v6146_v28  ;;  %v579_v28 = vld [vmem:[%s6785_s10 + $0x418] sm:$0xff]  ;;  %v1026_v48 = vpack.c.bf16 %v594_v38, %v578_v37  ;;  %v624_v52 = vld [vmem:[%s6785_s10 + $0x580] sm:$0xff]  ;;  %v610_v53 = vld [vmem:[%s6785_s10 + $0x510] sm:$0xff] }
  0xb8   : > { %5166 = vmatprep.subr.bf16.mxu1 %v6149_v31  ;;  %v1025_v31 = vpack.c.bf16 %v593_v25, %v577_v23  ;;  %v1027_v34 = vpack.c.bf16 %v595_v29, %v579_v28  ;;  %v627_v43 = vld [vmem:[%s6785_s10 + $0x598] sm:$0xff]  ;;  %v657_v55 = vld [vmem:[%s6785_s10 + $0x688] sm:$0xff]  ;;  %v626_v56 = vld [vmem:[%s6785_s10 + $0x590] sm:$0xff] }
  0xb9   : > { %5055 = vmatpush3.bf16.msra.mxu0 %v6148_v30  ;;  %v6161_v30 = vld [vmem:[#allocation5 + $0x1e8] sm:$0xff]   ;;  %v659_v59 = vld [vmem:[%s6785_s10 + $0x698] sm:$0xff]  ;;  %v640_v3 = vld [vmem:[%s6785_s10 + $0x600] sm:$0xff] }
  0xba   : > { %5264 = vmatprep.subr.bf16.mxu0 %v6151_v42  ;;  %v611_v42 = vld [vmem:[%s6785_s10 + $0x518] sm:$0xff]  ;;  %v689_v6 = vld [vmem:[%s6785_s10 + $0x788] sm:$0xff]  ;;  %v642_v7 = vld [vmem:[%s6785_s10 + $0x610] sm:$0xff] }
  0xbb   : > { %5167 = vmatpush3.bf16.msra.mxu1 %v6150_v32  ;;  %v6162_v32 = vld [vmem:[#allocation5 + $0x1a8] sm:$0xff]   ;;  %v1043_v49 = vpack.c.bf16 %v627_v43, %v611_v42  ;;  %v6167_v60 = vld [vmem:[#allocation5 + $0x158] sm:$0xff]   ;;  %v6172_v16 = vld [vmem:[#allocation5 + $0x110] sm:$0xff]  }
  0xbc   : > { %2305 = vmatmul.mubr.bf16.vlgmr.msra.gmra.mxu0 %v960_v40  ;;  %5376 = vmatprep.subr.bf16.mxu1 %v6153_v47  ;;  %v625_v40 = vld [vmem:[%s6785_s10 + $0x588] sm:$0xff]  ;;  %v6165_v47 = vld [vmem:[#allocation5 + $0x1e0] sm:$0xff]   ;;  %v6169_v0 = vld [vmem:[#allocation5 + $0x1d8] sm:$0xff]  }
  0xbd   : > { %5265 = vmatpush3.bf16.msra.mxu0 %v6152_v46  ;;  %2312 = vmatprep.mubr.bf16.mxu0 %v977_v50  ;;  %v1041_v46 = vpack.c.bf16 %v625_v40, %v609_v39  ;;  %v6166_v50 = vld [vmem:[#allocation5 + $0x1a0] sm:$0xff]   ;;  %v6170_v2 = vld [vmem:[#allocation5 + $0x198] sm:$0xff]   ;;  %v6173_v19 = vld [vmem:[#allocation5 + $0x1d0] sm:$0xff]  }
  0xbe   : > { %2466 = vmatmul.mubr.bf16.vlgmr.msra.gmra.mxu1 %v962_v45  ;;  %5266 = vmatprep.subr.bf16.mxu0 %v6155_v5  ;;  %v6164_v45 = vld [vmem:[#allocation5 + $0x120] sm:$0xff]   ;;  %v673_v5 = vld [vmem:[%s6785_s10 + $0x708] sm:$0xff]  ;;  %v675_v10 = vld [vmem:[%s6785_s10 + $0x718] sm:$0xff] }
  0xbf   : > { %5377 = vmatpush3.bf16.msra.mxu1 %v6154_v51  ;;  %2473 = vmatprep.mubr.bf16.mxu1 %v979_v58  ;;  %v608_v51 = vld [vmem:[%s6785_s10 + $0x500] sm:$0xff]  ;;  %v643_v58 = vld [vmem:[%s6785_s10 + $0x618] sm:$0xff]  ;;  %v6174_v20 = vld [vmem:[#allocation5 + $0x190] sm:$0xff]  }
  0xc0   : > { %5378 = vmatprep.subr.bf16.mxu1 %v6157_v9  ;;  %v1040_v57 = vpack.c.bf16 %v624_v52, %v608_v51  ;;  %v1059_v1 = vpack.c.bf16 %v659_v59, %v643_v58  ;;  %v691_v11 = vld [vmem:[%s6785_s10 + $0x798] sm:$0xff]  ;;  %v705_v21 = vld [vmem:[%s6785_s10 + $0x808] sm:$0xff]  ;;  %v674_v23 = vld [vmem:[%s6785_s10 + $0x710] sm:$0xff] }
  0xc1   : > { %5267 = vmatpush3.bf16.msra.mxu0 %v6156_v8  ;;  %v658_v8 = vld [vmem:[%s6785_s10 + $0x690] sm:$0xff]  ;;  %v1075_v15 = vpack.c.bf16 %v691_v11, %v675_v10  ;;  %v721_v22 = vld [vmem:[%s6785_s10 + $0x888] sm:$0xff]  ;;  %v739_v42 = vld [vmem:[%s6785_s10 + $0x918] sm:$0xff] }
  0xc2   : > { %5268 = vmatprep.subr.bf16.mxu0 %v6159_v24  ;;  %v690_v24 = vld [vmem:[%s6785_s10 + $0x790] sm:$0xff]  ;;  %v1089_v28 = vpack.c.bf16 %v721_v22, %v705_v21  ;;  %v737_v35 = vld [vmem:[%s6785_s10 + $0x908] sm:$0xff]  ;;  %v755_v43 = vld [vmem:[%s6785_s10 + $0x998] sm:$0xff] }
  0xc3   : > { %5379 = vmatpush3.bf16.msra.mxu1 %v6158_v13  ;;  %v6171_v13 = vld [vmem:[#allocation5 + $0x150] sm:$0xff]   ;;  %v1074_v29 = vpack.c.bf16 %v690_v24, %v674_v23  ;;  %v6177_v36 = vld [vmem:[#allocation5 + $0x1c8] sm:$0xff]   ;;  %v6179_v51 = vld [vmem:[#allocation5 + $0x140] sm:$0xff]  }
  0xc4   : > { %2313 = vmatmul.mubr.bf16.gmra.mxu0 %v976_v54  ;;  %5380 = vmatprep.subr.bf16.mxu1 %v6161_v30  ;;  %v641_v54 = vld [vmem:[%s6785_s10 + $0x608] sm:$0xff]  ;;  %v706_v38 = vld [vmem:[%s6785_s10 + $0x810] sm:$0xff]  ;;  %v787_v58 = vld [vmem:[%s6785_s10 + $0xa98] sm:$0xff] }
  0xc5   : > { %2320 = vmatprep.mubr.bf16.mxu0 %v993_v63  ;;  %5269 = vmatpush3.bf16.msra.mxu0 %v6160_v26  ;;  %v1057_v61 = vpack.c.bf16 %v657_v55, %v641_v54  ;;  %v1042_v63 = vpack.c.bf16 %v626_v56, %v610_v53  ;;  %v707_v26 = vld [vmem:[%s6785_s10 + $0x818] sm:$0xff]  ;;  %v6175_v30 = vld [vmem:[#allocation5 + $0x148] sm:$0xff]   ;;  %v722_v39 = vld [vmem:[%s6785_s10 + $0x890] sm:$0xff] }
  0xc6   : > { %2474 = vmatmul.mubr.bf16.gmra.mxu1 %v978_v62  ;;  %5270 = vmatprep.subr.bf16.mxu0 %v6163_v41  ;;  %v6168_v62 = vld [vmem:[#allocation5 + $0x118] sm:$0xff]   ;;  %v753_v37 = vld [vmem:[%s6785_s10 + $0x988] sm:$0xff]  ;;  %v738_v52 = vld [vmem:[%s6785_s10 + $0x910] sm:$0xff] }
  0xc7   : > { %2481 = vmatprep.mubr.bf16.mxu1 %v995_v4  ;;  %5381 = vmatpush3.bf16.msra.mxu1 %v6162_v32  ;;  %v656_v4 = vld [vmem:[%s6785_s10 + $0x680] sm:$0xff]  ;;  %v6178_v40 = vld [vmem:[#allocation5 + $0x188] sm:$0xff]   ;;  %v754_v55 = vld [vmem:[%s6785_s10 + $0x990] sm:$0xff] }
  0xc8   : > { %5382 = vmatprep.subr.bf16.mxu1 %v6165_v47  ;;  %v1056_v9 = vpack.c.bf16 %v656_v4, %v640_v3  ;;  %v720_v32 = vld [vmem:[%s6785_s10 + $0x880] sm:$0xff]  ;;  %v771_v56 = vld [vmem:[%s6785_s10 + $0xa18] sm:$0xff]  ;;  %v817_v4 = vld [vmem:[%s6785_s10 + $0xb88] sm:$0xff] }
  0xc9   : > { %5271 = vmatpush3.bf16.msra.mxu0 %v6164_v45  ;;  %v1090_v45 = vpack.c.bf16 %v722_v39, %v706_v38  ;;  %v752_v47 = vld [vmem:[%s6785_s10 + $0x980] sm:$0xff]  ;;  %v6183_v3 = vld [vmem:[#allocation5 + $0x278] sm:$0xff]   ;;  %v897_v39 = vld [vmem:[%s6785_s10 + $0xe08] sm:$0xff] }
  0xca   : > { %5272 = vmatprep.subr.bf16.mxu0 %v6167_v60  ;;  %v6180_v53 = vld [vmem:[#allocation5 + $0x100] sm:$0xff]   ;;  %v851_v21 = vld [vmem:[%s6785_s10 + $0xc98] sm:$0xff] }
  0xcb   : > { %5383 = vmatpush3.bf16.msra.mxu1 %v6166_v50  ;;  %v785_v50 = vld [vmem:[%s6785_s10 + $0xa88] sm:$0xff]  ;;  %v6181_v54 = vld [vmem:[#allocation5 + $0x1c0] sm:$0xff]  }
  0xcc   : > { %2321 = vmatmul.mubr.bf16.gmra.mxu0 %v992_v12  ;;  %5384 = vmatprep.subr.bf16.mxu1 %v6169_v0  ;;  %v1073_v12 = vpack.c.bf16 %v689_v6, %v673_v5  ;;  %v6182_v59 = vld [vmem:[#allocation5 + $0x180] sm:$0xff]   ;;  %v786_v5 = vld [vmem:[%s6785_s10 + $0xa90] sm:$0xff] }
  0xcd   : > { %2328 = vmatprep.mubr.bf16.mxu0 %v1009_v14  ;;  %5273 = vmatpush3.bf16.msra.mxu0 %v6168_v62  ;;  %v1058_v14 = vpack.c.bf16 %v658_v8, %v642_v7  ;;  %v1123_v62 = vpack.c.bf16 %v787_v58, %v771_v56  ;;  %v784_v0 = vld [vmem:[%s6785_s10 + $0xa80] sm:$0xff]  ;;  %v803_v7 = vld [vmem:[%s6785_s10 + $0xb18] sm:$0xff] }
  0xce   : > { %2482 = vmatmul.mubr.bf16.gmra.mxu1 %v994_v17  ;;  %5274 = vmatprep.subr.bf16.mxu0 %v6171_v13  ;;  %v672_v17 = vld [vmem:[%s6785_s10 + $0x700] sm:$0xff]  ;;  %v819_v8 = vld [vmem:[%s6785_s10 + $0xb98] sm:$0xff] }
  0xcf   : > { %2489 = vmatprep.mubr.bf16.mxu1 %v1011_v18  ;;  %5385 = vmatpush3.bf16.msra.mxu1 %v6170_v2  ;;  %v688_v18 = vld [vmem:[%s6785_s10 + $0x780] sm:$0xff]  ;;  %v801_v2 = vld [vmem:[%s6785_s10 + $0xb08] sm:$0xff]  ;;  %v931_v56 = vld [vmem:[%s6785_s10 + $0xf18] sm:$0xff] }
  0xd0   : > { %5386 = vmatprep.subr.bf16.mxu1 %v6173_v19  ;;  %v1072_v25 = vpack.c.bf16 %v688_v18, %v672_v17  ;;  %v1137_v10 = vpack.c.bf16 %v817_v4, %v801_v2  ;;  %v800_v13 = vld [vmem:[%s6785_s10 + $0xb00] sm:$0xff]  ;;  %v849_v17 = vld [vmem:[%s6785_s10 + $0xc88] sm:$0xff]  ;;  %v818_v18 = vld [vmem:[%s6785_s10 + $0xb90] sm:$0xff] }
  0xd1   : > { %5275 = vmatpush3.bf16.msra.mxu0 %v6172_v16  ;;  %v833_v16 = vld [vmem:[%s6785_s10 + $0xc08] sm:$0xff]  ;;  %v835_v19 = vld [vmem:[%s6785_s10 + $0xc18] sm:$0xff]  ;;  %v880_v38 = vld [vmem:[%s6785_s10 + $0xd80] sm:$0xff] }
  0xd2   : > { %5276 = vmatprep.subr.bf16.mxu0 %v6175_v30  ;;  %v1153_v22 = vpack.c.bf16 %v849_v17, %v833_v16  ;;  %v1155_v24 = vpack.c.bf16 %v851_v21, %v835_v19  ;;  %v850_v30 = vld [vmem:[%s6785_s10 + $0xc90] sm:$0xff]  ;;  %v455_v4 = vld [vmem:[%s6785_s10 + $0x38] sm:$0xff] }
  0xd3   : > { %5387 = vmatpush3.bf16.msra.mxu1 %v6174_v20  ;;  %v946_v2 = vld [vmem:[%s6785_s10 + $0xf90] sm:$0xff]  ;;  %v503_v17 = vld [vmem:[%s6785_s10 + $0x1b8] sm:$0xff] }
  0xd4   : > { %2329 = vmatmul.mubr.bf16.gmra.mxu0 %v1008_v27  ;;  %v723_v27 = vld [vmem:[%s6785_s10 + $0x898] sm:$0xff]  ;;  %5388 = vmatprep.subr.bf16.mxu1 %v6177_v36  ;;  %v6187_v21 = vld [vmem:[#allocation5 + $0x270] sm:$0xff]  }
  0xd5   : > { %2336 = vmatprep.mubr.bf16.mxu0 %v1025_v31  ;;  %v704_v31 = vld [vmem:[%s6785_s10 + $0x800] sm:$0xff] }
  0xd6   : > { %2490 = vmatmul.mubr.bf16.gmra.mxu1 %v1010_v33  ;;  %v1091_v33 = vpack.c.bf16 %v723_v27, %v707_v26  ;;  %v1088_v41 = vpack.c.bf16 %v720_v32, %v704_v31  ;;  %v848_v26 = vld [vmem:[%s6785_s10 + $0xc80] sm:$0xff]  ;;  %v834_v27 = vld [vmem:[%s6785_s10 + $0xc10] sm:$0xff]  ;;  %v867_v32 = vld [vmem:[%s6785_s10 + $0xd18] sm:$0xff] }
  0xd7   : > { %2497 = vmatprep.mubr.bf16.mxu1 %v1027_v34  ;;  %v6176_v34 = vld [vmem:[#allocation5 + $0x108] sm:$0xff]   ;;  %5389 = vmatpush3.bf16.msra.mxu1 %v6178_v40 }
  0xd8   : > { %5277 = vmatpush3.bf16.msra.mxu0 %v6176_v34  ;;  %5390 = vmatprep.subr.bf16.mxu1 %v6181_v54  ;;  %v913_v40 = vld [vmem:[%s6785_s10 + $0xe88] sm:$0xff]  ;;  %v914_v54 = vld [vmem:[%s6785_s10 + $0xe90] sm:$0xff] }
  0xd9   : > { %5278 = vmatprep.subr.bf16.mxu0 %v6179_v51  ;;  %v929_v51 = vld [vmem:[%s6785_s10 + $0xf08] sm:$0xff] }
  0xdb   : > { %5391 = vmatpush3.bf16.msra.mxu1 %v6182_v59 }
  0xdc   : > { %2337 = vmatmul.mubr.bf16.gmra.mxu0 %v1024_v44  ;;  %v1105_v44 = vpack.c.bf16 %v753_v37, %v737_v35  ;;  %v1154_v35 = vpack.c.bf16 %v850_v30, %v834_v27  ;;  %v864_v37 = vld [vmem:[%s6785_s10 + $0xd00] sm:$0xff]  ;;  %v533_v27 = vld [vmem:[%s6785_s10 + $0x2a8] sm:$0xff]  ;;  %v502_v30 = vld [vmem:[%s6785_s10 + $0x1b0] sm:$0xff] }
  0xdd   : > { %2344 = vmatprep.mubr.bf16.mxu0 %v1041_v46  ;;  %v736_v46 = vld [vmem:[%s6785_s10 + $0x900] sm:$0xff]  ;;  %5279 = vmatpush3.bf16.msra.mxu0 %v6180_v53  ;;  %v898_v53 = vld [vmem:[%s6785_s10 + $0xe10] sm:$0xff] }
  0xde   : > { %2498 = vmatmul.mubr.bf16.gmra.mxu1 %v1026_v48  ;;  %v1107_v48 = vpack.c.bf16 %v755_v43, %v739_v42  ;;  %5488 = vmatprep.subr.bf16.mxu0 %v6183_v3  ;;  %v882_v42 = vld [vmem:[%s6785_s10 + $0xd90] sm:$0xff]  ;;  %v1168_v43 = vpack.c.bf16 %v880_v38, %v864_v37  ;;  %v1186_v59 = vpack.c.bf16 %v914_v54, %v898_v53  ;;  %v6193_v37 = vld [vmem:[#allocation5 + $0x2e8] sm:$0xff]   ;;  %v551_v53 = vld [vmem:[%s6785_s10 + $0x338] sm:$0xff] }
  0xdf   : > { %2505 = vmatprep.mubr.bf16.mxu1 %v1043_v49  ;;  %v769_v49 = vld [vmem:[%s6785_s10 + $0xa08] sm:$0xff]  ;;  %v567_v54 = vld [vmem:[%s6785_s10 + $0x3b8] sm:$0xff] }
  0xe0   : > { %v1121_v60 = vpack.c.bf16 %v785_v50, %v769_v49  ;;  %v896_v49 = vld [vmem:[%s6785_s10 + $0xe00] sm:$0xff] }
  0xe1   : > { %v912_v50 = vld [vmem:[%s6785_s10 + $0xe80] sm:$0xff] }
  0xe4   : > { %2345 = vmatmul.mubr.bf16.gmra.mxu0 %v1040_v57  ;;  %v1104_v57 = vpack.c.bf16 %v752_v47, %v736_v46  ;;  %v1185_v46 = vpack.c.bf16 %v913_v40, %v897_v39  ;;  %v6192_v39 = vld [vmem:[#allocation5 + $0x228] sm:$0xff]  }
  0xe5   : > { %2352 = vmatprep.mubr.bf16.mxu0 %v1057_v61  ;;  %v1106_v61 = vpack.c.bf16 %v754_v55, %v738_v52  ;;  %v945_v52 = vld [vmem:[%s6785_s10 + $0xf88] sm:$0xff]  ;;  %v1184_v55 = vpack.c.bf16 %v912_v50, %v896_v49 }
  0xe6   : > { %2506 = vmatmul.mubr.bf16.gmra.mxu1 %v1042_v63  ;;  %v768_v63 = vld [vmem:[%s6785_s10 + $0xa00] sm:$0xff]  ;;  %v1201_v58 = vpack.c.bf16 %v945_v52, %v929_v51  ;;  %v549_v49 = vld [vmem:[%s6785_s10 + $0x328] sm:$0xff]  ;;  %v6199_v52 = vld [vmem:[#allocation5 + $0x258] sm:$0xff]  }
  0xe7   : > { %2513 = vmatprep.mubr.bf16.mxu1 %v1059_v1  ;;  %v770_v1 = vld [vmem:[%s6785_s10 + $0xa10] sm:$0xff]  ;;  %v1120_v6 = vpack.c.bf16 %v784_v0, %v768_v63  ;;  %v453_v63 = vld [vmem:[%s6785_s10 + $0x28] sm:$0xff]  ;;  %v6196_v51 = vld [vmem:[#allocation5 + $0x220] sm:$0xff]  }
  0xe8   : > { %v1122_v11 = vpack.c.bf16 %v786_v5, %v770_v1  ;;  %v469_v0 = vld [vmem:[%s6785_s10 + $0xa8] sm:$0xff]  ;;  %v930_v1 = vld [vmem:[%s6785_s10 + $0xf10] sm:$0xff]  ;;  %v471_v5 = vld [vmem:[%s6785_s10 + $0xb8] sm:$0xff] }
  0xe9   : > { %v565_v50 = vld [vmem:[%s6785_s10 + $0x3a8] sm:$0xff] }
  0xec   : > { %2353 = vmatmul.mubr.bf16.gmra.mxu0 %v1056_v9  ;;  %v6185_v9 = vld [vmem:[#allocation5 + $0x2f8] sm:$0xff]  }
  0xed   : > { %2360 = vmatprep.mubr.bf16.mxu0 %v1073_v12  ;;  %5600 = vmatprep.subr.bf16.mxu1 %v6185_v9  ;;  %v1139_v12 = vpack.c.bf16 %v819_v8, %v803_v7  ;;  %v1202_v7 = vpack.c.bf16 %v946_v2, %v930_v1  ;;  %v967_v8 = vpack.c.bf16 %v471_v5, %v455_v4  ;;  %v452_v9 = vld [vmem:[%s6785_s10 + $0x20] sm:$0xff]  ;;  %v6205_v2 = vld [vmem:[#allocation5 + $0x2d0] sm:$0xff]  }
  0xee   : > { %2514 = vmatmul.mubr.bf16.gmra.mxu1 %v1058_v14  ;;  %v816_v14 = vld [vmem:[%s6785_s10 + $0xb80] sm:$0xff]  ;;  %v566_v4 = vld [vmem:[%s6785_s10 + $0x3b0] sm:$0xff] }
  0xef   : > { %2521 = vmatprep.mubr.bf16.mxu1 %v1075_v15  ;;  %v802_v15 = vld [vmem:[%s6785_s10 + $0xb10] sm:$0xff]  ;;  %v1136_v20 = vpack.c.bf16 %v816_v14, %v800_v13  ;;  %v564_v1 = vld [vmem:[%s6785_s10 + $0x3a0] sm:$0xff] }
  0xf0   : > { %v1138_v23 = vpack.c.bf16 %v818_v18, %v802_v15  ;;  %v454_v13 = vld [vmem:[%s6785_s10 + $0x30] sm:$0xff]  ;;  %v487_v15 = vld [vmem:[%s6785_s10 + $0x138] sm:$0xff] }
  0xf1   : > { %v470_v14 = vld [vmem:[%s6785_s10 + $0xb0] sm:$0xff]  ;;  %v6184_v18 = vld [vmem:[#allocation5 + $0x238] sm:$0xff]  }
  0xf2   : > { %v6204_v5 = vld [vmem:[#allocation5 + $0x210] sm:$0xff]  }
  0xf4   : > { %2361 = vmatmul.mubr.bf16.gmra.mxu0 %v1072_v25  ;;  %v832_v25 = vld [vmem:[%s6785_s10 + $0xc00] sm:$0xff] }
  0xf5   : > { %2368 = vmatprep.mubr.bf16.mxu0 %v1089_v28  ;;  %v865_v28 = vld [vmem:[%s6785_s10 + $0xd08] sm:$0xff]  ;;  %v1152_v31 = vpack.c.bf16 %v848_v26, %v832_v25  ;;  %v983_v25 = vpack.c.bf16 %v503_v17, %v487_v15  ;;  %v6211_v17 = vld [vmem:[#allocation5 + $0x240] sm:$0xff]  }
  0xf6   : > { %2522 = vmatmul.mubr.bf16.gmra.mxu1 %v1074_v29  ;;  %v881_v29 = vld [vmem:[%s6785_s10 + $0xd88] sm:$0xff] }
  0xf7   : > { %2529 = vmatprep.mubr.bf16.mxu1 %v1091_v33  ;;  %v883_v33 = vld [vmem:[%s6785_s10 + $0xd98] sm:$0xff]  ;;  %v1169_v34 = vpack.c.bf16 %v881_v29, %v865_v28  ;;  %v517_v26 = vld [vmem:[%s6785_s10 + $0x228] sm:$0xff]  ;;  %v6189_v28 = vld [vmem:[#allocation5 + $0x2f0] sm:$0xff]  }
  0xf8   : > { %v1171_v36 = vpack.c.bf16 %v883_v33, %v867_v32  ;;  %v486_v29 = vld [vmem:[%s6785_s10 + $0x130] sm:$0xff]  ;;  %v519_v32 = vld [vmem:[%s6785_s10 + $0x238] sm:$0xff]  ;;  %v6191_v33 = vld [vmem:[#allocation5 + $0x268] sm:$0xff]   ;;  %v997_v38 = vpack.c.bf16 %v533_v27, %v517_v26 }
  0xf9   : > { %v982_v40 = vpack.c.bf16 %v502_v30, %v486_v29  ;;  %v6208_v15 = vld [vmem:[#allocation5 + $0x208] sm:$0xff]   ;;  %v6215_v27 = vld [vmem:[#allocation5 + $0x378] sm:$0xff]   ;;  %v6214_v30 = vld [vmem:[#allocation5 + $0x280] sm:$0xff]  }
  0xfa   : > { %v629_v26 = vld [vmem:[%s6785_s10 + $0x5a8] sm:$0xff]  ;;  %v615_v29 = vld [vmem:[%s6785_s10 + $0x538] sm:$0xff] }
  0xfc   : > { %2369 = vmatmul.mubr.bf16.gmra.mxu0 %v1088_v41  ;;  %v866_v41 = vld [vmem:[%s6785_s10 + $0xd10] sm:$0xff] }
  0xfd   : > { %2376 = vmatprep.mubr.bf16.mxu0 %v1105_v44  ;;  %v899_v44 = vld [vmem:[%s6785_s10 + $0xe18] sm:$0xff]  ;;  %v1170_v47 = vpack.c.bf16 %v882_v42, %v866_v41  ;;  %v6195_v41 = vld [vmem:[#allocation5 + $0x260] sm:$0xff]  }
  0xfe   : > { %2530 = vmatmul.mubr.bf16.gmra.mxu1 %v1090_v45  ;;  %v915_v45 = vld [vmem:[%s6785_s10 + $0xe98] sm:$0xff] }
  0xff   : > { %2537 = vmatprep.mubr.bf16.mxu1 %v1107_v48  ;;  %v1187_v48 = vpack.c.bf16 %v915_v45, %v899_v44  ;;  %v516_v44 = vld [vmem:[%s6785_s10 + $0x220] sm:$0xff] }
 0x100   : > { %v532_v45 = vld [vmem:[%s6785_s10 + $0x2a0] sm:$0xff] }
 0x104   : > { %2377 = vmatmul.mubr.bf16.gmra.mxu0 %v1104_v57  ;;  %v947_v57 = vld [vmem:[%s6785_s10 + $0xf98] sm:$0xff] }
 0x105   : > { %2384 = vmatprep.mubr.bf16.mxu0 %v1121_v60  ;;  %v1203_v60 = vpack.c.bf16 %v947_v57, %v931_v56  ;;  %v996_v56 = vpack.c.bf16 %v532_v45, %v516_v44  ;;  %v6201_v57 = vld [vmem:[#allocation5 + $0x2d8] sm:$0xff]  }
 0x106   : > { %2538 = vmatmul.mubr.bf16.gmra.mxu1 %v1106_v61  ;;  %v928_v61 = vld [vmem:[%s6785_s10 + $0xf00] sm:$0xff]  ;;  %v647_v44 = vld [vmem:[%s6785_s10 + $0x638] sm:$0xff] }
 0x107   : > { %2545 = vmatprep.mubr.bf16.mxu1 %v1123_v62  ;;  %v944_v62 = vld [vmem:[%s6785_s10 + $0xf80] sm:$0xff]  ;;  %v663_v45 = vld [vmem:[%s6785_s10 + $0x6b8] sm:$0xff] }
 0x108   : > { %v1200_v3 = vpack.c.bf16 %v944_v62, %v928_v61  ;;  %v6203_v61 = vld [vmem:[#allocation5 + $0x250] sm:$0xff]   ;;  %v1015_v62 = vpack.c.bf16 %v567_v54, %v551_v53  ;;  %v677_v53 = vld [vmem:[%s6785_s10 + $0x728] sm:$0xff] }
 0x109   : > { %v693_v54 = vld [vmem:[%s6785_s10 + $0x7a8] sm:$0xff] }
 0x10c   : > { %2385 = vmatmul.mubr.bf16.gmra.mxu0 %v1120_v6  ;;  %v965_v6 = vpack.c.bf16 %v469_v0, %v453_v63  ;;  %v6202_v63 = vld [vmem:[#allocation5 + $0x298] sm:$0xff]   ;;  %v548_v0 = vld [vmem:[%s6785_s10 + $0x320] sm:$0xff] }
 0x10d   : > { %2392 = vmatprep.mubr.bf16.mxu0 %v1137_v10  ;;  %v468_v10 = vld [vmem:[%s6785_s10 + $0xa0] sm:$0xff] }
 0x10e   : > { %2546 = vmatmul.mubr.bf16.gmra.mxu1 %v1122_v11  ;;  %v485_v11 = vld [vmem:[%s6785_s10 + $0x128] sm:$0xff]  ;;  %v964_v16 = vpack.c.bf16 %v468_v10, %v452_v9  ;;  %v583_v9 = vld [vmem:[%s6785_s10 + $0x438] sm:$0xff]  ;;  %v6206_v10 = vld [vmem:[#allocation5 + $0x290] sm:$0xff]  }
 0x10f   : > { %2553 = vmatprep.mubr.bf16.mxu1 %v1139_v12  ;;  %v501_v12 = vld [vmem:[%s6785_s10 + $0x1a8] sm:$0xff] }
 0x110   : > { %v981_v19 = vpack.c.bf16 %v501_v12, %v485_v11  ;;  %v1012_v11 = vpack.c.bf16 %v564_v1, %v548_v0  ;;  %v599_v12 = vld [vmem:[%s6785_s10 + $0x4b8] sm:$0xff]  ;;  %v725_v0 = vld [vmem:[%s6785_s10 + $0x8a8] sm:$0xff]  ;;  %v678_v1 = vld [vmem:[%s6785_s10 + $0x730] sm:$0xff] }
 0x114   : > { %2393 = vmatmul.mubr.bf16.gmra.mxu0 %v1136_v20  ;;  %v966_v20 = vpack.c.bf16 %v470_v14, %v454_v13  ;;  %v6209_v13 = vld [vmem:[#allocation5 + $0x2c8] sm:$0xff]  }
 0x115   : > { %2400 = vmatprep.mubr.bf16.mxu0 %v1153_v22  ;;  %v6186_v22 = vld [vmem:[#allocation5 + $0x2b8] sm:$0xff]  }
 0x116   : > { %2554 = vmatmul.mubr.bf16.gmra.mxu1 %v1138_v23  ;;  %v484_v23 = vld [vmem:[%s6785_s10 + $0x120] sm:$0xff] }
 0x117   : > { %2561 = vmatprep.mubr.bf16.mxu1 %v1155_v24  ;;  %v500_v24 = vld [vmem:[%s6785_s10 + $0x1a0] sm:$0xff] }
 0x11c   : > { %2401 = vmatmul.mubr.bf16.gmra.mxu0 %v1152_v31  ;;  %v6188_v31 = vld [vmem:[#allocation5 + $0x230] sm:$0xff]  }
 0x11d   : > { %2408 = vmatprep.mubr.bf16.mxu0 %v1169_v34  ;;  %v6190_v34 = vld [vmem:[#allocation5 + $0x2b0] sm:$0xff]  }
 0x11e   : > { %2562 = vmatmul.mubr.bf16.gmra.mxu1 %v1154_v35  ;;  %v980_v35 = vpack.c.bf16 %v500_v24, %v484_v23  ;;  %v582_v23 = vld [vmem:[%s6785_s10 + $0x430] sm:$0xff]  ;;  %v6212_v24 = vld [vmem:[#allocation5 + $0x200] sm:$0xff]  }
 0x11f   : > { %2569 = vmatprep.mubr.bf16.mxu1 %v1171_v36  ;;  %v535_v36 = vld [vmem:[%s6785_s10 + $0x2b8] sm:$0xff] }
 0x120   : > { %v999_v42 = vpack.c.bf16 %v535_v36, %v519_v32  ;;  %v631_v32 = vld [vmem:[%s6785_s10 + $0x5b8] sm:$0xff]  ;;  %v6562_v36 = vmov 0  }
 0x124   : > { %2409 = vmatmul.mubr.bf16.gmra.mxu0 %v1168_v43  ;;  %v6194_v43 = vld [vmem:[#allocation5 + $0x2a8] sm:$0xff]  }
 0x125   : > { %2416 = vmatprep.mubr.bf16.mxu0 %v1185_v46  ;;  %v6197_v46 = vld [vmem:[#allocation5 + $0x2e0] sm:$0xff]  }
 0x126   : > { %2570 = vmatmul.mubr.bf16.gmra.mxu1 %v1170_v47  ;;  %v518_v47 = vld [vmem:[%s6785_s10 + $0x230] sm:$0xff] }
 0x127   : > { %2577 = vmatprep.mubr.bf16.mxu1 %v1187_v48  ;;  %v534_v48 = vld [vmem:[%s6785_s10 + $0x2b0] sm:$0xff] }
 0x12c   : > { %2417 = vmatmul.mubr.bf16.gmra.mxu0 %v1184_v55  ;;  %v6198_v55 = vld [vmem:[#allocation5 + $0x2a0] sm:$0xff]  }
 0x12d   : > { %2424 = vmatprep.mubr.bf16.mxu0 %v1201_v58  ;;  %v1013_v58 = vpack.c.bf16 %v565_v50, %v549_v49  ;;  %v644_v49 = vld [vmem:[%s6785_s10 + $0x620] sm:$0xff] }
 0x12e   : > { %2578 = vmatmul.mubr.bf16.gmra.mxu1 %v1186_v59  ;;  %v6200_v59 = vld [vmem:[#allocation5 + $0x218] sm:$0xff]   ;;  %v660_v50 = vld [vmem:[%s6785_s10 + $0x6a0] sm:$0xff] }
 0x12f   : > { %2585 = vmatprep.mubr.bf16.mxu1 %v1203_v60  ;;  %v998_v60 = vpack.c.bf16 %v534_v48, %v518_v47  ;;  %v1063_v48 = vpack.c.bf16 %v663_v45, %v647_v44 }
 0x134   : > { %2425 = vmatmul.mubr.bf16.gmra.mxu0 %v1200_v3  ;;  %v550_v3 = vld [vmem:[%s6785_s10 + $0x330] sm:$0xff] }
 0x135   : > { %2626 = vmatprep.mubr.bf16.mxu0 %v965_v6  ;;  %v581_v6 = vld [vmem:[%s6785_s10 + $0x428] sm:$0xff] }
 0x136   : > { %2586 = vmatmul.mubr.bf16.gmra.mxu1 %v1202_v7  ;;  %v597_v7 = vld [vmem:[%s6785_s10 + $0x4a8] sm:$0xff] }
 0x137   : > { %2787 = vmatprep.mubr.bf16.mxu1 %v967_v8  ;;  %v6207_v8 = vld [vmem:[#allocation5 + $0x248] sm:$0xff]   ;;  %v1029_v14 = vpack.c.bf16 %v597_v7, %v581_v6 }
 0x13c   : > { %2627 = vmatmul.mubr.bf16.vlgmr.msra.gmra.mxu0 %v964_v16  ;;  %v1014_v16 = vpack.c.bf16 %v566_v4, %v550_v3  ;;  %v711_v3 = vld [vmem:[%s6785_s10 + $0x838] sm:$0xff] }
 0x13d   : > { %5489 = vmatpush3.bf16.msra.mxu0 %v6184_v18  ;;  %2634 = vmatprep.mubr.bf16.mxu0 %v981_v19  ;;  %v1031_v18 = vpack.c.bf16 %v599_v12, %v583_v9  ;;  %v6210_v19 = vld [vmem:[#allocation5 + $0x288] sm:$0xff]   ;;  %v727_v4 = vld [vmem:[%s6785_s10 + $0x8b8] sm:$0xff]  ;;  %v724_v9 = vld [vmem:[%s6785_s10 + $0x8a0] sm:$0xff] }
 0x13e   : > { %2788 = vmatmul.mubr.bf16.vlgmr.msra.gmra.mxu1 %v966_v20  ;;  %5490 = vmatprep.subr.bf16.mxu0 %v6187_v21  ;;  %v580_v20 = vld [vmem:[%s6785_s10 + $0x420] sm:$0xff]  ;;  %v757_v12 = vld [vmem:[%s6785_s10 + $0x9a8] sm:$0xff] }
 0x13f   : > { %5601 = vmatpush3.bf16.msra.mxu1 %v6186_v22  ;;  %2795 = vmatprep.mubr.bf16.mxu1 %v983_v25  ;;  %v6213_v21 = vld [vmem:[#allocation5 + $0x2c0] sm:$0xff]   ;;  %v613_v25 = vld [vmem:[%s6785_s10 + $0x528] sm:$0xff] }
 0x140   : > { %5602 = vmatprep.subr.bf16.mxu1 %v6189_v28  ;;  %v596_v22 = vld [vmem:[%s6785_s10 + $0x4a0] sm:$0xff]  ;;  %v598_v28 = vld [vmem:[%s6785_s10 + $0x4b0] sm:$0xff] }
 0x141   : > { %5491 = vmatpush3.bf16.msra.mxu0 %v6188_v31  ;;  %v1028_v31 = vpack.c.bf16 %v596_v22, %v580_v20  ;;  %v740_v20 = vld [vmem:[%s6785_s10 + $0x920] sm:$0xff] }
 0x142   : > { %5492 = vmatprep.subr.bf16.mxu0 %v6191_v33  ;;  %v1045_v33 = vpack.c.bf16 %v629_v26, %v613_v25  ;;  %v773_v25 = vld [vmem:[%s6785_s10 + $0xa28] sm:$0xff] }
 0x143   : > { %5603 = vmatpush3.bf16.msra.mxu1 %v6190_v34  ;;  %v1030_v34 = vpack.c.bf16 %v598_v28, %v582_v23  ;;  %v789_v26 = vld [vmem:[%s6785_s10 + $0xaa8] sm:$0xff]  ;;  %v758_v28 = vld [vmem:[%s6785_s10 + $0x9b0] sm:$0xff] }
 0x144   : > { %2635 = vmatmul.mubr.bf16.gmra.mxu0 %v980_v35  ;;  %5604 = vmatprep.subr.bf16.mxu1 %v6193_v37  ;;  %v1047_v35 = vpack.c.bf16 %v631_v32, %v615_v29  ;;  %v612_v37 = vld [vmem:[%s6785_s10 + $0x520] sm:$0xff]  ;;  %v775_v32 = vld [vmem:[%s6785_s10 + $0xa38] sm:$0xff] }
 0x145   : > { %2642 = vmatprep.mubr.bf16.mxu0 %v997_v38  ;;  %5493 = vmatpush3.bf16.msra.mxu0 %v6192_v39  ;;  %v628_v38 = vld [vmem:[%s6785_s10 + $0x5a0] sm:$0xff]  ;;  %v645_v39 = vld [vmem:[%s6785_s10 + $0x628] sm:$0xff] }
 0x146   : > { %2796 = vmatmul.mubr.bf16.gmra.mxu1 %v982_v40  ;;  %5494 = vmatprep.subr.bf16.mxu0 %v6195_v41  ;;  %v661_v40 = vld [vmem:[%s6785_s10 + $0x6a8] sm:$0xff]  ;;  %v614_v41 = vld [vmem:[%s6785_s10 + $0x530] sm:$0xff] }
 0x147   : > { %2803 = vmatprep.mubr.bf16.mxu1 %v999_v42  ;;  %5605 = vmatpush3.bf16.msra.mxu1 %v6194_v43  ;;  %v630_v42 = vld [vmem:[%s6785_s10 + $0x5b0] sm:$0xff]  ;;  %v1044_v43 = vpack.c.bf16 %v628_v38, %v612_v37 }
 0x148   : > { %5606 = vmatprep.subr.bf16.mxu1 %v6197_v46  ;;  %v1061_v46 = vpack.c.bf16 %v661_v40, %v645_v39  ;;  %v1046_v47 = vpack.c.bf16 %v630_v42, %v614_v41  ;;  %v1125_v40 = vpack.c.bf16 %v789_v26, %v773_v25  ;;  %v822_v25 = vld [vmem:[%s6785_s10 + $0xbb0] sm:$0xff] }
 0x149   : > { %5495 = vmatpush3.bf16.msra.mxu0 %v6196_v51  ;;  %v646_v51 = vld [vmem:[%s6785_s10 + $0x630] sm:$0xff] }
 0x14a   : > { %5496 = vmatprep.subr.bf16.mxu0 %v6199_v52  ;;  %v662_v52 = vld [vmem:[%s6785_s10 + $0x6b0] sm:$0xff] }
 0x14b   : > { %5607 = vmatpush3.bf16.msra.mxu1 %v6198_v55  ;;  %v679_v55 = vld [vmem:[%s6785_s10 + $0x738] sm:$0xff] }
 0x14c   : > { %2643 = vmatmul.mubr.bf16.gmra.mxu0 %v996_v56  ;;  %5608 = vmatprep.subr.bf16.mxu1 %v6201_v57  ;;  %v695_v56 = vld [vmem:[%s6785_s10 + $0x7b8] sm:$0xff]  ;;  %v1060_v57 = vpack.c.bf16 %v660_v50, %v644_v49  ;;  %v788_v50 = vld [vmem:[%s6785_s10 + $0xaa0] sm:$0xff] }
 0x14d   : > { %2650 = vmatprep.mubr.bf16.mxu0 %v1013_v58  ;;  %5497 = vmatpush3.bf16.msra.mxu0 %v6200_v59  ;;  %v1077_v58 = vpack.c.bf16 %v693_v54, %v677_v53  ;;  %v1062_v59 = vpack.c.bf16 %v662_v52, %v646_v51  ;;  %v805_v51 = vld [vmem:[%s6785_s10 + $0xb28] sm:$0xff] }
 0x14e   : > { %2804 = vmatmul.mubr.bf16.gmra.mxu1 %v998_v60  ;;  %5498 = vmatprep.subr.bf16.mxu0 %v6203_v61  ;;  %v676_v60 = vld [vmem:[%s6785_s10 + $0x720] sm:$0xff]  ;;  %v821_v52 = vld [vmem:[%s6785_s10 + $0xba8] sm:$0xff] }
 0x14f   : > { %2811 = vmatprep.mubr.bf16.mxu1 %v1015_v62  ;;  %5609 = vmatpush3.bf16.msra.mxu1 %v6202_v63  ;;  %v692_v61 = vld [vmem:[%s6785_s10 + $0x7a0] sm:$0xff]  ;;  %v1079_v62 = vpack.c.bf16 %v695_v56, %v679_v55  ;;  %v709_v63 = vld [vmem:[%s6785_s10 + $0x828] sm:$0xff]  ;;  %v774_v55 = vld [vmem:[%s6785_s10 + $0xa30] sm:$0xff] }
 0x150   : > { %5610 = vmatprep.subr.bf16.mxu1 %v6205_v2  ;;  %v694_v2 = vld [vmem:[%s6785_s10 + $0x7b0] sm:$0xff]  ;;  %v1093_v6 = vpack.c.bf16 %v725_v0, %v709_v63 }
 0x151   : > { %5499 = vmatpush3.bf16.msra.mxu0 %v6204_v5  ;;  %v1076_v5 = vpack.c.bf16 %v692_v61, %v676_v60  ;;  %v1078_v7 = vpack.c.bf16 %v694_v2, %v678_v1  ;;  %v790_v56 = vld [vmem:[%s6785_s10 + $0xab0] sm:$0xff]  ;;  %v823_v60 = vld [vmem:[%s6785_s10 + $0xbb8] sm:$0xff] }
 0x152   : > { %5500 = vmatprep.subr.bf16.mxu0 %v6207_v8  ;;  %v708_v8 = vld [vmem:[%s6785_s10 + $0x820] sm:$0xff] }
 0x153   : > { %5611 = vmatpush3.bf16.msra.mxu1 %v6206_v10  ;;  %v1095_v10 = vpack.c.bf16 %v727_v4, %v711_v3  ;;  %v1141_v4 = vpack.c.bf16 %v821_v52, %v805_v51  ;;  %v885_v51 = vld [vmem:[%s6785_s10 + $0xda8] sm:$0xff] }
 0x154   : > { %2651 = vmatmul.mubr.bf16.gmra.mxu0 %v1012_v11  ;;  %5612 = vmatprep.subr.bf16.mxu1 %v6209_v13  ;;  %v741_v11 = vld [vmem:[%s6785_s10 + $0x928] sm:$0xff]  ;;  %v710_v13 = vld [vmem:[%s6785_s10 + $0x830] sm:$0xff] }
 0x155   : > { %2658 = vmatprep.mubr.bf16.mxu0 %v1029_v14  ;;  %5501 = vmatpush3.bf16.msra.mxu0 %v6208_v15  ;;  %v726_v14 = vld [vmem:[%s6785_s10 + $0x8b0] sm:$0xff]  ;;  %v743_v15 = vld [vmem:[%s6785_s10 + $0x938] sm:$0xff] }
 0x156   : > { %2812 = vmatmul.mubr.bf16.gmra.mxu1 %v1014_v16  ;;  %5502 = vmatprep.subr.bf16.mxu0 %v6211_v17  ;;  %v759_v16 = vld [vmem:[%s6785_s10 + $0x9b8] sm:$0xff]  ;;  %v1092_v17 = vpack.c.bf16 %v724_v9, %v708_v8 }
 0x157   : > { %2819 = vmatprep.mubr.bf16.mxu1 %v1031_v18  ;;  %5613 = vmatpush3.bf16.msra.mxu1 %v6210_v19  ;;  %v1109_v18 = vpack.c.bf16 %v757_v12, %v741_v11  ;;  %v1094_v19 = vpack.c.bf16 %v726_v14, %v710_v13  ;;  %v1111_v22 = vpack.c.bf16 %v759_v16, %v743_v15  ;;  %v804_v15 = vld [vmem:[%s6785_s10 + $0xb20] sm:$0xff] }
 0x158   : > { %5614 = vmatprep.subr.bf16.mxu1 %v6213_v21  ;;  %v756_v21 = vld [vmem:[%s6785_s10 + $0x9a0] sm:$0xff] }
 0x159   : > { %5503 = vmatpush3.bf16.msra.mxu0 %v6212_v24  ;;  %v7010_v24 = vld [vmem:[#allocation7] ss:$0 sm:$0xff]  ;;  %v1108_v37 = vpack.c.bf16 %v756_v21, %v740_v20  ;;  %v820_v16 = vld [vmem:[%s6785_s10 + $0xba0] sm:$0xff] }
 0x15a   : > { %5712 = vmatprep.subr.bf16.mxu0 %v6215_v27  ;;  %v742_v27 = vld [vmem:[%s6785_s10 + $0x930] sm:$0xff]  ;;  %v853_v20 = vld [vmem:[%s6785_s10 + $0xca8] sm:$0xff] }
 0x15b   : > { %5615 = vmatpush3.bf16.msra.mxu1 %v6214_v30 }
 0x15c   : > { %2659 = vmatmul.mubr.bf16.gmra.mxu0 %v1028_v31  ;;  %3399 = vmatprep.subr.bf16.mxu1 %v6562_v36 }
 0x15d   : > { %2666 = vmatprep.mubr.bf16.mxu0 %v1045_v33  ;;  %v791_v33 = vld [vmem:[%s6785_s10 + $0xab8] sm:$0xff] }
 0x15e   : > { %2820 = vmatmul.mubr.bf16.gmra.mxu1 %v1030_v34 }
 0x15f   : > { %2827 = vmatprep.mubr.bf16.mxu1 %v1047_v35 }
 0x164   : > { %2667 = vmatmul.mubr.bf16.gmra.mxu0 %v1044_v43  ;;  %v1110_v43 = vpack.c.bf16 %v758_v28, %v742_v27  ;;  %v1140_v28 = vpack.c.bf16 %v820_v16, %v804_v15  ;;  %v901_v16 = vld [vmem:[%s6785_s10 + $0xe28] sm:$0xff] }
 0x165   : > { %2674 = vmatprep.mubr.bf16.mxu0 %v1061_v46  ;;  %v772_v46 = vld [vmem:[%s6785_s10 + $0xa20] sm:$0xff] }
 0x166   : > { %2828 = vmatmul.mubr.bf16.gmra.mxu1 %v1046_v47  ;;  %v1127_v47 = vpack.c.bf16 %v791_v33, %v775_v32  ;;  %v1124_v1 = vpack.c.bf16 %v788_v50, %v772_v46  ;;  %v836_v46 = vld [vmem:[%s6785_s10 + $0xc20] sm:$0xff]  ;;  %v869_v50 = vld [vmem:[%s6785_s10 + $0xd28] sm:$0xff] }
 0x167   : > { %2835 = vmatprep.mubr.bf16.mxu1 %v1063_v48 }
 0x16c   : > { %2675 = vmatmul.mubr.bf16.gmra.mxu0 %v1060_v57 }
 0x16d   : > { %2682 = vmatprep.mubr.bf16.mxu0 %v1077_v58 }
 0x16e   : > { %2836 = vmatmul.mubr.bf16.gmra.mxu1 %v1062_v59  ;;  %v807_v59 = vld [vmem:[%s6785_s10 + $0xb38] sm:$0xff] }
 0x16f   : > { %2843 = vmatprep.mubr.bf16.mxu1 %v1079_v62 }
 0x174   : > { %2683 = vmatmul.mubr.bf16.gmra.mxu0 %v1076_v5 }
 0x175   : > { %2690 = vmatprep.mubr.bf16.mxu0 %v1093_v6 }
 0x176   : > { %2844 = vmatmul.mubr.bf16.gmra.mxu1 %v1078_v7  ;;  %v1126_v7 = vpack.c.bf16 %v790_v56, %v774_v55  ;;  %v854_v55 = vld [vmem:[%s6785_s10 + $0xcb0] sm:$0xff] }
 0x177   : > { %2851 = vmatprep.mubr.bf16.mxu1 %v1095_v10  ;;  %v1143_v10 = vpack.c.bf16 %v823_v60, %v807_v59  ;;  %v871_v59 = vld [vmem:[%s6785_s10 + $0xd38] sm:$0xff] }
 0x178   : > { %v887_v60 = vld [vmem:[%s6785_s10 + $0xdb8] sm:$0xff] }
 0x17c   : > { %v5056_v23 = vpop.f32.mrf.mxu0  ;;  %2691 = vmatmul.mubr.bf16.gmra.mxu0 %v1092_v17 }
 0x17d   : > { %2698 = vmatprep.mubr.bf16.mxu0 %v1109_v18 }
 0x17e   : > { %v5168_v29 = vpop.f32.mrf.mxu1  ;;  %2852 = vmatmul.mubr.bf16.gmra.mxu1 %v1094_v19  ;;  %v5057_v30 = vpop.f32.mrf.mxu0  ;;  %v837_v19 = vld [vmem:[%s6785_s10 + $0xc28] sm:$0xff] }
 0x17f   : > { %v5058_v31 = vadd.f32 %v5057_v30, %v5056_v23  ;;  %2859 = vmatprep.mubr.bf16.mxu1 %v1111_v22  ;;  %v806_v23 = vld [vmem:[%s6785_s10 + $0xb30] sm:$0xff]  ;;  %v855_v30 = vld [vmem:[%s6785_s10 + $0xcb8] sm:$0xff]  ;;  %v1157_v33 = vpack.c.bf16 %v853_v20, %v837_v19 }
 0x180   : > { %v5169_v34 = vpop.f32.mrf.mxu1  ;;  %v5059_v35 = vpop.f32.mrf.mxu0  ;;  %v870_v20 = vld [vmem:[%s6785_s10 + $0xd30] sm:$0xff] }
 0x181   : > { %v2307_v38 = vadd.f32 %v5058_v31, %v7010_v24  ;;  %v5170_v39 = vadd.f32 %v5169_v34, %v5168_v29  ;;  %v839_v29 = vld [vmem:[%s6785_s10 + $0xc38] sm:$0xff] }
 0x182   : > { %v5171_v41 = vpop.f32.mrf.mxu1  ;;  %v5060_v42 = vpop.f32.mrf.mxu0 }
 0x183   : > { %v7019_v44 = vadd.f32 %v5170_v39, %v2307_v38  ;;  %v5061_v45 = vadd.f32 %v5060_v42, %v5059_v35 }
 0x184   : > { %v5172_v48 = vpop.f32.mrf.mxu1  ;;  %v5062_v49 = vpop.f32.mrf.mxu0  ;;  %2699 = vmatmul.mubr.bf16.gmra.mxu0 %v1108_v37  ;;  %v1142_v37 = vpack.c.bf16 %v822_v25, %v806_v23 }
 0x185   : > { %v2310_v53 = vadd.f32 %v5061_v45, %v7010_v24  ;;  %v5173_v54 = vadd.f32 %v5172_v48, %v5171_v41  ;;  %2706 = vmatprep.mubr.bf16.mxu0 %v1125_v40  ;;  %v1159_v40 = vpack.c.bf16 %v855_v30, %v839_v29 }
 0x186   : > { %v5174_v57 = vpop.f32.mrf.mxu1  ;;  %2860 = vmatmul.mubr.bf16.gmra.mxu1 %v1110_v43  ;;  %v5063_v58 = vpop.f32.mrf.mxu0 }
 0x187   : > { %v7030_v61 = vadd.f32 %v5173_v54, %v2310_v53  ;;  %v5064_v62 = vadd.f32 %v5063_v58, %v5062_v49  ;;  %2867 = vmatprep.mubr.bf16.mxu1 %v1127_v47  ;;  %v852_v47 = vld [vmem:[%s6785_s10 + $0xca0] sm:$0xff]  ;;  %v838_v54 = vld [vmem:[%s6785_s10 + $0xc30] sm:$0xff] }
 0x188   : > { %v5175_v63 = vpop.f32.mrf.mxu1  ;;  %v5065_v0 = vpop.f32.mrf.mxu0  ;;  %v1156_v58 = vpack.c.bf16 %v852_v47, %v836_v46  ;;  %v916_v46 = vld [vmem:[%s6785_s10 + $0xea0] sm:$0xff] }
 0x189   : > { %v2315_v2 = vadd.f32 %v5064_v62, %v7010_v24  ;;  %v5176_v3 = vadd.f32 %v5175_v63, %v5174_v57 }
 0x18a   : > { %v5177_v5 = vpop.f32.mrf.mxu1  ;;  %v5066_v6 = vpop.f32.mrf.mxu0 }
 0x18b   : > { %v7033_v8 = vadd.f32 %v5176_v3, %v2315_v2  ;;  %v5067_v9 = vadd.f32 %v5066_v6, %v5065_v0  ;;  %v1173_v0 = vpack.c.bf16 %v885_v51, %v869_v50  ;;  %v1158_v3 = vpack.c.bf16 %v854_v55, %v838_v54  ;;  %v949_v50 = vld [vmem:[%s6785_s10 + $0xfa8] sm:$0xff]  ;;  %v902_v54 = vld [vmem:[%s6785_s10 + $0xe30] sm:$0xff] }
 0x18c   : > { %v5178_v11 = vpop.f32.mrf.mxu1  ;;  %v5068_v12 = vpop.f32.mrf.mxu0  ;;  %2707 = vmatmul.mubr.bf16.gmra.mxu0 %v1124_v1  ;;  %v1175_v6 = vpack.c.bf16 %v887_v60, %v871_v59  ;;  %v918_v55 = vld [vmem:[%s6785_s10 + $0xeb0] sm:$0xff]  ;;  %v935_v59 = vld [vmem:[%s6785_s10 + $0xf38] sm:$0xff] }
 0x18d   : > { %v2318_v13 = vadd.f32 %v5067_v9, %v7010_v24  ;;  %v5179_v14 = vadd.f32 %v5178_v11, %v5177_v5  ;;  %2714 = vmatprep.mubr.bf16.mxu0 %v1141_v4  ;;  %v951_v60 = vld [vmem:[%s6785_s10 + $0xfb8] sm:$0xff] }
 0x18e   : > { %v5180_v17 = vpop.f32.mrf.mxu1  ;;  %2868 = vmatmul.mubr.bf16.gmra.mxu1 %v1126_v7  ;;  %v5069_v18 = vpop.f32.mrf.mxu0 }
 0x18f   : > { %v7040_v21 = vadd.f32 %v5179_v14, %v2318_v13  ;;  %v5070_v22 = vadd.f32 %v5069_v18, %v5068_v12  ;;  %2875 = vmatprep.mubr.bf16.mxu1 %v1143_v10  ;;  %v868_v12 = vld [vmem:[%s6785_s10 + $0xd20] sm:$0xff] }
 0x190   : > { %v5181_v26 = vpop.f32.mrf.mxu1  ;;  %v5071_v27 = vpop.f32.mrf.mxu0  ;;  %v884_v13 = vld [vmem:[%s6785_s10 + $0xda0] sm:$0xff] }
 0x191   : > { %v2323_v31 = vadd.f32 %v5070_v22, %v7010_v24  ;;  %v5182_v32 = vadd.f32 %v5181_v26, %v5180_v17  ;;  %v917_v17 = vld [vmem:[%s6785_s10 + $0xea8] sm:$0xff]  ;;  %v886_v22 = vld [vmem:[%s6785_s10 + $0xdb0] sm:$0xff]  ;;  %v1172_v26 = vpack.c.bf16 %v884_v13, %v868_v12  ;;  %v932_v13 = vld [vmem:[%s6785_s10 + $0xf20] sm:$0xff] }
 0x192   : > { %v5183_v34 = vpop.f32.mrf.mxu1  ;;  %v5072_v35 = vpop.f32.mrf.mxu0 }
 0x193   : > { %v7047_v38 = vadd.f32 %v5182_v32, %v2323_v31  ;;  %v5073_v39 = vadd.f32 %v5072_v35, %v5071_v27  ;;  %v903_v27 = vld [vmem:[%s6785_s10 + $0xe38] sm:$0xff]  ;;  %v1189_v31 = vpack.c.bf16 %v917_v17, %v901_v16  ;;  %v457_v17 = vld [vmem:[%s6785_s10 + $0x48] sm:$0xff] }
 0x194   : > { %v5184_v41 = vpop.f32.mrf.mxu1  ;;  %v5074_v42 = vpop.f32.mrf.mxu0  ;;  %2715 = vmatmul.mubr.bf16.gmra.mxu0 %v1140_v28  ;;  %v919_v28 = vld [vmem:[%s6785_s10 + $0xeb8] sm:$0xff] }
 0x195   : > { %v2326_v43 = vadd.f32 %v5073_v39, %v7010_v24  ;;  %v5185_v45 = vadd.f32 %v5184_v41, %v5183_v34  ;;  %2722 = vmatprep.mubr.bf16.mxu0 %v1157_v33  ;;  %v1174_v34 = vpack.c.bf16 %v886_v22, %v870_v20  ;;  %v1191_v39 = vpack.c.bf16 %v919_v28, %v903_v27 }
 0x196   : > { %v5186_v48 = vpop.f32.mrf.mxu1  ;;  %2876 = vmatmul.mubr.bf16.gmra.mxu1 %v1142_v37  ;;  %v5075_v49 = vpop.f32.mrf.mxu0 }
 0x197   : > { %v7054_v52 = vadd.f32 %v5185_v45, %v2326_v43  ;;  %v5076_v53 = vadd.f32 %v5075_v49, %v5074_v42  ;;  %2883 = vmatprep.mubr.bf16.mxu1 %v1159_v40  ;;  %v900_v45 = vld [vmem:[%s6785_s10 + $0xe20] sm:$0xff]  ;;  %v933_v49 = vld [vmem:[%s6785_s10 + $0xf28] sm:$0xff] }
 0x198   : > { %v5187_v56 = vpop.f32.mrf.mxu1  ;;  %v5077_v57 = vpop.f32.mrf.mxu0 }
 0x199   : > { %v2331_v62 = vadd.f32 %v5076_v53, %v7010_v24  ;;  %v5188_v63 = vadd.f32 %v5187_v56, %v5186_v48 }
 0x19a   : > { %v5189_v1 = vpop.f32.mrf.mxu1  ;;  %v5078_v2 = vpop.f32.mrf.mxu0 }
 0x19b   : > { %v7061_v4 = vadd.f32 %v5188_v63, %v2331_v62  ;;  %v5079_v5 = vadd.f32 %v5078_v2, %v5077_v57 }
 0x19c   : > { %v5190_v7 = vpop.f32.mrf.mxu1  ;;  %v5080_v9 = vpop.f32.mrf.mxu0  ;;  %2723 = vmatmul.mubr.bf16.gmra.mxu0 %v1156_v58  ;;  %v1188_v58 = vpack.c.bf16 %v916_v46, %v900_v45 }
 0x19d   : > { %v2334_v10 = vadd.f32 %v5079_v5, %v7010_v24  ;;  %v5191_v11 = vadd.f32 %v5190_v7, %v5189_v1  ;;  %2730 = vmatprep.mubr.bf16.mxu0 %v1173_v0  ;;  %v1205_v0 = vpack.c.bf16 %v949_v50, %v933_v49  ;;  %v1207_v7 = vpack.c.bf16 %v951_v60, %v935_v59  ;;  %v472_v49 = vld [vmem:[%s6785_s10 + $0xc0] sm:$0xff]  ;;  %v474_v59 = vld [vmem:[%s6785_s10 + $0xd0] sm:$0xff] }
 0x19e   : > { %v5192_v14 = vpop.f32.mrf.mxu1  ;;  %2884 = vmatmul.mubr.bf16.gmra.mxu1 %v1158_v3  ;;  %v5081_v15 = vpop.f32.mrf.mxu0  ;;  %v1190_v3 = vpack.c.bf16 %v918_v55, %v902_v54  ;;  %v489_v54 = vld [vmem:[%s6785_s10 + $0x148] sm:$0xff] }
 0x19f   : > { %v7068_v18 = vadd.f32 %v5191_v11, %v2334_v10  ;;  %v5082_v19 = vadd.f32 %v5081_v15, %v5080_v9  ;;  %2891 = vmatprep.mubr.bf16.mxu1 %v1175_v6  ;;  %v505_v55 = vld [vmem:[%s6785_s10 + $0x1c8] sm:$0xff] }
 0x1a0   : > { %v5193_v23 = vpop.f32.mrf.mxu1  ;;  %v5083_v25 = vpop.f32.mrf.mxu0 }
 0x1a1   : > { %v2339_v29 = vadd.f32 %v5082_v19, %v7010_v24  ;;  %v5194_v30 = vadd.f32 %v5193_v23, %v5192_v14  ;;  %v948_v14 = vld [vmem:[%s6785_s10 + $0xfa0] sm:$0xff]  ;;  %v473_v19 = vld [vmem:[%s6785_s10 + $0xc8] sm:$0xff]  ;;  %v934_v23 = vld [vmem:[%s6785_s10 + $0xf30] sm:$0xff] }
 0x1a2   : > { %v5195_v32 = vpop.f32.mrf.mxu1  ;;  %v5084_v33 = vpop.f32.mrf.mxu0  ;;  %v1204_v28 = vpack.c.bf16 %v948_v14, %v932_v13 }
 0x1a3   : > { %v7075_v35 = vadd.f32 %v5194_v30, %v2339_v29  ;;  %v5085_v37 = vadd.f32 %v5084_v33, %v5083_v25  ;;  %v950_v25 = vld [vmem:[%s6785_s10 + $0xfb0] sm:$0xff]  ;;  %v459_v29 = vld [vmem:[%s6785_s10 + $0x58] sm:$0xff]  ;;  %v969_v33 = vpack.c.bf16 %v473_v19, %v457_v17 }
 0x1a4   : > { %v5196_v40 = vpop.f32.mrf.mxu1  ;;  %v5086_v41 = vpop.f32.mrf.mxu0  ;;  %2731 = vmatmul.mubr.bf16.gmra.mxu0 %v1172_v26  ;;  %v475_v30 = vld [vmem:[%s6785_s10 + $0xd8] sm:$0xff] }
 0x1a5   : > { %v2342_v42 = vadd.f32 %v5085_v37, %v7010_v24  ;;  %v5197_v43 = vadd.f32 %v5196_v40, %v5195_v32  ;;  %2738 = vmatprep.mubr.bf16.mxu0 %v1189_v31 }
 0x1a6   : > { %v5198_v47 = vpop.f32.mrf.mxu1  ;;  %2892 = vmatmul.mubr.bf16.gmra.mxu1 %v1174_v34  ;;  %v5087_v48 = vpop.f32.mrf.mxu0 }
 0x1a7   : > { %v7082_v51 = vadd.f32 %v5197_v43, %v2342_v42  ;;  %v5088_v53 = vadd.f32 %v5087_v48, %v5086_v41  ;;  %2899 = vmatprep.mubr.bf16.mxu1 %v1191_v39  ;;  %v1206_v39 = vpack.c.bf16 %v950_v25, %v934_v23  ;;  %v971_v42 = vpack.c.bf16 %v475_v30, %v459_v29  ;;  %v456_v48 = vld [vmem:[%s6785_s10 + $0x40] sm:$0xff]  ;;  %v521_v30 = vld [vmem:[%s6785_s10 + $0x248] sm:$0xff] }
 0x1a8   : > { %v5199_v56 = vpop.f32.mrf.mxu1  ;;  %v5089_v57 = vpop.f32.mrf.mxu0  ;;  %v488_v25 = vld [vmem:[%s6785_s10 + $0x140] sm:$0xff] }
 0x1a9   : > { %v2347_v62 = vadd.f32 %v5088_v53, %v7010_v24  ;;  %v5200_v63 = vadd.f32 %v5199_v56, %v5198_v47 }
 0x1aa   : > { %v5201_v1 = vpop.f32.mrf.mxu1  ;;  %v5090_v2 = vpop.f32.mrf.mxu0 }
 0x1ab   : > { %v7089_v5 = vadd.f32 %v5200_v63, %v2347_v62  ;;  %v5091_v6 = vadd.f32 %v5090_v2, %v5089_v57  ;;  %v968_v63 = vpack.c.bf16 %v472_v49, %v456_v48 }
 0x1ac   : > { %v5202_v9 = vpop.f32.mrf.mxu1  ;;  %v5092_v10 = vpop.f32.mrf.mxu0  ;;  %2739 = vmatmul.mubr.bf16.gmra.mxu0 %v1188_v58  ;;  %v458_v58 = vld [vmem:[%s6785_s10 + $0x50] sm:$0xff] }
 0x1ad   : > { %v2350_v11 = vadd.f32 %v5091_v6, %v7010_v24  ;;  %v5203_v12 = vadd.f32 %v5202_v9, %v5201_v1  ;;  %2746 = vmatprep.mubr.bf16.mxu0 %v1205_v0  ;;  %v491_v0 = vld [vmem:[%s6785_s10 + $0x158] sm:$0xff] }
 0x1ae   : > { %v5204_v15 = vpop.f32.mrf.mxu1  ;;  %2900 = vmatmul.mubr.bf16.gmra.mxu1 %v1190_v3  ;;  %v5093_v16 = vpop.f32.mrf.mxu0  ;;  %v507_v1 = vld [vmem:[%s6785_s10 + $0x1d8] sm:$0xff] }
 0x1af   : > { %v7096_v20 = vadd.f32 %v5203_v12, %v2350_v11  ;;  %v5094_v22 = vadd.f32 %v5093_v16, %v5092_v10  ;;  %2907 = vmatprep.mubr.bf16.mxu1 %v1207_v7  ;;  %v6216_v6 = vld [vmem:[#allocation5 + $0x338] sm:$0xff]   ;;  %v985_v7 = vpack.c.bf16 %v505_v55, %v489_v54  ;;  %v970_v11 = vpack.c.bf16 %v474_v59, %v458_v58  ;;  %v6218_v12 = vld [vmem:[#allocation5 + $0x370] sm:$0xff]   ;;  %v6226_v58 = vld [vmem:[#allocation5 + $0x360] sm:$0xff]  }
 0x1b0   : > { %v5205_v26 = vpop.f32.mrf.mxu1  ;;  %v5095_v27 = vpop.f32.mrf.mxu0  ;;  %v987_v16 = vpack.c.bf16 %v507_v1, %v491_v0 }
 0x1b1   : > { %v2355_v31 = vadd.f32 %v5094_v22, %v7010_v24  ;;  %v5206_v32 = vadd.f32 %v5205_v26, %v5204_v15  ;;  %v6217_v15 = vld [vmem:[#allocation5 + $0x3b8] sm:$0xff]   ;;  %v504_v26 = vld [vmem:[%s6785_s10 + $0x1c0] sm:$0xff] }
 0x1b2   : > { %v5207_v34 = vpop.f32.mrf.mxu1  ;;  %v5096_v37 = vpop.f32.mrf.mxu0 }
 0x1b3   : > { %v7103_v40 = vadd.f32 %v5206_v32, %v2355_v31  ;;  %v5097_v41 = vadd.f32 %v5096_v37, %v5095_v27  ;;  %v6219_v27 = vld [vmem:[#allocation5 + $0x330] sm:$0xff]   ;;  %v537_v31 = vld [vmem:[%s6785_s10 + $0x2c8] sm:$0xff] }
 0x1b4   : > { %v5208_v43 = vpop.f32.mrf.mxu1  ;;  %v5098_v45 = vpop.f32.mrf.mxu0  ;;  %2747 = vmatmul.mubr.bf16.gmra.mxu0 %v1204_v28  ;;  %v6222_v32 = vld [vmem:[#allocation5 + $0x368] sm:$0xff]   ;;  %v490_v37 = vld [vmem:[%s6785_s10 + $0x150] sm:$0xff] }
 0x1b5   : > { %v2358_v46 = vadd.f32 %v5097_v41, %v7010_v24  ;;  %v5209_v47 = vadd.f32 %v5208_v43, %v5207_v34  ;;  %2948 = vmatprep.mubr.bf16.mxu0 %v969_v33  ;;  %v6220_v41 = vld [vmem:[#allocation5 + $0x3b0] sm:$0xff]  }
 0x1b6   : > { %v5210_v50 = vpop.f32.mrf.mxu1  ;;  %2908 = vmatmul.mubr.bf16.gmra.mxu1 %v1206_v39  ;;  %v5099_v53 = vpop.f32.mrf.mxu0  ;;  %v506_v39 = vld [vmem:[%s6785_s10 + $0x1d0] sm:$0xff] }
 0x1b7   : > { %v7110_v56 = vadd.f32 %v5209_v47, %v2358_v46  ;;  %v5100_v57 = vadd.f32 %v5099_v53, %v5098_v45  ;;  %3109 = vmatprep.mubr.bf16.mxu1 %v971_v42  ;;  %v984_v45 = vpack.c.bf16 %v504_v26, %v488_v25  ;;  %v523_v46 = vld [vmem:[%s6785_s10 + $0x258] sm:$0xff]  ;;  %v6223_v53 = vld [vmem:[#allocation5 + $0x328] sm:$0xff]  }
 0x1b8   : > { %v5211_v60 = vpop.f32.mrf.mxu1  ;;  %v5101_v62 = vpop.f32.mrf.mxu0  ;;  %v539_v47 = vld [vmem:[%s6785_s10 + $0x2d8] sm:$0xff] }
 0x1b9   : > { %v2363_v2 = vadd.f32 %v5100_v57, %v7010_v24  ;;  %v5212_v3 = vadd.f32 %v5211_v60, %v5210_v50  ;;  %v1001_v50 = vpack.c.bf16 %v537_v31, %v521_v30  ;;  %v986_v57 = vpack.c.bf16 %v506_v39, %v490_v37 }
 0x1ba   : > { %v5213_v9 = vpop.f32.mrf.mxu1  ;;  %v5102_v10 = vpop.f32.mrf.mxu0 }
 0x1bb   : > { %v7117_v13 = vadd.f32 %v5212_v3, %v2363_v2  ;;  %v5103_v14 = vadd.f32 %v5102_v10, %v5101_v62  ;;  %v1003_v62 = vpack.c.bf16 %v539_v47, %v523_v46  ;;  %v6225_v47 = vld [vmem:[#allocation5 + $0x398] sm:$0xff]  }
 0x1bc   : > { %v5214_v17 = vpop.f32.mrf.mxu1  ;;  %v5104_v19 = vpop.f32.mrf.mxu0  ;;  %2949 = vmatmul.mubr.bf16.vlgmr.msra.gmra.mxu0 %v968_v63  ;;  %v6221_v63 = vld [vmem:[#allocation5 + $0x3a8] sm:$0xff]  }
 0x1bd   : > { %v2366_v22 = vadd.f32 %v5103_v14, %v7010_v24  ;;  %v5215_v23 = vadd.f32 %v5214_v17, %v5213_v9  ;;  %5713 = vmatpush3.bf16.msra.mxu0 %v6216_v6  ;;  %2956 = vmatprep.mubr.bf16.mxu0 %v985_v7  ;;  %v520_v6 = vld [vmem:[%s6785_s10 + $0x240] sm:$0xff]  ;;  %v569_v14 = vld [vmem:[%s6785_s10 + $0x3c8] sm:$0xff] }
 0x1be   : > { %v5216_v28 = vpop.f32.mrf.mxu1  ;;  %3110 = vmatmul.mubr.bf16.vlgmr.msra.gmra.mxu1 %v970_v11  ;;  %v5105_v29 = vpop.f32.mrf.mxu0  ;;  %5714 = vmatprep.subr.bf16.mxu0 %v6218_v12  ;;  %v536_v7 = vld [vmem:[%s6785_s10 + $0x2c0] sm:$0xff]  ;;  %v553_v12 = vld [vmem:[%s6785_s10 + $0x348] sm:$0xff] }
 0x1bf   : > { %v7124_v33 = vadd.f32 %v5215_v23, %v2366_v22  ;;  %v5106_v34 = vadd.f32 %v5105_v29, %v5104_v19  ;;  %3400 = vmatpush1.bf16.msra.mxu1 %v6217_v15  ;;  %3117 = vmatprep.mubr.bf16.mxu1 %v987_v16  ;;  %v6227_v9 = vld [vmem:[#allocation5 + $0x320] sm:$0xff]   ;;  %v6229_v15 = vld [vmem:[#allocation5 + $0x358] sm:$0xff]   ;;  %v522_v19 = vld [vmem:[%s6785_s10 + $0x250] sm:$0xff] }
 0x1c0   : > { %v5217_v42 = vpop.f32.mrf.mxu1  ;;  %v5107_v43 = vpop.f32.mrf.mxu0  ;;  %3401 = vmatprep.subr.bf16.mxu1 %v6562_v36  ;;  %v538_v22 = vld [vmem:[%s6785_s10 + $0x2d0] sm:$0xff]  ;;  %v6224_v23 = vld [vmem:[#allocation5 + $0x3a0] sm:$0xff]   ;;  %v571_v29 = vld [vmem:[%s6785_s10 + $0x3d8] sm:$0xff] }
 0x1c1   : > { %v2371_v48 = vadd.f32 %v5106_v34, %v7010_v24  ;;  %v5218_v49 = vadd.f32 %v5217_v42, %v5216_v28  ;;  %5715 = vmatpush3.bf16.msra.mxu0 %v6219_v27  ;;  %v1000_v27 = vpack.c.bf16 %v536_v7, %v520_v6  ;;  %v555_v28 = vld [vmem:[%s6785_s10 + $0x358] sm:$0xff]  ;;  %v6233_v42 = vld [vmem:[#allocation5 + $0x350] sm:$0xff]  }
 0x1c2   : > { %v5219_v54 = vpop.f32.mrf.mxu1  ;;  %v5108_v55 = vpop.f32.mrf.mxu0  ;;  %5716 = vmatprep.subr.bf16.mxu0 %v6222_v32  ;;  %v1017_v32 = vpack.c.bf16 %v569_v14, %v553_v12  ;;  %v6230_v34 = vld [vmem:[#allocation5 + $0x318] sm:$0xff]   ;;  %v1019_v46 = vpack.c.bf16 %v571_v29, %v555_v28  ;;  %v570_v6 = vld [vmem:[%s6785_s10 + $0x3d0] sm:$0xff] }
 0x1c3   : > { %v7132_v59 = vadd.f32 %v5218_v49, %v2371_v48  ;;  %v5109_v60 = vadd.f32 %v5108_v55, %v5107_v43  ;;  %3402 = vmatpush1.bf16.msra.mxu1 %v6220_v41  ;;  %v1002_v41 = vpack.c.bf16 %v538_v22, %v522_v19  ;;  %v568_v55 = vld [vmem:[%s6785_s10 + $0x3c0] sm:$0xff]  ;;  %v6228_v7 = vld [vmem:[#allocation5 + $0x390] sm:$0xff]   ;;  %v587_v12 = vld [vmem:[%s6785_s10 + $0x458] sm:$0xff] }
 0x1c4   : > { %v5220_v0 = vpop.f32.mrf.mxu1  ;;  %v5110_v1 = vpop.f32.mrf.mxu0  ;;  %2957 = vmatmul.mubr.bf16.gmra.mxu0 %v984_v45  ;;  %3403 = vmatprep.subr.bf16.mxu1 %v6562_v36  ;;  %v603_v14 = vld [vmem:[%s6785_s10 + $0x4d8] sm:$0xff]  ;;  %v6238_v22 = vld [vmem:[#allocation5 + $0x308] sm:$0xff]  }
 0x1c5   : > { %v2374_v2 = vadd.f32 %v5109_v60, %v7010_v24  ;;  %v5221_v3 = vadd.f32 %v5220_v0, %v5219_v54  ;;  %2964 = vmatprep.mubr.bf16.mxu0 %v1001_v50  ;;  %5717 = vmatpush3.bf16.msra.mxu0 %v6223_v53  ;;  %v552_v54 = vld [vmem:[%s6785_s10 + $0x340] sm:$0xff]  ;;  %v6236_v0 = vld [vmem:[#allocation5 + $0x348] sm:$0xff]  }
 0x1c6   : > { %v5222_v10 = vpop.f32.mrf.mxu1  ;;  %3118 = vmatmul.mubr.bf16.gmra.mxu1 %v986_v57  ;;  %v5111_v11 = vpop.f32.mrf.mxu0  ;;  %5718 = vmatprep.subr.bf16.mxu0 %v6226_v58  ;;  %v6234_v57 = vld [vmem:[#allocation5 + $0x310] sm:$0xff]  }
 0x1c7   : > { %v7140_v16 = vadd.f32 %v5221_v3, %v2374_v2  ;;  %v5112_v17 = vadd.f32 %v5111_v11, %v5110_v1  ;;  %3125 = vmatprep.mubr.bf16.mxu1 %v1003_v62  ;;  %3404 = vmatpush1.bf16.msra.mxu1 %v6221_v63  ;;  %v585_v62 = vld [vmem:[%s6785_s10 + $0x448] sm:$0xff]  ;;  %v554_v3 = vld [vmem:[%s6785_s10 + $0x350] sm:$0xff]  ;;  %v1016_v11 = vpack.c.bf16 %v568_v55, %v552_v54 }
 0x1c8   : > { %v5223_v25 = vpop.f32.mrf.mxu1  ;;  %v5113_v26 = vpop.f32.mrf.mxu0  ;;  %3405 = vmatprep.subr.bf16.mxu1 %v6562_v36  ;;  %v601_v63 = vld [vmem:[%s6785_s10 + $0x4c8] sm:$0xff]  ;;  %v586_v54 = vld [vmem:[%s6785_s10 + $0x450] sm:$0xff] }
 0x1c9   : > { %v2379_v30 = vadd.f32 %v5112_v17, %v7010_v24  ;;  %v5224_v31 = vadd.f32 %v5223_v25, %v5222_v10  ;;  %5719 = vmatpush3.bf16.msra.mxu0 %v6227_v9  ;;  %v1033_v19 = vpack.c.bf16 %v601_v63, %v585_v62  ;;  %v602_v55 = vld [vmem:[%s6785_s10 + $0x4d0] sm:$0xff]  ;;  %v619_v63 = vld [vmem:[%s6785_s10 + $0x558] sm:$0xff] }
 0x1ca   : > { %v5225_v37 = vpop.f32.mrf.mxu1  ;;  %v5114_v39 = vpop.f32.mrf.mxu0  ;;  %5720 = vmatprep.subr.bf16.mxu0 %v6229_v15 }
 0x1cb   : > { %v7148_v43 = vadd.f32 %v5224_v31, %v2379_v30  ;;  %v5115_v45 = vadd.f32 %v5114_v39, %v5113_v26  ;;  %3406 = vmatpush1.bf16.msra.mxu1 %v6224_v23  ;;  %v1018_v26 = vpack.c.bf16 %v570_v6, %v554_v3  ;;  %v1035_v30 = vpack.c.bf16 %v603_v14, %v587_v12  ;;  %v6231_v31 = vld [vmem:[#allocation5 + $0x388] sm:$0xff]  }
 0x1cc   : > { %v5226_v48 = vpop.f32.mrf.mxu1  ;;  %v5116_v49 = vpop.f32.mrf.mxu0  ;;  %2965 = vmatmul.mubr.bf16.gmra.mxu0 %v1000_v27  ;;  %3407 = vmatprep.subr.bf16.mxu1 %v6562_v36  ;;  %v6240_v27 = vld [vmem:[#allocation5 + $0x340] sm:$0xff]  }
 0x1cd   : > { %v2382_v50 = vadd.f32 %v5115_v45, %v7010_v24  ;;  %v5227_v53 = vadd.f32 %v5226_v48, %v5225_v37  ;;  %2972 = vmatprep.mubr.bf16.mxu0 %v1017_v32  ;;  %5721 = vmatpush3.bf16.msra.mxu0 %v6230_v34  ;;  %v6241_v45 = vld [vmem:[#allocation5 + $0x300] sm:$0xff]   ;;  %v617_v48 = vld [vmem:[%s6785_s10 + $0x548] sm:$0xff] }
 0x1ce   : > { %v5228_v58 = vpop.f32.mrf.mxu1  ;;  %3126 = vmatmul.mubr.bf16.gmra.mxu1 %v1002_v41  ;;  %v5117_v60 = vpop.f32.mrf.mxu0  ;;  %5722 = vmatprep.subr.bf16.mxu0 %v6233_v42  ;;  %v584_v41 = vld [vmem:[%s6785_s10 + $0x440] sm:$0xff] }
 0x1cf   : > { %v7156_v1 = vadd.f32 %v5227_v53, %v2382_v50  ;;  %v5118_v2 = vadd.f32 %v5117_v60, %v5116_v49  ;;  %3133 = vmatprep.mubr.bf16.mxu1 %v1019_v46  ;;  %3408 = vmatpush1.bf16.msra.mxu1 %v6225_v47  ;;  %v600_v42 = vld [vmem:[%s6785_s10 + $0x4c0] sm:$0xff]  ;;  %v633_v49 = vld [vmem:[%s6785_s10 + $0x5c8] sm:$0xff] }
 0x1d0   : > { %v5229_v9 = vpop.f32.mrf.mxu1  ;;  %v5119_v10 = vpop.f32.mrf.mxu0  ;;  %3409 = vmatprep.subr.bf16.mxu1 %v6562_v36  ;;  %v1032_v62 = vpack.c.bf16 %v600_v42, %v584_v41  ;;  %v1049_v6 = vpack.c.bf16 %v633_v49, %v617_v48  ;;  %v6237_v41 = vld [vmem:[#allocation5 + $0x3d8] sm:$0xff]  }
 0x1d1   : > { %v2387_v15 = vadd.f32 %v5118_v2, %v7010_v24  ;;  %v5230_v17 = vadd.f32 %v5229_v9, %v5228_v58  ;;  %5723 = vmatpush3.bf16.msra.mxu0 %v6234_v57  ;;  %v6232_v57 = vld [vmem:[#allocation5 + $0x380] sm:$0xff]   ;;  %v667_v48 = vld [vmem:[%s6785_s10 + $0x6d8] sm:$0xff] }
 0x1d2   : > { %v5231_v23 = vpop.f32.mrf.mxu1  ;;  %v5120_v25 = vpop.f32.mrf.mxu0  ;;  %5724 = vmatprep.subr.bf16.mxu0 %v6236_v0  ;;  %v635_v0 = vld [vmem:[%s6785_s10 + $0x5d8] sm:$0xff] }
 0x1d3   : > { %v7164_v28 = vadd.f32 %v5230_v17, %v2387_v15  ;;  %v5121_v29 = vadd.f32 %v5120_v25, %v5119_v10  ;;  %3410 = vmatpush1.bf16.msra.mxu1 %v6228_v7  ;;  %v1034_v10 = vpack.c.bf16 %v602_v55, %v586_v54  ;;  %v1051_v14 = vpack.c.bf16 %v635_v0, %v619_v63  ;;  %v6235_v15 = vld [vmem:[#allocation5 + $0x3e0] sm:$0xff]   ;;  %v6239_v0 = vld [vmem:[#allocation5 + $0x3d0] sm:$0xff]  }
 0x1d4   : > { %v5232_v32 = vpop.f32.mrf.mxu1  ;;  %v5122_v34 = vpop.f32.mrf.mxu0  ;;  %2973 = vmatmul.mubr.bf16.gmra.mxu0 %v1016_v11  ;;  %3411 = vmatprep.subr.bf16.mxu1 %v6562_v36  ;;  %v616_v25 = vld [vmem:[%s6785_s10 + $0x540] sm:$0xff] }
 0x1d5   : > { %v2390_v37 = vadd.f32 %v5121_v29, %v7010_v24  ;;  %v5233_v39 = vadd.f32 %v5232_v32, %v5231_v23  ;;  %2980 = vmatprep.mubr.bf16.mxu0 %v1033_v19  ;;  %5725 = vmatpush3.bf16.msra.mxu0 %v6238_v22 }
 0x1d6   : > { %v5234_v46 = vpop.f32.mrf.mxu1  ;;  %3134 = vmatmul.mubr.bf16.gmra.mxu1 %v1018_v26  ;;  %v5123_v47 = vpop.f32.mrf.mxu0  ;;  %5726 = vmatprep.subr.bf16.mxu0 %v6240_v27  ;;  %v632_v26 = vld [vmem:[%s6785_s10 + $0x5c0] sm:$0xff] }
 0x1d7   : > { %v7172_v50 = vadd.f32 %v5233_v39, %v2390_v37  ;;  %v5124_v53 = vadd.f32 %v5123_v47, %v5122_v34  ;;  %3141 = vmatprep.mubr.bf16.mxu1 %v1035_v30  ;;  %3412 = vmatpush1.bf16.msra.mxu1 %v6231_v31  ;;  %v649_v30 = vld [vmem:[%s6785_s10 + $0x648] sm:$0xff]  ;;  %v618_v37 = vld [vmem:[%s6785_s10 + $0x550] sm:$0xff]  ;;  %v651_v47 = vld [vmem:[%s6785_s10 + $0x658] sm:$0xff] }
 0x1d8   : > { %v5235_v58 = vpop.f32.mrf.mxu1  ;;  %v5125_v60 = vpop.f32.mrf.mxu0  ;;  %3413 = vmatprep.subr.bf16.mxu1 %v6562_v36  ;;  %v665_v31 = vld [vmem:[%s6785_s10 + $0x6c8] sm:$0xff]  ;;  %v634_v39 = vld [vmem:[%s6785_s10 + $0x5d0] sm:$0xff]  ;;  %v1067_v63 = vpack.c.bf16 %v667_v48, %v651_v47 }
 0x1d9   : > { %v2395_v2 = vadd.f32 %v5124_v53, %v7010_v24  ;;  %v5236_v3 = vadd.f32 %v5235_v58, %v5234_v46  ;;  %5727 = vmatpush3.bf16.msra.mxu0 %v6241_v45  ;;  %v1048_v46 = vpack.c.bf16 %v632_v26, %v616_v25  ;;  %v1065_v54 = vpack.c.bf16 %v665_v31, %v649_v30  ;;  %v666_v25 = vld [vmem:[%s6785_s10 + $0x6d0] sm:$0xff]  ;;  %v6242_v26 = vld [vmem:[#allocation5 + $0x3c8] sm:$0xff]   ;;  %v683_v30 = vld [vmem:[%s6785_s10 + $0x758] sm:$0xff] }
 0x1da   : > { %v5237_v7 = vpop.f32.mrf.mxu1  ;;  %v5126_v9 = vpop.f32.mrf.mxu0  ;;  %v1050_v58 = vpack.c.bf16 %v634_v39, %v618_v37  ;;  %v699_v31 = vld [vmem:[%s6785_s10 + $0x7d8] sm:$0xff] }
 0x1db   : > { %v7180_v11 = vadd.f32 %v5236_v3, %v2395_v2  ;;  %v5127_v12 = vadd.f32 %v5126_v9, %v5125_v60  ;;  %3414 = vmatpush1.bf16.msra.mxu1 %v6232_v57  ;;  %v648_v9 = vld [vmem:[%s6785_s10 + $0x640] sm:$0xff] }
 0x1dc   : > { %v5238_v17 = vpop.f32.mrf.mxu1  ;;  %v5128_v19 = vpop.f32.mrf.mxu0  ;;  %2981 = vmatmul.mubr.bf16.gmra.mxu0 %v1032_v62  ;;  %3421 = vmatprep.subr.bf16.mxu1 %v6562_v36 }
 0x1dd   : > { %v2398_v22 = vadd.f32 %v5127_v12, %v7010_v24  ;;  %v5239_v23 = vadd.f32 %v5238_v17, %v5237_v7  ;;  %2988 = vmatprep.mubr.bf16.mxu0 %v1049_v6  ;;  %v697_v17 = vld [vmem:[%s6785_s10 + $0x7c8] sm:$0xff] }
 0x1de   : > { %v5240_v27 = vpop.f32.mrf.mxu1  ;;  %3142 = vmatmul.mubr.bf16.gmra.mxu1 %v1034_v10  ;;  %v5129_v29 = vpop.f32.mrf.mxu0  ;;  %v664_v10 = vld [vmem:[%s6785_s10 + $0x6c0] sm:$0xff] }
 0x1df   : > { %v7188_v32 = vadd.f32 %v5239_v23, %v2398_v22  ;;  %v5130_v34 = vadd.f32 %v5129_v29, %v5128_v19  ;;  %3149 = vmatprep.mubr.bf16.mxu1 %v1051_v14  ;;  %3422 = vmatpush2.bf16.msra.mxu1 %v6235_v15  ;;  %v681_v15 = vld [vmem:[%s6785_s10 + $0x748] sm:$0xff]  ;;  %v650_v23 = vld [vmem:[%s6785_s10 + $0x650] sm:$0xff]  ;;  %v1064_v29 = vpack.c.bf16 %v664_v10, %v648_v9 }
 0x1e0   : > { %v5241_v42 = vpop.f32.mrf.mxu1  ;;  %v5131_v45 = vpop.f32.mrf.mxu0  ;;  %3423 = vmatprep.subr.bf16.mxu1 %v6562_v36  ;;  %v682_v10 = vld [vmem:[%s6785_s10 + $0x750] sm:$0xff] }
 0x1e1   : > { %v2403_v49 = vadd.f32 %v5130_v34, %v7010_v24  ;;  %v5242_v53 = vadd.f32 %v5241_v42, %v5240_v27  ;;  %v7211_v34 = vld [vmem:[#allocation7] ss:$0 sm:$0xff] }
 0x1e2   : > { %v5243_v55 = vpop.f32.mrf.mxu1  ;;  %v5132_v57 = vpop.f32.mrf.mxu0 }
 0x1e3   : > { %v7196_v60 = vadd.f32 %v5242_v53, %v2403_v49  ;;  %v5133_v62 = vadd.f32 %v5132_v57, %v5131_v45  ;;  %3424 = vmatpush2.bf16.msra.mxu1 %v6237_v41  ;;  %v1081_v41 = vpack.c.bf16 %v697_v17, %v681_v15  ;;  %v1083_v49 = vpack.c.bf16 %v699_v31, %v683_v30  ;;  %v6243_v53 = vld [vmem:[#allocation5 + $0x3c0] sm:$0xff]   ;;  %v715_v17 = vld [vmem:[%s6785_s10 + $0x858] sm:$0xff] }
 0x1e4   : > { %v5244_v2 = vpop.f32.mrf.mxu1  ;;  %v5134_v3 = vpop.f32.mrf.mxu0  ;;  %2989 = vmatmul.mubr.bf16.gmra.mxu0 %v1048_v46  ;;  %3425 = vmatprep.subr.bf16.mxu1 %v6562_v36  ;;  %v1066_v46 = vpack.c.bf16 %v666_v25, %v650_v23 }
 0x1e5   : > { %v2406_v6 = vadd.f32 %v5133_v62, %v7010_v24  ;;  %v5245_v7 = vadd.f32 %v5244_v2, %v5243_v55  ;;  %2996 = vmatprep.mubr.bf16.mxu0 %v1065_v54  ;;  %v680_v62 = vld [vmem:[%s6785_s10 + $0x740] sm:$0xff] }
 0x1e6   : > { %v5246_v12 = vpop.f32.mrf.mxu1  ;;  %3150 = vmatmul.mubr.bf16.gmra.mxu1 %v1050_v58  ;;  %v5135_v14 = vpop.f32.mrf.mxu0 }
 0x1e7   : > { %v7204_v19 = vadd.f32 %v5245_v7, %v2406_v6  ;;  %v5136_v22 = vadd.f32 %v5135_v14, %v5134_v3  ;;  %3157 = vmatprep.mubr.bf16.mxu1 %v1067_v63  ;;  %3426 = vmatpush2.bf16.msra.mxu1 %v6239_v0  ;;  %v696_v63 = vld [vmem:[%s6785_s10 + $0x7c0] sm:$0xff]  ;;  %v713_v3 = vld [vmem:[%s6785_s10 + $0x848] sm:$0xff] }
 0x1e8   : > { %v5247_v24 = vpop.f32.mrf.mxu1  ;;  %v5137_v27 = vpop.f32.mrf.mxu0  ;;  %3427 = vmatprep.subr.bf16.mxu1 %v6562_v36  ;;  %v729_v6 = vld [vmem:[%s6785_s10 + $0x8c8] sm:$0xff]  ;;  %v1080_v15 = vpack.c.bf16 %v696_v63, %v680_v62  ;;  %v714_v62 = vld [vmem:[%s6785_s10 + $0x850] sm:$0xff] }
 0x1e9   : > { %v2411_v37 = vadd.f32 %v7211_v34, %v5136_v22  ;;  %v5248_v39 = vadd.f32 %v5247_v24, %v5246_v12  ;;  %v698_v12 = vld [vmem:[%s6785_s10 + $0x7d0] sm:$0xff]  ;;  %v731_v22 = vld [vmem:[%s6785_s10 + $0x8d8] sm:$0xff] }
 0x1ea   : > { %v5249_v42 = vpop.f32.mrf.mxu1  ;;  %v5138_v45 = vpop.f32.mrf.mxu0  ;;  %v730_v63 = vld [vmem:[%s6785_s10 + $0x8d0] sm:$0xff] }
 0x1eb   : > { %v7214_v47 = vadd.f32 %v5248_v39, %v2411_v37  ;;  %v5139_v48 = vadd.f32 %v5138_v45, %v5137_v27  ;;  %3428 = vmatpush2.bf16.msra.mxu1 %v6242_v26  ;;  %v1097_v26 = vpack.c.bf16 %v729_v6, %v713_v3  ;;  %v1099_v37 = vpack.c.bf16 %v731_v22, %v715_v17  ;;  %v747_v6 = vld [vmem:[%s6785_s10 + $0x958] sm:$0xff] }
 0x1ec   : > { %v5250_v54 = vpop.f32.mrf.mxu1  ;;  %v5140_v55 = vpop.f32.mrf.mxu0  ;;  %2997 = vmatmul.mubr.bf16.gmra.mxu0 %v1064_v29  ;;  %3429 = vmatprep.subr.bf16.mxu1 %v6562_v36  ;;  %v1082_v29 = vpack.c.bf16 %v698_v12, %v682_v10  ;;  %v1098_v17 = vpack.c.bf16 %v730_v63, %v714_v62  ;;  %v795_v62 = vld [vmem:[%s6785_s10 + $0xad8] sm:$0xff] }
 0x1ed   : > { %v2414_v57 = vadd.f32 %v7211_v34, %v5139_v48  ;;  %v5251_v58 = vadd.f32 %v5250_v54, %v5249_v42  ;;  %3004 = vmatprep.mubr.bf16.mxu0 %v1081_v41  ;;  %v728_v48 = vld [vmem:[%s6785_s10 + $0x8c0] sm:$0xff]  ;;  %v745_v54 = vld [vmem:[%s6785_s10 + $0x948] sm:$0xff] }
 0x1ee   : > { %v5252_v0 = vpop.f32.mrf.mxu1  ;;  %3158 = vmatmul.mubr.bf16.gmra.mxu1 %v1066_v46  ;;  %v5141_v2 = vpop.f32.mrf.mxu0  ;;  %v712_v46 = vld [vmem:[%s6785_s10 + $0x840] sm:$0xff] }
 0x1ef   : > { %v7222_v7 = vadd.f32 %v5251_v58, %v2414_v57  ;;  %v5142_v9 = vadd.f32 %v5141_v2, %v5140_v55  ;;  %3165 = vmatprep.mubr.bf16.mxu1 %v1083_v49  ;;  %3430 = vmatpush2.bf16.msra.mxu1 %v6243_v53  ;;  %v761_v55 = vld [vmem:[%s6785_s10 + $0x9c8] sm:$0xff]  ;;  %v1096_v3 = vpack.c.bf16 %v728_v48, %v712_v46 }
 0x1f0   : > { %v5253_v36 = vpop.f32.mrf.mxu1  ;;  %v5143_v14 = vpop.f32.mrf.mxu0 }
 0x1f1   : > { %v2419_v23 = vadd.f32 %v7211_v34, %v5142_v9  ;;  %v5254_v25 = vadd.f32 %v5253_v36, %v5252_v0  ;;  %v763_v9 = vld [vmem:[%s6785_s10 + $0x9d8] sm:$0xff]  ;;  %v1113_v36 = vpack.c.bf16 %v761_v55, %v745_v54 }
 0x1f2   : > { %v5255_v24 = vpop.f32.mrf.mxu1  ;;  %v5144_v27 = vpop.f32.mrf.mxu0 }
 0x1f3   : > { %v7229_v30 = vadd.f32 %v5254_v25, %v2419_v23  ;;  %v5145_v31 = vadd.f32 %v5144_v27, %v5143_v14  ;;  %v1115_v25 = vpack.c.bf16 %v763_v9, %v747_v6 }
 0x1f4   : > { %v5256_v39 = vpop.f32.mrf.mxu1  ;;  %v5146_v41 = vpop.f32.mrf.mxu0  ;;  %3005 = vmatmul.mubr.bf16.gmra.mxu0 %v1080_v15 }
 0x1f5   : > { %v2422_v42 = vadd.f32 %v7211_v34, %v5145_v31  ;;  %v5257_v45 = vadd.f32 %v5256_v39, %v5255_v24  ;;  %3012 = vmatprep.mubr.bf16.mxu0 %v1097_v26  ;;  %v744_v31 = vld [vmem:[%s6785_s10 + $0x940] sm:$0xff] }
 0x1f6   : > { %v5258_v49 = vpop.f32.mrf.mxu1  ;;  %3166 = vmatmul.mubr.bf16.gmra.mxu1 %v1082_v29  ;;  %v5147_v53 = vpop.f32.mrf.mxu0 }
 0x1f7   : > { %v7236_v57 = vadd.f32 %v5257_v45, %v2422_v42  ;;  %v5148_v58 = vadd.f32 %v5147_v53, %v5146_v41  ;;  %3173 = vmatprep.mubr.bf16.mxu1 %v1099_v37  ;;  %v760_v37 = vld [vmem:[%s6785_s10 + $0x9c0] sm:$0xff]  ;;  %v777_v42 = vld [vmem:[%s6785_s10 + $0xa48] sm:$0xff]  ;;  %v762_v53 = vld [vmem:[%s6785_s10 + $0x9d0] sm:$0xff] }
 0x1f8   : > { %v5259_v0 = vpop.f32.mrf.mxu1  ;;  %v5149_v2 = vpop.f32.mrf.mxu0  ;;  %v793_v45 = vld [vmem:[%s6785_s10 + $0xac8] sm:$0xff] }
 0x1f9   : > { %v2427_v10 = vadd.f32 %v7211_v34, %v5148_v58  ;;  %v5260_v12 = vadd.f32 %v5259_v0, %v5258_v49  ;;  %v746_v49 = vld [vmem:[%s6785_s10 + $0x950] sm:$0xff]  ;;  %v779_v58 = vld [vmem:[%s6785_s10 + $0xa58] sm:$0xff] }
 0x1fa   : > { %v5261_v14 = vpop.f32.mrf.mxu1  ;;  %v5150_v15 = vpop.f32.mrf.mxu0  ;;  %v1114_v9 = vpack.c.bf16 %v762_v53, %v746_v49  ;;  %v827_v49 = vld [vmem:[%s6785_s10 + $0xbd8] sm:$0xff] }
 0x1fb   : > { %v7243_v22 = vadd.f32 %v5260_v12, %v2427_v10  ;;  %v5151_v23 = vadd.f32 %v5150_v15, %v5149_v2  ;;  %v1129_v2 = vpack.c.bf16 %v793_v45, %v777_v42 }
 0x1fc   : > { %v5262_v26 = vpop.f32.mrf.mxu1  ;;  %v5280_v24 = vpop.f32.mrf.mxu0  ;;  %3013 = vmatmul.mubr.bf16.gmra.mxu0 %v1096_v3 }
 0x1fd   : > { %v2430_v27 = vadd.f32 %v7211_v34, %v5151_v23  ;;  %v5263_v29 = vadd.f32 %v5262_v26, %v5261_v14  ;;  %3020 = vmatprep.mubr.bf16.mxu0 %v1113_v36  ;;  %v1112_v34 = vpack.c.bf16 %v760_v37, %v744_v31  ;;  %v1131_v36 = vpack.c.bf16 %v795_v62, %v779_v58  ;;  %v776_v23 = vld [vmem:[%s6785_s10 + $0xa40] sm:$0xff] }
 0x1fe   : > { %v5392_v39 = vpop.f32.mrf.mxu1  ;;  %3174 = vmatmul.mubr.bf16.gmra.mxu1 %v1098_v17  ;;  %v5281_v41 = vpop.f32.mrf.mxu0 }
 0x1ff   : > { %v7250_v46 = vadd.f32 %v5263_v29, %v2430_v27  ;;  %v5282_v48 = vadd.f32 %v5281_v41, %v5280_v24  ;;  %3181 = vmatprep.mubr.bf16.mxu1 %v1115_v25  ;;  %v792_v25 = vld [vmem:[%s6785_s10 + $0xac0] sm:$0xff]  ;;  %v809_v27 = vld [vmem:[%s6785_s10 + $0xb48] sm:$0xff]  ;;  %v794_v41 = vld [vmem:[%s6785_s10 + $0xad0] sm:$0xff] }
 0x200   : > { %v5393_v54 = vpop.f32.mrf.mxu1  ;;  %v5283_v55 = vpop.f32.mrf.mxu0  ;;  %v825_v29 = vld [vmem:[%s6785_s10 + $0xbc8] sm:$0xff] }
 0x201   : > { %v2629_v63 = vadd.f32 %v5282_v48, %v7019_v44  ;;  %v5394_v0 = vadd.f32 %v5393_v54, %v5392_v39  ;;  %v778_v39 = vld [vmem:[%s6785_s10 + $0xa50] sm:$0xff]  ;;  %v811_v48 = vld [vmem:[%s6785_s10 + $0xb58] sm:$0xff] }
 0x202   : > { %v5395_v3 = vpop.f32.mrf.mxu1  ;;  %v5284_v6 = vpop.f32.mrf.mxu0  ;;  %v1130_v62 = vpack.c.bf16 %v794_v41, %v778_v39  ;;  %v859_v39 = vld [vmem:[%s6785_s10 + $0xcd8] sm:$0xff] }
 0x203   : > { %v7257_v10 = vadd.f32 %v5394_v0, %v2629_v63  ;;  %v5285_v12 = vadd.f32 %v5284_v6, %v5283_v55  ;;  %v1145_v55 = vpack.c.bf16 %v825_v29, %v809_v27 }
 0x204   : > { %v5396_v14 = vpop.f32.mrf.mxu1  ;;  %v5286_v15 = vpop.f32.mrf.mxu0  ;;  %3021 = vmatmul.mubr.bf16.gmra.mxu0 %v1112_v34 }
 0x205   : > { %v2632_v17 = vadd.f32 %v5285_v12, %v7030_v61  ;;  %v5397_v44 = vadd.f32 %v5396_v14, %v5395_v3  ;;  %3028 = vmatprep.mubr.bf16.mxu0 %v1129_v2  ;;  %v1128_v61 = vpack.c.bf16 %v792_v25, %v776_v23  ;;  %v1147_v2 = vpack.c.bf16 %v827_v49, %v811_v48  ;;  %v808_v12 = vld [vmem:[%s6785_s10 + $0xb40] sm:$0xff] }
 0x206   : > { %v5398_v26 = vpop.f32.mrf.mxu1  ;;  %3182 = vmatmul.mubr.bf16.gmra.mxu1 %v1114_v9  ;;  %v5287_v24 = vpop.f32.mrf.mxu0 }
 0x207   : > { %v7264_v31 = vadd.f32 %v5397_v44, %v2632_v17  ;;  %v5288_v37 = vadd.f32 %v5287_v24, %v5286_v15  ;;  %3189 = vmatprep.mubr.bf16.mxu1 %v1131_v36  ;;  %v824_v36 = vld [vmem:[%s6785_s10 + $0xbc0] sm:$0xff]  ;;  %v841_v17 = vld [vmem:[%s6785_s10 + $0xc48] sm:$0xff]  ;;  %v826_v24 = vld [vmem:[%s6785_s10 + $0xbd0] sm:$0xff] }
 0x208   : > { %v5399_v42 = vpop.f32.mrf.mxu1  ;;  %v5289_v45 = vpop.f32.mrf.mxu0  ;;  %v857_v44 = vld [vmem:[%s6785_s10 + $0xcc8] sm:$0xff] }
 0x209   : > { %v2637_v53 = vadd.f32 %v5288_v37, %v7033_v8  ;;  %v5400_v54 = vadd.f32 %v5399_v42, %v5398_v26  ;;  %v810_v26 = vld [vmem:[%s6785_s10 + $0xb50] sm:$0xff]  ;;  %v843_v37 = vld [vmem:[%s6785_s10 + $0xc58] sm:$0xff] }
 0x20a   : > { %v5401_v34 = vpop.f32.mrf.mxu1  ;;  %v5290_v58 = vpop.f32.mrf.mxu0  ;;  %v1146_v49 = vpack.c.bf16 %v826_v24, %v810_v26  ;;  %v891_v26 = vld [vmem:[%s6785_s10 + $0xdd8] sm:$0xff] }
 0x20b   : > { %v7271_v63 = vadd.f32 %v5400_v54, %v2637_v53  ;;  %v5291_v0 = vadd.f32 %v5290_v58, %v5289_v45  ;;  %v1161_v45 = vpack.c.bf16 %v857_v44, %v841_v17 }
 0x20c   : > { %v5402_v3 = vpop.f32.mrf.mxu1  ;;  %v5292_v6 = vpop.f32.mrf.mxu0  ;;  %3029 = vmatmul.mubr.bf16.gmra.mxu0 %v1128_v61 }
 0x20d   : > { %v2640_v9 = vadd.f32 %v5291_v0, %v7040_v21  ;;  %v5403_v8 = vadd.f32 %v5402_v3, %v5401_v34  ;;  %3036 = vmatprep.mubr.bf16.mxu0 %v1145_v55  ;;  %v1144_v21 = vpack.c.bf16 %v824_v36, %v808_v12  ;;  %v1163_v55 = vpack.c.bf16 %v859_v39, %v843_v37  ;;  %v840_v0 = vld [vmem:[%s6785_s10 + $0xc40] sm:$0xff] }
 0x20e   : > { %v5404_v14 = vpop.f32.mrf.mxu1  ;;  %3190 = vmatmul.mubr.bf16.gmra.mxu1 %v1130_v62  ;;  %v5293_v15 = vpop.f32.mrf.mxu0 }
 0x20f   : > { %v7278_v23 = vadd.f32 %v5403_v8, %v2640_v9  ;;  %v5294_v25 = vadd.f32 %v5293_v15, %v5292_v6  ;;  %3197 = vmatprep.mubr.bf16.mxu1 %v1147_v2  ;;  %v856_v2 = vld [vmem:[%s6785_s10 + $0xcc0] sm:$0xff]  ;;  %v873_v9 = vld [vmem:[%s6785_s10 + $0xd48] sm:$0xff]  ;;  %v858_v15 = vld [vmem:[%s6785_s10 + $0xcd0] sm:$0xff] }
 0x210   : > { %v5405_v27 = vpop.f32.mrf.mxu1  ;;  %v5295_v29 = vpop.f32.mrf.mxu0  ;;  %v889_v8 = vld [vmem:[%s6785_s10 + $0xdc8] sm:$0xff] }
 0x211   : > { %v2645_v41 = vadd.f32 %v5294_v25, %v7047_v38  ;;  %v5406_v42 = vadd.f32 %v5405_v27, %v5404_v14  ;;  %v842_v14 = vld [vmem:[%s6785_s10 + $0xc50] sm:$0xff]  ;;  %v875_v25 = vld [vmem:[%s6785_s10 + $0xd58] sm:$0xff] }
 0x212   : > { %v5407_v61 = vpop.f32.mrf.mxu1  ;;  %v5296_v48 = vpop.f32.mrf.mxu0  ;;  %v1162_v39 = vpack.c.bf16 %v858_v15, %v842_v14  ;;  %v923_v14 = vld [vmem:[%s6785_s10 + $0xed8] sm:$0xff] }
 0x213   : > { %v7285_v53 = vadd.f32 %v5406_v42, %v2645_v41  ;;  %v5297_v54 = vadd.f32 %v5296_v48, %v5295_v29  ;;  %v1177_v29 = vpack.c.bf16 %v889_v8, %v873_v9 }
 0x214   : > { %v5408_v34 = vpop.f32.mrf.mxu1  ;;  %v5298_v58 = vpop.f32.mrf.mxu0  ;;  %3037 = vmatmul.mubr.bf16.gmra.mxu0 %v1144_v21 }
 0x215   : > { %v2648_v62 = vadd.f32 %v5297_v54, %v7054_v52  ;;  %v5409_v38 = vadd.f32 %v5408_v34, %v5407_v61  ;;  %3044 = vmatprep.mubr.bf16.mxu0 %v1161_v45  ;;  %v1160_v52 = vpack.c.bf16 %v856_v2, %v840_v0  ;;  %v1179_v45 = vpack.c.bf16 %v891_v26, %v875_v25  ;;  %v872_v54 = vld [vmem:[%s6785_s10 + $0xd40] sm:$0xff] }
 0x216   : > { %v5410_v3 = vpop.f32.mrf.mxu1  ;;  %3198 = vmatmul.mubr.bf16.gmra.mxu1 %v1146_v49  ;;  %v5299_v6 = vpop.f32.mrf.mxu0 }
 0x217   : > { %v7292_v12 = vadd.f32 %v5409_v38, %v2648_v62  ;;  %v5300_v36 = vadd.f32 %v5299_v6, %v5298_v58  ;;  %3205 = vmatprep.mubr.bf16.mxu1 %v1163_v55  ;;  %v888_v55 = vld [vmem:[%s6785_s10 + $0xdc0] sm:$0xff]  ;;  %v905_v62 = vld [vmem:[%s6785_s10 + $0xe48] sm:$0xff]  ;;  %v890_v6 = vld [vmem:[%s6785_s10 + $0xdd0] sm:$0xff] }
 0x218   : > { %v5411_v17 = vpop.f32.mrf.mxu1  ;;  %v5301_v44 = vpop.f32.mrf.mxu0  ;;  %v921_v38 = vld [vmem:[%s6785_s10 + $0xec8] sm:$0xff] }
 0x219   : > { %v2653_v24 = vadd.f32 %v5300_v36, %v7061_v4  ;;  %v5412_v27 = vadd.f32 %v5411_v17, %v5410_v3  ;;  %v874_v3 = vld [vmem:[%s6785_s10 + $0xd50] sm:$0xff]  ;;  %v907_v36 = vld [vmem:[%s6785_s10 + $0xe58] sm:$0xff] }
 0x21a   : > { %v5413_v21 = vpop.f32.mrf.mxu1  ;;  %v5302_v37 = vpop.f32.mrf.mxu0  ;;  %v1178_v26 = vpack.c.bf16 %v890_v6, %v874_v3  ;;  %v955_v3 = vld [vmem:[%s6785_s10 + $0xfd8] sm:$0xff] }
 0x21b   : > { %v7299_v41 = vadd.f32 %v5412_v27, %v2653_v24  ;;  %v5303_v42 = vadd.f32 %v5302_v37, %v5301_v44  ;;  %v1193_v44 = vpack.c.bf16 %v921_v38, %v905_v62 }
 0x21c   : > { %v5414_v61 = vpop.f32.mrf.mxu1  ;;  %v5304_v48 = vpop.f32.mrf.mxu0  ;;  %3045 = vmatmul.mubr.bf16.gmra.mxu0 %v1160_v52 }
 0x21d   : > { %v2656_v49 = vadd.f32 %v5303_v42, %v7068_v18  ;;  %v5415_v4 = vadd.f32 %v5414_v61, %v5413_v21  ;;  %3052 = vmatprep.mubr.bf16.mxu0 %v1177_v29  ;;  %v1176_v18 = vpack.c.bf16 %v888_v55, %v872_v54  ;;  %v1195_v29 = vpack.c.bf16 %v923_v14, %v907_v36  ;;  %v904_v42 = vld [vmem:[%s6785_s10 + $0xe40] sm:$0xff] }
 0x21e   : > { %v5416_v34 = vpop.f32.mrf.mxu1  ;;  %3206 = vmatmul.mubr.bf16.gmra.mxu1 %v1162_v39  ;;  %v5305_v58 = vpop.f32.mrf.mxu0 }
 0x21f   : > { %v7306_v0 = vadd.f32 %v5415_v4, %v2656_v49  ;;  %v5306_v2 = vadd.f32 %v5305_v58, %v5304_v48  ;;  %3213 = vmatprep.mubr.bf16.mxu1 %v1179_v45  ;;  %v920_v45 = vld [vmem:[%s6785_s10 + $0xec0] sm:$0xff]  ;;  %v937_v49 = vld [vmem:[%s6785_s10 + $0xf48] sm:$0xff]  ;;  %v922_v58 = vld [vmem:[%s6785_s10 + $0xed0] sm:$0xff] }
 0x220   : > { %v5417_v9 = vpop.f32.mrf.mxu1  ;;  %v5307_v8 = vpop.f32.mrf.mxu0  ;;  %v953_v4 = vld [vmem:[%s6785_s10 + $0xfc8] sm:$0xff] }
 0x221   : > { %v2661_v15 = vadd.f32 %v5306_v2, %v7075_v35  ;;  %v5418_v17 = vadd.f32 %v5417_v9, %v5416_v34  ;;  %v906_v34 = vld [vmem:[%s6785_s10 + $0xe50] sm:$0xff]  ;;  %v939_v2 = vld [vmem:[%s6785_s10 + $0xf58] sm:$0xff] }
 0x222   : > { %v5419_v52 = vpop.f32.mrf.mxu1  ;;  %v5308_v25 = vpop.f32.mrf.mxu0  ;;  %v1194_v14 = vpack.c.bf16 %v922_v58, %v906_v34  ;;  %v479_v34 = vld [vmem:[%s6785_s10 + $0xf8] sm:$0xff] }
 0x223   : > { %v7313_v24 = vadd.f32 %v5418_v17, %v2661_v15  ;;  %v5309_v27 = vadd.f32 %v5308_v25, %v5307_v8  ;;  %v1209_v8 = vpack.c.bf16 %v953_v4, %v937_v49 }
 0x224   : > { %v5420_v21 = vpop.f32.mrf.mxu1  ;;  %v5310_v37 = vpop.f32.mrf.mxu0  ;;  %3053 = vmatmul.mubr.bf16.gmra.mxu0 %v1176_v18 }
 0x225   : > { %v2664_v39 = vadd.f32 %v5309_v27, %v7082_v51  ;;  %v5421_v35 = vadd.f32 %v5420_v21, %v5419_v52  ;;  %3060 = vmatprep.mubr.bf16.mxu0 %v1193_v44  ;;  %v1192_v51 = vpack.c.bf16 %v920_v45, %v904_v42  ;;  %v1211_v44 = vpack.c.bf16 %v955_v3, %v939_v2  ;;  %v936_v27 = vld [vmem:[%s6785_s10 + $0xf40] sm:$0xff] }
 0x226   : > { %v5422_v61 = vpop.f32.mrf.mxu1  ;;  %3214 = vmatmul.mubr.bf16.gmra.mxu1 %v1178_v26  ;;  %v5311_v48 = vpop.f32.mrf.mxu0 }
 0x227   : > { %v7320_v54 = vadd.f32 %v5421_v35, %v2664_v39  ;;  %v5312_v55 = vadd.f32 %v5311_v48, %v5310_v37  ;;  %3221 = vmatprep.mubr.bf16.mxu1 %v1195_v29  ;;  %v952_v29 = vld [vmem:[%s6785_s10 + $0xfc0] sm:$0xff]  ;;  %v461_v39 = vld [vmem:[%s6785_s10 + $0x68] sm:$0xff]  ;;  %v954_v48 = vld [vmem:[%s6785_s10 + $0xfd0] sm:$0xff] }
 0x228   : > { %v5423_v62 = vpop.f32.mrf.mxu1  ;;  %v5313_v38 = vpop.f32.mrf.mxu0  ;;  %v477_v35 = vld [vmem:[%s6785_s10 + $0xe8] sm:$0xff] }
 0x229   : > { %v2669_v6 = vadd.f32 %v5312_v55, %v7089_v5  ;;  %v5424_v9 = vadd.f32 %v5423_v62, %v5422_v61  ;;  %v938_v61 = vld [vmem:[%s6785_s10 + $0xf50] sm:$0xff]  ;;  %v463_v55 = vld [vmem:[%s6785_s10 + $0x78] sm:$0xff] }
 0x22a   : > { %v5425_v18 = vpop.f32.mrf.mxu1  ;;  %v5314_v36 = vpop.f32.mrf.mxu0  ;;  %v1210_v3 = vpack.c.bf16 %v954_v48, %v938_v61  ;;  %v511_v61 = vld [vmem:[%s6785_s10 + $0x1f8] sm:$0xff] }
 0x22b   : > { %v7327_v15 = vadd.f32 %v5424_v9, %v2669_v6  ;;  %v5315_v17 = vadd.f32 %v5314_v36, %v5313_v38  ;;  %v973_v38 = vpack.c.bf16 %v477_v35, %v461_v39 }
 0x22c   : > { %v5426_v52 = vpop.f32.mrf.mxu1  ;;  %v5316_v25 = vpop.f32.mrf.mxu0  ;;  %3061 = vmatmul.mubr.bf16.gmra.mxu0 %v1192_v51 }
 0x22d   : > { %v2672_v26 = vadd.f32 %v5315_v17, %v7096_v20  ;;  %v5427_v5 = vadd.f32 %v5426_v52, %v5425_v18  ;;  %3068 = vmatprep.mubr.bf16.mxu0 %v1209_v8  ;;  %v1208_v20 = vpack.c.bf16 %v952_v29, %v936_v27  ;;  %v975_v8 = vpack.c.bf16 %v479_v34, %v463_v55  ;;  %v460_v17 = vld [vmem:[%s6785_s10 + $0x60] sm:$0xff] }
 0x22e   : > { %v5428_v21 = vpop.f32.mrf.mxu1  ;;  %3222 = vmatmul.mubr.bf16.gmra.mxu1 %v1194_v14  ;;  %v5317_v37 = vpop.f32.mrf.mxu0 }
 0x22f   : > { %v7334_v42 = vadd.f32 %v5427_v5, %v2672_v26  ;;  %v5318_v45 = vadd.f32 %v5317_v37, %v5316_v25  ;;  %3229 = vmatprep.mubr.bf16.mxu1 %v1211_v44  ;;  %v476_v44 = vld [vmem:[%s6785_s10 + $0xe0] sm:$0xff]  ;;  %v493_v26 = vld [vmem:[%s6785_s10 + $0x168] sm:$0xff]  ;;  %v478_v37 = vld [vmem:[%s6785_s10 + $0xf0] sm:$0xff] }
 0x230   : > { %v5429_v49 = vpop.f32.mrf.mxu1  ;;  %v5319_v4 = vpop.f32.mrf.mxu0  ;;  %v509_v5 = vld [vmem:[%s6785_s10 + $0x1e8] sm:$0xff]  ;;  %v972_v35 = vpack.c.bf16 %v476_v44, %v460_v17 }
 0x231   : > { %v2677_v58 = vadd.f32 %v5318_v45, %v7103_v40  ;;  %v5430_v62 = vadd.f32 %v5429_v49, %v5428_v21  ;;  %v462_v21 = vld [vmem:[%s6785_s10 + $0x70] sm:$0xff]  ;;  %v495_v45 = vld [vmem:[%s6785_s10 + $0x178] sm:$0xff] }
 0x232   : > { %v5431_v51 = vpop.f32.mrf.mxu1  ;;  %v5320_v2 = vpop.f32.mrf.mxu0  ;;  %v974_v34 = vpack.c.bf16 %v478_v37, %v462_v21  ;;  %v543_v21 = vld [vmem:[%s6785_s10 + $0x2f8] sm:$0xff] }
 0x233   : > { %v7341_v6 = vadd.f32 %v5430_v62, %v2677_v58  ;;  %v5321_v9 = vadd.f32 %v5320_v2, %v5319_v4  ;;  %v989_v4 = vpack.c.bf16 %v509_v5, %v493_v26 }
 0x234   : > { %v5432_v18 = vpop.f32.mrf.mxu1  ;;  %v5322_v36 = vpop.f32.mrf.mxu0  ;;  %3069 = vmatmul.mubr.bf16.gmra.mxu0 %v1208_v20 }
 0x235   : > { %v2680_v40 = vadd.f32 %v5321_v9, %v7110_v56  ;;  %v5433_v14 = vadd.f32 %v5432_v18, %v5431_v51  ;;  %3270 = vmatprep.mubr.bf16.mxu0 %v973_v38  ;;  %v991_v38 = vpack.c.bf16 %v511_v61, %v495_v45  ;;  %v492_v9 = vld [vmem:[%s6785_s10 + $0x160] sm:$0xff] }
 0x236   : > { %v5434_v52 = vpop.f32.mrf.mxu1  ;;  %3230 = vmatmul.mubr.bf16.gmra.mxu1 %v1210_v3  ;;  %v5323_v25 = vpop.f32.mrf.mxu0 }
 0x237   : > { %v7348_v27 = vadd.f32 %v5433_v14, %v2680_v40  ;;  %v5324_v29 = vadd.f32 %v5323_v25, %v5322_v36  ;;  %4969 = vmatprep.mubr.msk.bf16.mxu1 %vm2223_vm0, %v975_v8  ;;  %v508_v8 = vld [vmem:[%s6785_s10 + $0x1e0] sm:$0xff]  ;;  %v525_v40 = vld [vmem:[%s6785_s10 + $0x268] sm:$0xff]  ;;  %v510_v25 = vld [vmem:[%s6785_s10 + $0x1f0] sm:$0xff] }
 0x238   : > { %v5435_v39 = vpop.f32.mrf.mxu1  ;;  %v5325_v56 = vpop.f32.mrf.mxu0  ;;  %v541_v14 = vld [vmem:[%s6785_s10 + $0x2e8] sm:$0xff]  ;;  %v988_v5 = vpack.c.bf16 %v508_v8, %v492_v9 }
 0x239   : > { %v2685_v48 = vadd.f32 %v5324_v29, %v7117_v13  ;;  %v5436_v49 = vadd.f32 %v5435_v39, %v5434_v52  ;;  %v494_v52 = vld [vmem:[%s6785_s10 + $0x170] sm:$0xff]  ;;  %v527_v29 = vld [vmem:[%s6785_s10 + $0x278] sm:$0xff] }
 0x23a   : > { %v5437_v20 = vpop.f32.mrf.mxu1  ;;  %v5326_v55 = vpop.f32.mrf.mxu0  ;;  %v990_v61 = vpack.c.bf16 %v510_v25, %v494_v52  ;;  %v575_v52 = vld [vmem:[%s6785_s10 + $0x3f8] sm:$0xff] }
 0x23b   : > { %v7356_v58 = vadd.f32 %v5436_v49, %v2685_v48  ;;  %v5327_v62 = vadd.f32 %v5326_v55, %v5325_v56  ;;  %v1005_v56 = vpack.c.bf16 %v541_v14, %v525_v40 }
 0x23c   : > { %v5438_v51 = vpop.f32.mrf.mxu1  ;;  %v5328_v2 = vpop.f32.mrf.mxu0  ;;  %3271 = vmatmul.mubr.bf16.vlgmr.msra.gmra.mxu0 %v972_v35 }
 0x23d   : > { %v2688_v3 = vadd.f32 %v5327_v62, %v7124_v33  ;;  %v5439_v13 = vadd.f32 %v5438_v51, %v5437_v20  ;;  %3278 = vmatprep.mubr.bf16.mxu0 %v989_v4  ;;  %v1007_v4 = vpack.c.bf16 %v543_v21, %v527_v29  ;;  %v524_v62 = vld [vmem:[%s6785_s10 + $0x260] sm:$0xff] }
 0x23e   : > { %v5440_v18 = vpop.f32.mrf.mxu1  ;;  %3432 = vmatmul.mubr.bf16.vlgmr.msra.gmra.mxu1 %v974_v34  ;;  %v5329_v36 = vpop.f32.mrf.mxu0 }
 0x23f   : > { %v7363_v17 = vadd.f32 %v5439_v13, %v2688_v3  ;;  %v5330_v44 = vadd.f32 %v5329_v36, %v5328_v2  ;;  %4970 = vmatprep.mubr.msk.bf16.mxu1 %vm2223_vm0, %v991_v38  ;;  %v540_v38 = vld [vmem:[%s6785_s10 + $0x2e0] sm:$0xff]  ;;  %v557_v3 = vld [vmem:[%s6785_s10 + $0x368] sm:$0xff]  ;;  %v542_v36 = vld [vmem:[%s6785_s10 + $0x2f0] sm:$0xff] }
 0x240   : > { %v5441_v26 = vpop.f32.mrf.mxu1  ;;  %v5331_v33 = vpop.f32.mrf.mxu0  ;;  %v573_v13 = vld [vmem:[%s6785_s10 + $0x3e8] sm:$0xff]  ;;  %v1004_v14 = vpack.c.bf16 %v540_v38, %v524_v62 }
 0x241   : > { %v2693_v37 = vadd.f32 %v5330_v44, %v7132_v59  ;;  %v5442_v39 = vadd.f32 %v5441_v26, %v5440_v18  ;;  %v526_v18 = vld [vmem:[%s6785_s10 + $0x270] sm:$0xff]  ;;  %v559_v44 = vld [vmem:[%s6785_s10 + $0x378] sm:$0xff] }
 0x242   : > { %v5443_v35 = vpop.f32.mrf.mxu1  ;;  %v5332_v45 = vpop.f32.mrf.mxu0  ;;  %v1006_v21 = vpack.c.bf16 %v542_v36, %v526_v18  ;;  %v591_v18 = vld [vmem:[%s6785_s10 + $0x478] sm:$0xff] }
 0x243   : > { %v7371_v48 = vadd.f32 %v5442_v39, %v2693_v37  ;;  %v5333_v49 = vadd.f32 %v5332_v45, %v5331_v33  ;;  %v1021_v33 = vpack.c.bf16 %v573_v13, %v557_v3  ;;  %v607_v36 = vld [vmem:[%s6785_s10 + $0x4f8] sm:$0xff] }
 0x244   : > { %v5444_v20 = vpop.f32.mrf.mxu1  ;;  %v5334_v55 = vpop.f32.mrf.mxu0  ;;  %3279 = vmatmul.mubr.bf16.gmra.mxu0 %v988_v5 }
 0x245   : > { %v2696_v34 = vadd.f32 %v5333_v49, %v7140_v16  ;;  %v5445_v59 = vadd.f32 %v5444_v20, %v5443_v35  ;;  %3286 = vmatprep.mubr.bf16.mxu0 %v1005_v56  ;;  %v1023_v56 = vpack.c.bf16 %v575_v52, %v559_v44  ;;  %v556_v49 = vld [vmem:[%s6785_s10 + $0x360] sm:$0xff] }
 0x246   : > { %v5446_v51 = vpop.f32.mrf.mxu1  ;;  %3440 = vmatmul.mubr.bf16.gmra.mxu1 %v990_v61  ;;  %v5335_v2 = vpop.f32.mrf.mxu0 }
 0x247   : > { %v7378_v9 = vadd.f32 %v5445_v59, %v2696_v34  ;;  %v5336_v8 = vadd.f32 %v5335_v2, %v5334_v55  ;;  %4971 = vmatprep.mubr.msk.bf16.mxu1 %vm2223_vm0, %v1007_v4  ;;  %v572_v4 = vld [vmem:[%s6785_s10 + $0x3e0] sm:$0xff]  ;;  %v589_v34 = vld [vmem:[%s6785_s10 + $0x468] sm:$0xff]  ;;  %v574_v2 = vld [vmem:[%s6785_s10 + $0x3f0] sm:$0xff] }
 0x248   : > { %v5447_v40 = vpop.f32.mrf.mxu1  ;;  %v5337_v16 = vpop.f32.mrf.mxu0  ;;  %v605_v59 = vld [vmem:[%s6785_s10 + $0x4e8] sm:$0xff] }
 0x249   : > { %v2701_v25 = vadd.f32 %v5336_v8, %v7148_v43  ;;  %v5448_v26 = vadd.f32 %v5447_v40, %v5446_v51  ;;  %v558_v51 = vld [vmem:[%s6785_s10 + $0x370] sm:$0xff]  ;;  %v1020_v8 = vpack.c.bf16 %v572_v4, %v556_v49  ;;  %v637_v49 = vld [vmem:[%s6785_s10 + $0x5e8] sm:$0xff] }
 0x24a   : > { %v5449_v5 = vpop.f32.mrf.mxu1  ;;  %v5338_v29 = vpop.f32.mrf.mxu0 }
 0x24b   : > { %v7386_v37 = vadd.f32 %v5448_v26, %v2701_v25  ;;  %v5339_v39 = vadd.f32 %v5338_v29, %v5337_v16  ;;  %v1022_v25 = vpack.c.bf16 %v574_v2, %v558_v51  ;;  %v623_v51 = vld [vmem:[%s6785_s10 + $0x578] sm:$0xff] }
 0x24c   : > { %v5450_v35 = vpop.f32.mrf.mxu1  ;;  %v5340_v45 = vpop.f32.mrf.mxu0  ;;  %3287 = vmatmul.mubr.bf16.gmra.mxu0 %v1004_v14  ;;  %v1037_v14 = vpack.c.bf16 %v605_v59, %v589_v34  ;;  %v606_v34 = vld [vmem:[%s6785_s10 + $0x4f0] sm:$0xff]  ;;  %v639_v2 = vld [vmem:[%s6785_s10 + $0x5f8] sm:$0xff] }
 0x24d   : > { %v2704_v61 = vadd.f32 %v5339_v39, %v7156_v1  ;;  %v5451_v43 = vadd.f32 %v5450_v35, %v5449_v5  ;;  %3294 = vmatprep.mubr.bf16.mxu0 %v1021_v33  ;;  %v6244_v1 = vld [vmem:[%s8088_s3 + $0x38] sm:$0xff]   ;;  %v1039_v5 = vpack.c.bf16 %v607_v36, %v591_v18  ;;  %v604_v35 = vld [vmem:[%s6785_s10 + $0x4e0] sm:$0xff] }
 0x24e   : > { %v5452_v20 = vpop.f32.mrf.mxu1  ;;  %3448 = vmatmul.mubr.bf16.gmra.mxu1 %v1006_v21  ;;  %v5341_v55 = vpop.f32.mrf.mxu0  ;;  %5868 = vmatprep.subr.bf16.mxu0 %v6244_v1 }
 0x24f   : > { %v7393_v62 = vadd.f32 %v5451_v43, %v2704_v61  ;;  %v5342_v38 = vadd.f32 %v5341_v55, %v5340_v45  ;;  %4972 = vmatprep.mubr.msk.bf16.mxu1 %vm2223_vm0, %v1023_v56  ;;  %5869 = vmatpush3.bf16.msra.mxu0 %v6244_v1  ;;  %v588_v56 = vld [vmem:[%s6785_s10 + $0x460] sm:$0xff]  ;;  %v621_v43 = vld [vmem:[%s6785_s10 + $0x568] sm:$0xff]  ;;  %v590_v55 = vld [vmem:[%s6785_s10 + $0x470] sm:$0xff] }
 0x250   : > { %v5453_v3 = vpop.f32.mrf.mxu1  ;;  %v5343_v13 = vpop.f32.mrf.mxu0  ;;  %v1038_v36 = vpack.c.bf16 %v606_v34, %v590_v55  ;;  %v655_v55 = vld [vmem:[%s6785_s10 + $0x678] sm:$0xff] }
 0x251   : > { %v2709_v40 = vadd.f32 %v5342_v38, %v7164_v28  ;;  %v5454_v16 = vadd.f32 %v5453_v3, %v5452_v20  ;;  %v1036_v38 = vpack.c.bf16 %v604_v35, %v588_v56  ;;  %v671_v34 = vld [vmem:[%s6785_s10 + $0x6f8] sm:$0xff] }
 0x252   : > { %v5455_v44 = vpop.f32.mrf.mxu1  ;;  %v5344_v52 = vpop.f32.mrf.mxu0 }
 0x253   : > { %v7404_v26 = vadd.f32 %v5454_v16, %v2709_v40  ;;  %v5345_v33 = vadd.f32 %v5344_v52, %v5343_v13  ;;  %v1053_v13 = vpack.c.bf16 %v637_v49, %v621_v43 }
 0x254   : > { %v5456_v29 = vpop.f32.mrf.mxu1  ;;  %v5346_v21 = vpop.f32.mrf.mxu0  ;;  %3295 = vmatmul.mubr.bf16.gmra.mxu0 %v1020_v8 }
 0x255   : > { %v2712_v28 = vadd.f32 %v5345_v33, %v7172_v50  ;;  %v5457_v39 = vadd.f32 %v5456_v29, %v5455_v44  ;;  %3302 = vmatprep.mubr.bf16.mxu0 %v1037_v14  ;;  %v1055_v14 = vpack.c.bf16 %v639_v2, %v623_v51  ;;  %v620_v33 = vld [vmem:[%s6785_s10 + $0x560] sm:$0xff] }
 0x256   : > { %v5458_v45 = vpop.f32.mrf.mxu1  ;;  %3456 = vmatmul.mubr.bf16.gmra.mxu1 %v1022_v25  ;;  %v5347_v61 = vpop.f32.mrf.mxu0 }
 0x257   : > { %v7411_v4 = vadd.f32 %v5457_v39, %v2712_v28  ;;  %v5348_v20 = vadd.f32 %v5347_v61, %v5346_v21  ;;  %4973 = vmatprep.mubr.msk.bf16.mxu1 %vm2223_vm0, %v1039_v5  ;;  %v636_v5 = vld [vmem:[%s6785_s10 + $0x5e0] sm:$0xff]  ;;  %v653_v28 = vld [vmem:[%s6785_s10 + $0x668] sm:$0xff]  ;;  %v638_v61 = vld [vmem:[%s6785_s10 + $0x5f0] sm:$0xff] }
 0x258   : > { %v5459_v59 = vpop.f32.mrf.mxu1  ;;  %v5349_v50 = vpop.f32.mrf.mxu0  ;;  %v669_v39 = vld [vmem:[%s6785_s10 + $0x6e8] sm:$0xff] }
 0x259   : > { %v2717_v1 = vadd.f32 %v5348_v20, %v7180_v11  ;;  %v5460_v3 = vadd.f32 %v5459_v59, %v5458_v45  ;;  %v622_v45 = vld [vmem:[%s6785_s10 + $0x570] sm:$0xff]  ;;  %v1052_v20 = vpack.c.bf16 %v636_v5, %v620_v33  ;;  %v701_v33 = vld [vmem:[%s6785_s10 + $0x7e8] sm:$0xff] }
 0x25a   : > { %v5461_v8 = vpop.f32.mrf.mxu1  ;;  %v5350_v18 = vpop.f32.mrf.mxu0 }
 0x25b   : > { %v7419_v40 = vadd.f32 %v5460_v3, %v2717_v1  ;;  %v5351_v16 = vadd.f32 %v5350_v18, %v5349_v50  ;;  %v1054_v1 = vpack.c.bf16 %v638_v61, %v622_v45  ;;  %v687_v45 = vld [vmem:[%s6785_s10 + $0x778] sm:$0xff] }
 0x25c   : > { %v5462_v44 = vpop.f32.mrf.mxu1  ;;  %v5352_v52 = vpop.f32.mrf.mxu0  ;;  %3303 = vmatmul.mubr.bf16.gmra.mxu0 %v1036_v38  ;;  %v1069_v38 = vpack.c.bf16 %v669_v39, %v653_v28  ;;  %v670_v28 = vld [vmem:[%s6785_s10 + $0x6f0] sm:$0xff]  ;;  %v703_v61 = vld [vmem:[%s6785_s10 + $0x7f8] sm:$0xff] }
 0x25d   : > { %v2720_v25 = vadd.f32 %v5351_v16, %v7188_v32  ;;  %v5463_v11 = vadd.f32 %v5462_v44, %v5461_v8  ;;  %3310 = vmatprep.mubr.bf16.mxu0 %v1053_v13  ;;  %v6245_v32 = vld [vmem:[%s8088_s3 + $0x30] sm:$0xff]   ;;  %v1071_v8 = vpack.c.bf16 %v671_v34, %v655_v55  ;;  %v668_v44 = vld [vmem:[%s6785_s10 + $0x6e0] sm:$0xff] }
 0x25e   : > { %v5464_v29 = vpop.f32.mrf.mxu1  ;;  %3464 = vmatmul.mubr.bf16.gmra.mxu1 %v1038_v36  ;;  %v5353_v21 = vpop.f32.mrf.mxu0  ;;  %5870 = vmatprep.subr.bf16.mxu0 %v6245_v32 }
 0x25f   : > { %v7426_v56 = vadd.f32 %v5463_v11, %v2720_v25  ;;  %v5354_v35 = vadd.f32 %v5353_v21, %v5352_v52  ;;  %4974 = vmatprep.mubr.msk.bf16.mxu1 %vm2223_vm0, %v1055_v14  ;;  %5871 = vmatpush3.bf16.msra.mxu0 %v6245_v32  ;;  %v652_v14 = vld [vmem:[%s6785_s10 + $0x660] sm:$0xff]  ;;  %v685_v11 = vld [vmem:[%s6785_s10 + $0x768] sm:$0xff]  ;;  %v654_v21 = vld [vmem:[%s6785_s10 + $0x670] sm:$0xff] }
 0x260   : > { %v5465_v43 = vpop.f32.mrf.mxu1  ;;  %v5355_v49 = vpop.f32.mrf.mxu0  ;;  %v1070_v34 = vpack.c.bf16 %v670_v28, %v654_v21  ;;  %v719_v21 = vld [vmem:[%s6785_s10 + $0x878] sm:$0xff] }
 0x261   : > { %v2725_v59 = vadd.f32 %v5354_v35, %v7196_v60  ;;  %v5466_v50 = vadd.f32 %v5465_v43, %v5464_v29  ;;  %v1068_v35 = vpack.c.bf16 %v668_v44, %v652_v14  ;;  %v735_v28 = vld [vmem:[%s6785_s10 + $0x8f8] sm:$0xff] }
 0x262   : > { %v5467_v51 = vpop.f32.mrf.mxu1  ;;  %v5356_v2 = vpop.f32.mrf.mxu0 }
 0x263   : > { %v7437_v3 = vadd.f32 %v5466_v50, %v2725_v59  ;;  %v5357_v13 = vadd.f32 %v5356_v2, %v5355_v49  ;;  %v1085_v49 = vpack.c.bf16 %v701_v33, %v685_v11 }
 0x264   : > { %v5468_v18 = vpop.f32.mrf.mxu1  ;;  %v5358_v36 = vpop.f32.mrf.mxu0  ;;  %3311 = vmatmul.mubr.bf16.gmra.mxu0 %v1052_v20 }
 0x265   : > { %v2728_v60 = vadd.f32 %v5357_v13, %v7204_v19  ;;  %v5469_v16 = vadd.f32 %v5468_v18, %v5467_v51  ;;  %3318 = vmatprep.mubr.bf16.mxu0 %v1069_v38  ;;  %v1087_v38 = vpack.c.bf16 %v703_v61, %v687_v45  ;;  %v684_v13 = vld [vmem:[%s6785_s10 + $0x760] sm:$0xff] }
 0x266   : > { %v5470_v52 = vpop.f32.mrf.mxu1  ;;  %3472 = vmatmul.mubr.bf16.gmra.mxu1 %v1054_v1  ;;  %v5359_v25 = vpop.f32.mrf.mxu0 }
 0x267   : > { %v7444_v5 = vadd.f32 %v5469_v16, %v2728_v60  ;;  %v5360_v29 = vadd.f32 %v5359_v25, %v5358_v36  ;;  %4975 = vmatprep.mubr.msk.bf16.mxu1 %vm2223_vm0, %v1071_v8  ;;  %v700_v8 = vld [vmem:[%s6785_s10 + $0x7e0] sm:$0xff]  ;;  %v717_v60 = vld [vmem:[%s6785_s10 + $0x868] sm:$0xff]  ;;  %v702_v25 = vld [vmem:[%s6785_s10 + $0x7f0] sm:$0xff] }
 0x268   : > { %v5471_v39 = vpop.f32.mrf.mxu1  ;;  %v5361_v19 = vpop.f32.mrf.mxu0  ;;  %v733_v16 = vld [vmem:[%s6785_s10 + $0x8e8] sm:$0xff] }
 0x269   : > { %v2733_v32 = vadd.f32 %v5360_v29, %v7214_v47  ;;  %v5472_v43 = vadd.f32 %v5471_v39, %v5470_v52  ;;  %v686_v52 = vld [vmem:[%s6785_s10 + $0x770] sm:$0xff]  ;;  %v1084_v29 = vpack.c.bf16 %v700_v8, %v684_v13  ;;  %v765_v13 = vld [vmem:[%s6785_s10 + $0x9e8] sm:$0xff] }
 0x26a   : > { %v5473_v20 = vpop.f32.mrf.mxu1  ;;  %v5362_v55 = vpop.f32.mrf.mxu0 }
 0x26b   : > { %v7452_v59 = vadd.f32 %v5472_v43, %v2733_v32  ;;  %v5363_v50 = vadd.f32 %v5362_v55, %v5361_v19  ;;  %v1086_v32 = vpack.c.bf16 %v702_v25, %v686_v52  ;;  %v751_v52 = vld [vmem:[%s6785_s10 + $0x978] sm:$0xff] }
 0x26c   : > { %v5474_v51 = vpop.f32.mrf.mxu1  ;;  %v5364_v2 = vpop.f32.mrf.mxu0  ;;  %3319 = vmatmul.mubr.bf16.gmra.mxu0 %v1068_v35  ;;  %v1101_v35 = vpack.c.bf16 %v733_v16, %v717_v60  ;;  %v734_v60 = vld [vmem:[%s6785_s10 + $0x8f0] sm:$0xff]  ;;  %v767_v25 = vld [vmem:[%s6785_s10 + $0x9f8] sm:$0xff] }
 0x26d   : > { %v2736_v1 = vadd.f32 %v5363_v50, %v7222_v7  ;;  %v5475_v47 = vadd.f32 %v5474_v51, %v5473_v20  ;;  %3326 = vmatprep.mubr.bf16.mxu0 %v1085_v49  ;;  %v6246_v7 = vld [vmem:[%s8088_s3 + $0x28] sm:$0xff]   ;;  %v1103_v20 = vpack.c.bf16 %v735_v28, %v719_v21 }
 0x26e   : > { %v5476_v18 = vpop.f32.mrf.mxu1  ;;  %3480 = vmatmul.mubr.bf16.gmra.mxu1 %v1070_v34  ;;  %v5365_v36 = vpop.f32.mrf.mxu0  ;;  %5872 = vmatprep.subr.bf16.mxu0 %v6246_v7  ;;  %v732_v51 = vld [vmem:[%s6785_s10 + $0x8e0] sm:$0xff] }
 0x26f   : > { %v7459_v14 = vadd.f32 %v5475_v47, %v2736_v1  ;;  %v5366_v44 = vadd.f32 %v5365_v36, %v5364_v2  ;;  %4976 = vmatprep.mubr.msk.bf16.mxu1 %vm2223_vm0, %v1087_v38  ;;  %5873 = vmatpush3.bf16.msra.mxu0 %v6246_v7  ;;  %v716_v38 = vld [vmem:[%s6785_s10 + $0x860] sm:$0xff]  ;;  %v749_v47 = vld [vmem:[%s6785_s10 + $0x968] sm:$0xff]  ;;  %v718_v36 = vld [vmem:[%s6785_s10 + $0x870] sm:$0xff] }
 0x270   : > { %v5477_v11 = vpop.f32.mrf.mxu1  ;;  %v5367_v33 = vpop.f32.mrf.mxu0  ;;  %v1102_v28 = vpack.c.bf16 %v734_v60, %v718_v36  ;;  %v783_v36 = vld [vmem:[%s6785_s10 + $0xa78] sm:$0xff] }
 0x271   : > { %v2741_v39 = vadd.f32 %v5366_v44, %v7229_v30  ;;  %v5478_v19 = vadd.f32 %v5477_v11, %v5476_v18  ;;  %v1100_v44 = vpack.c.bf16 %v732_v51, %v716_v38  ;;  %v799_v60 = vld [vmem:[%s6785_s10 + $0xaf8] sm:$0xff] }
 0x272   : > { %v5479_v45 = vpop.f32.mrf.mxu1  ;;  %v5368_v61 = vpop.f32.mrf.mxu0 }
 0x273   : > { %v7470_v43 = vadd.f32 %v5478_v19, %v2741_v39  ;;  %v5369_v49 = vadd.f32 %v5368_v61, %v5367_v33  ;;  %v1117_v33 = vpack.c.bf16 %v765_v13, %v749_v47 }
 0x274   : > { %v5480_v55 = vpop.f32.mrf.mxu1  ;;  %v5370_v34 = vpop.f32.mrf.mxu0  ;;  %3327 = vmatmul.mubr.bf16.gmra.mxu0 %v1084_v29 }
 0x275   : > { %v2744_v30 = vadd.f32 %v5369_v49, %v7236_v57  ;;  %v5481_v50 = vadd.f32 %v5480_v55, %v5479_v45  ;;  %3334 = vmatprep.mubr.bf16.mxu0 %v1101_v35  ;;  %v1119_v35 = vpack.c.bf16 %v767_v25, %v751_v52  ;;  %v748_v49 = vld [vmem:[%s6785_s10 + $0x960] sm:$0xff] }
 0x276   : > { %v5482_v2 = vpop.f32.mrf.mxu1  ;;  %3488 = vmatmul.mubr.bf16.gmra.mxu1 %v1086_v32  ;;  %v5371_v1 = vpop.f32.mrf.mxu0 }
 0x277   : > { %v7477_v8 = vadd.f32 %v5481_v50, %v2744_v30  ;;  %v5372_v18 = vadd.f32 %v5371_v1, %v5370_v34  ;;  %4977 = vmatprep.mubr.msk.bf16.mxu1 %vm2223_vm0, %v1103_v20  ;;  %v764_v20 = vld [vmem:[%s6785_s10 + $0x9e0] sm:$0xff]  ;;  %v781_v30 = vld [vmem:[%s6785_s10 + $0xa68] sm:$0xff]  ;;  %v766_v1 = vld [vmem:[%s6785_s10 + $0x9f0] sm:$0xff] }
 0x278   : > { %v5483_v16 = vpop.f32.mrf.mxu1  ;;  %v5373_v57 = vpop.f32.mrf.mxu0  ;;  %v797_v50 = vld [vmem:[%s6785_s10 + $0xae8] sm:$0xff] }
 0x279   : > { %v2749_v7 = vadd.f32 %v5372_v18, %v7243_v22  ;;  %v5484_v11 = vadd.f32 %v5483_v16, %v5482_v2  ;;  %v750_v2 = vld [vmem:[%s6785_s10 + $0x970] sm:$0xff]  ;;  %v1116_v18 = vpack.c.bf16 %v764_v20, %v748_v49  ;;  %v813_v49 = vld [vmem:[%s6785_s10 + $0xb68] sm:$0xff] }
 0x27a   : > { %v5485_v29 = vpop.f32.mrf.mxu1  ;;  %v5374_v21 = vpop.f32.mrf.mxu0  ;;  %v829_v20 = vld [vmem:[%s6785_s10 + $0xbe8] sm:$0xff] }
 0x27b   : > { %v7485_v39 = vadd.f32 %v5484_v11, %v2749_v7  ;;  %v5375_v19 = vadd.f32 %v5374_v21, %v5373_v57  ;;  %v1118_v7 = vpack.c.bf16 %v766_v1, %v750_v2  ;;  %v815_v1 = vld [vmem:[%s6785_s10 + $0xb78] sm:$0xff] }
 0x27c   : > { %v5486_v45 = vpop.f32.mrf.mxu1  ;;  %v5504_v61 = vpop.f32.mrf.mxu0  ;;  %3335 = vmatmul.mubr.bf16.gmra.mxu0 %v1100_v44  ;;  %v1133_v44 = vpack.c.bf16 %v797_v50, %v781_v30  ;;  %v798_v30 = vld [vmem:[%s6785_s10 + $0xaf0] sm:$0xff] }
 0x27d   : > { %v2752_v32 = vadd.f32 %v5375_v19, %v7250_v46  ;;  %v5487_v22 = vadd.f32 %v5486_v45, %v5485_v29  ;;  %3342 = vmatprep.mubr.bf16.mxu0 %v1117_v33  ;;  %v6247_v46 = vld [vmem:[%s8088_s3 + $0x20] sm:$0xff]   ;;  %v1135_v29 = vpack.c.bf16 %v799_v60, %v783_v36  ;;  %v6249_v36 = vld [vmem:[%s8088_s3 + $0x10] sm:$0xff]  }
 0x27e   : > { %v5616_v55 = vpop.f32.mrf.mxu1  ;;  %3496 = vmatmul.mubr.bf16.gmra.mxu1 %v1102_v28  ;;  %v5505_v34 = vpop.f32.mrf.mxu0  ;;  %5874 = vmatprep.subr.bf16.mxu0 %v6247_v46  ;;  %v796_v45 = vld [vmem:[%s6785_s10 + $0xae0] sm:$0xff] }
 0x27f   : > { %v7492_v38 = vadd.f32 %v5487_v22, %v2752_v32  ;;  %v5506_v51 = vadd.f32 %v5505_v34, %v5504_v61  ;;  %4978 = vmatprep.mubr.msk.bf16.mxu1 %vm2223_vm0, %v1119_v35  ;;  %5875 = vmatpush3.bf16.msra.mxu0 %v6247_v46  ;;  %v780_v35 = vld [vmem:[%s6785_s10 + $0xa60] sm:$0xff]  ;;  %v6248_v61 = vld [vmem:[%s8088_s3 + $0x18] sm:$0xff]  }
 0x280   : > { %v5617_v47 = vpop.f32.mrf.mxu1  ;;  %v5507_v13 = vpop.f32.mrf.mxu0  ;;  %5876 = vmatprep.subr.bf16.mxu0 %v6248_v61  ;;  %v1132_v2 = vpack.c.bf16 %v796_v45, %v780_v35  ;;  %v831_v46 = vld [vmem:[%s6785_s10 + $0xbf8] sm:$0xff]  ;;  %v845_v45 = vld [vmem:[%s6785_s10 + $0xc68] sm:$0xff] }
 0x281   : > { %v2951_v16 = vadd.f32 %v5506_v51, %v7257_v10  ;;  %v5618_v57 = vadd.f32 %v5617_v47, %v5616_v55 }
 0x282   : > { %v5619_v52 = vpop.f32.mrf.mxu1  ;;  %v5508_v25 = vpop.f32.mrf.mxu0 }
 0x283   : > { %v7503_v11 = vadd.f32 %v5618_v57, %v2951_v16  ;;  %v5509_v33 = vadd.f32 %v5508_v25, %v5507_v13  ;;  %5877 = vmatpush3.bf16.msra.mxu0 %v6248_v61  ;;  %v1151_v25 = vpack.c.bf16 %v831_v46, %v815_v1  ;;  %v861_v61 = vld [vmem:[%s6785_s10 + $0xce8] sm:$0xff]  ;;  %v6251_v46 = vld [vmem:[%s8088_s3] sm:$0xff]  }
 0x284   : > { %v5620_v21 = vpop.f32.mrf.mxu1  ;;  %v5510_v28 = vpop.f32.mrf.mxu0  ;;  %3343 = vmatmul.mubr.bf16.gmra.mxu0 %v1116_v18  ;;  %v1149_v18 = vpack.c.bf16 %v829_v20, %v813_v49  ;;  %5878 = vmatprep.subr.bf16.mxu0 %v6249_v36  ;;  %v830_v49 = vld [vmem:[%s6785_s10 + $0xbf0] sm:$0xff]  ;;  %v1165_v1 = vpack.c.bf16 %v861_v61, %v845_v45 }
 0x285   : > { %v2954_v10 = vadd.f32 %v5509_v33, %v7264_v31  ;;  %v5621_v19 = vadd.f32 %v5620_v21, %v5619_v52  ;;  %3350 = vmatprep.mubr.bf16.mxu0 %v1133_v44  ;;  %v782_v31 = vld [vmem:[%s6785_s10 + $0xa70] sm:$0xff]  ;;  %v812_v21 = vld [vmem:[%s6785_s10 + $0xb60] sm:$0xff] }
 0x286   : > { %v5622_v32 = vpop.f32.mrf.mxu1  ;;  %3504 = vmatmul.mubr.bf16.gmra.mxu1 %v1118_v7  ;;  %v5511_v22 = vpop.f32.mrf.mxu0  ;;  %v1134_v57 = vpack.c.bf16 %v798_v30, %v782_v31  ;;  %v847_v30 = vld [vmem:[%s6785_s10 + $0xc78] sm:$0xff]  ;;  %v862_v45 = vld [vmem:[%s6785_s10 + $0xcf0] sm:$0xff] }
 0x287   : > { %v7513_v55 = vadd.f32 %v5621_v19, %v2954_v10  ;;  %v5512_v34 = vadd.f32 %v5511_v22, %v5510_v28  ;;  %4979 = vmatprep.mubr.msk.bf16.mxu1 %vm2223_vm0, %v1135_v29  ;;  %v828_v28 = vld [vmem:[%s6785_s10 + $0xbe0] sm:$0xff]  ;;  %5879 = vmatpush3.bf16.msra.mxu0 %v6249_v36  ;;  %v814_v22 = vld [vmem:[%s6785_s10 + $0xb70] sm:$0xff] }
 0x288   : > { %v5623_v50 = vpop.f32.mrf.mxu1  ;;  %v5513_v51 = vpop.f32.mrf.mxu0  ;;  %v6250_v10 = vld [vmem:[%s8088_s3 + $0x8] sm:$0xff]   ;;  %v1148_v31 = vpack.c.bf16 %v828_v28, %v812_v21 }
 0x289   : > { %v2959_v47 = vadd.f32 %v5512_v34, %v7271_v63  ;;  %v5624_v13 = vadd.f32 %v5623_v50, %v5622_v32  ;;  %5880 = vmatprep.subr.bf16.mxu0 %v6250_v10  ;;  %v863_v50 = vld [vmem:[%s6785_s10 + $0xcf8] sm:$0xff]  ;;  %v877_v21 = vld [vmem:[%s6785_s10 + $0xd68] sm:$0xff] }
 0x28a   : > { %v5625_v60 = vpop.f32.mrf.mxu1  ;;  %v5514_v16 = vpop.f32.mrf.mxu0  ;;  %v893_v28 = vld [vmem:[%s6785_s10 + $0xde8] sm:$0xff] }
 0x28b   : > { %v7524_v44 = vadd.f32 %v5624_v13, %v2959_v47  ;;  %v5515_v52 = vadd.f32 %v5514_v16, %v5513_v51  ;;  %5881 = vmatpush3.bf16.msra.mxu0 %v6250_v10  ;;  %v1167_v16 = vpack.c.bf16 %v863_v50, %v847_v30 }
 0x28c   : > { %v5626_v7 = vpop.f32.mrf.mxu1  ;;  %v5516_v63 = vpop.f32.mrf.mxu0  ;;  %3351 = vmatmul.mubr.bf16.gmra.mxu0 %v1132_v2  ;;  %5882 = vmatprep.subr.bf16.mxu0 %v6251_v46 }
 0x28d   : > { %v2962_v33 = vadd.f32 %v5515_v52, %v7278_v23  ;;  %v5627_v29 = vadd.f32 %v5626_v7, %v5625_v60  ;;  %3358 = vmatprep.mubr.bf16.mxu0 %v1149_v18  ;;  %v1150_v18 = vpack.c.bf16 %v830_v49, %v814_v22  ;;  %v844_v7 = vld [vmem:[%s6785_s10 + $0xc60] sm:$0xff]  ;;  %v879_v22 = vld [vmem:[%s6785_s10 + $0xd78] sm:$0xff] }
 0x28e   : > { %v5628_v19 = vpop.f32.mrf.mxu1  ;;  %3512 = vmatmul.mubr.bf16.gmra.mxu1 %v1134_v57  ;;  %v5517_v35 = vpop.f32.mrf.mxu0  ;;  %v895_v49 = vld [vmem:[%s6785_s10 + $0xdf8] sm:$0xff] }
 0x28f   : > { %v7534_v32 = vadd.f32 %v5627_v29, %v2962_v33  ;;  %v5518_v23 = vadd.f32 %v5517_v35, %v5516_v63  ;;  %4980 = vmatprep.mubr.msk.bf16.mxu1 %vm2223_vm0, %v1151_v25  ;;  %v860_v63 = vld [vmem:[%s6785_s10 + $0xce0] sm:$0xff]  ;;  %5883 = vmatpush3.bf16.msra.mxu0 %v6251_v46  ;;  %v846_v35 = vld [vmem:[%s6785_s10 + $0xc70] sm:$0xff]  ;;  %v1183_v46 = vpack.c.bf16 %v895_v49, %v879_v22 }
 0x290   : > { %v5629_v20 = vpop.f32.mrf.mxu1  ;;  %v5519_v34 = vpop.f32.mrf.mxu0 }
 0x291   : > { %v2967_v51 = vadd.f32 %v5518_v23, %v7285_v53  ;;  %v5630_v2 = vadd.f32 %v5629_v20, %v5628_v19  ;;  %v1164_v23 = vpack.c.bf16 %v860_v63, %v844_v7 }
 0x292   : > { %v5631_v47 = vpop.f32.mrf.mxu1  ;;  %v5520_v13 = vpop.f32.mrf.mxu0 }
 0x293   : > { %v7545_v36 = vadd.f32 %v5630_v2, %v2967_v51  ;;  %v5521_v60 = vadd.f32 %v5520_v13, %v5519_v34  ;;  %v1166_v51 = vpack.c.bf16 %v862_v45, %v846_v35  ;;  %v927_v35 = vld [vmem:[%s6785_s10 + $0xef8] sm:$0xff] }
 0x294   : > { %v5632_v53 = vpop.f32.mrf.mxu1  ;;  %v5522_v57 = vpop.f32.mrf.mxu0  ;;  %3359 = vmatmul.mubr.bf16.gmra.mxu0 %v1148_v31  ;;  %v1181_v31 = vpack.c.bf16 %v893_v28, %v877_v21 }
 0x295   : > { %v2970_v52 = vadd.f32 %v5521_v60, %v7292_v12  ;;  %v5633_v25 = vadd.f32 %v5632_v53, %v5631_v47  ;;  %3366 = vmatprep.mubr.bf16.mxu0 %v1165_v1  ;;  %v876_v60 = vld [vmem:[%s6785_s10 + $0xd60] sm:$0xff] }
 0x296   : > { %v5634_v33 = vpop.f32.mrf.mxu1  ;;  %3520 = vmatmul.mubr.bf16.gmra.mxu1 %v1150_v18  ;;  %v5523_v29 = vpop.f32.mrf.mxu0 }
 0x297   : > { %v7552_v10 = vadd.f32 %v5633_v25, %v2970_v52  ;;  %v5524_v19 = vadd.f32 %v5523_v29, %v5522_v57  ;;  %4981 = vmatprep.mubr.msk.bf16.mxu1 %vm2223_vm0, %v1167_v16  ;;  %v892_v16 = vld [vmem:[%s6785_s10 + $0xde0] sm:$0xff]  ;;  %v909_v52 = vld [vmem:[%s6785_s10 + $0xe68] sm:$0xff]  ;;  %v894_v29 = vld [vmem:[%s6785_s10 + $0xdf0] sm:$0xff] }
 0x298   : > { %v5635_v12 = vpop.f32.mrf.mxu1  ;;  %v5525_v61 = vpop.f32.mrf.mxu0  ;;  %v925_v25 = vld [vmem:[%s6785_s10 + $0xee8] sm:$0xff]  ;;  %v1180_v28 = vpack.c.bf16 %v892_v16, %v876_v60 }
 0x299   : > { %v2975_v20 = vadd.f32 %v5524_v19, %v7299_v41  ;;  %v5636_v34 = vadd.f32 %v5635_v12, %v5634_v33  ;;  %v878_v33 = vld [vmem:[%s6785_s10 + $0xd70] sm:$0xff]  ;;  %v911_v19 = vld [vmem:[%s6785_s10 + $0xe78] sm:$0xff] }
 0x29a   : > { %v5637_v30 = vpop.f32.mrf.mxu1  ;;  %v5526_v50 = vpop.f32.mrf.mxu0  ;;  %v1182_v49 = vpack.c.bf16 %v894_v29, %v878_v33  ;;  %v959_v33 = vld [vmem:[%s6785_s10 + $0xff8] sm:$0xff] }
 0x29b   : > { %v7560_v2 = vadd.f32 %v5636_v34, %v2975_v20  ;;  %v5527_v1 = vadd.f32 %v5526_v50, %v5525_v61  ;;  %v1197_v61 = vpack.c.bf16 %v925_v25, %v909_v52 }
 0x29c   : > { %v5638_v47 = vpop.f32.mrf.mxu1  ;;  %v5528_v13 = vpop.f32.mrf.mxu0  ;;  %3367 = vmatmul.mubr.bf16.gmra.mxu0 %v1164_v23 }
 0x29d   : > { %v2978_v18 = vadd.f32 %v5527_v1, %v7306_v0  ;;  %v5639_v41 = vadd.f32 %v5638_v47, %v5637_v30  ;;  %3374 = vmatprep.mubr.bf16.mxu0 %v1181_v31  ;;  %v1199_v31 = vpack.c.bf16 %v927_v35, %v911_v19  ;;  %v908_v1 = vld [vmem:[%s6785_s10 + $0xe60] sm:$0xff] }
 0x29e   : > { %v5640_v53 = vpop.f32.mrf.mxu1  ;;  %3528 = vmatmul.mubr.bf16.gmra.mxu1 %v1166_v51  ;;  %v5529_v57 = vpop.f32.mrf.mxu0 }
 0x29f   : > { %v7567_v7 = vadd.f32 %v5639_v41, %v2978_v18  ;;  %v5530_v63 = vadd.f32 %v5529_v57, %v5528_v13  ;;  %4982 = vmatprep.mubr.msk.bf16.mxu1 %vm2223_vm0, %v1183_v46  ;;  %v924_v46 = vld [vmem:[%s6785_s10 + $0xee0] sm:$0xff]  ;;  %v941_v18 = vld [vmem:[%s6785_s10 + $0xf68] sm:$0xff]  ;;  %v926_v57 = vld [vmem:[%s6785_s10 + $0xef0] sm:$0xff] }
 0x2a0   : > { %v5641_v21 = vpop.f32.mrf.mxu1  ;;  %v5531_v0 = vpop.f32.mrf.mxu0  ;;  %v957_v41 = vld [vmem:[%s6785_s10 + $0xfe8] sm:$0xff]  ;;  %v1196_v25 = vpack.c.bf16 %v924_v46, %v908_v1  ;;  %v942_v1 = vld [vmem:[%s6785_s10 + $0xf70] sm:$0xff] }
 0x2a1   : > { %v2983_v45 = vadd.f32 %v5530_v63, %v7313_v24  ;;  %v5642_v12 = vadd.f32 %v5641_v21, %v5640_v53  ;;  %v910_v53 = vld [vmem:[%s6785_s10 + $0xe70] sm:$0xff]  ;;  %v943_v63 = vld [vmem:[%s6785_s10 + $0xf78] sm:$0xff] }
 0x2a2   : > { %v5643_v23 = vpop.f32.mrf.mxu1  ;;  %v5532_v22 = vpop.f32.mrf.mxu0  ;;  %v1198_v35 = vpack.c.bf16 %v926_v57, %v910_v53  ;;  %v958_v46 = vld [vmem:[%s6785_s10 + $0xff0] sm:$0xff] }
 0x2a3   : > { %v7575_v20 = vadd.f32 %v5642_v12, %v2983_v45  ;;  %v5533_v34 = vadd.f32 %v5532_v22, %v5531_v0  ;;  %v1213_v0 = vpack.c.bf16 %v957_v41, %v941_v18  ;;  %v1214_v57 = vpack.c.bf16 %v958_v46, %v942_v1 }
 0x2a4   : > { %v5644_v30 = vpop.f32.mrf.mxu1  ;;  %v5534_v50 = vpop.f32.mrf.mxu0  ;;  %3375 = vmatmul.mubr.bf16.gmra.mxu0 %v1180_v28 }
 0x2a5   : > { %v2986_v51 = vadd.f32 %v5533_v34, %v7320_v54  ;;  %v5645_v24 = vadd.f32 %v5644_v30, %v5643_v23  ;;  %3382 = vmatprep.mubr.bf16.mxu0 %v1197_v61  ;;  %v1215_v61 = vpack.c.bf16 %v959_v33, %v943_v63 }
 0x2a6   : > { %v5646_v47 = vpop.f32.mrf.mxu1  ;;  %3536 = vmatmul.mubr.bf16.gmra.mxu1 %v1182_v49  ;;  %v5535_v13 = vpop.f32.mrf.mxu0 }
 0x2a7   : > { %v7582_v60 = vadd.f32 %v5645_v24, %v2986_v51  ;;  %v5536_v16 = vadd.f32 %v5535_v13, %v5534_v50  ;;  %4983 = vmatprep.mubr.msk.bf16.mxu1 %vm2223_vm0, %v1199_v31  ;;  %v956_v31 = vld [vmem:[%s6785_s10 + $0xfe0] sm:$0xff] }
 0x2a8   : > { %v5647_v52 = vpop.f32.mrf.mxu1  ;;  %v5537_v54 = vpop.f32.mrf.mxu0 }
 0x2a9   : > { %v2991_v29 = vadd.f32 %v5536_v16, %v7327_v15  ;;  %v5648_v21 = vadd.f32 %v5647_v52, %v5646_v47  ;;  %v940_v15 = vld [vmem:[%s6785_s10 + $0xf60] sm:$0xff]  ;;  %s4842_s10 = sshll.u32 %s6781_s30, 8  ;;  %s5018_s30 = sshll.u32 (%p8116_p9), %s6635_s8, 5 }
 0x2aa   : > { %v5649_v28 = vpop.f32.mrf.mxu1  ;;  %v5538_v19 = vpop.f32.mrf.mxu0  ;;  %v1212_v18 = vpack.c.bf16 %v956_v31, %v940_v15  ;;  %s7847_s22 = scalar_lea.vmem [#allocation14], %s4842_s10   ;;  %s4416_s18 = ssub.s32 (%p8116_p9), 38, %s5018_s30 }
 0x2ab   : > { %v7590_v45 = vadd.f32 %v5648_v21, %v2991_v29  ;;  %v5539_v12 = vadd.f32 %v5538_v19, %v5537_v54  ;;  %p4417_p12 = scmp.lt.s32.totalorder (%p8116_p9), %s4416_s18, 32 }
 0x2ac   : > { %v5650_v23 = vpop.f32.mrf.mxu1  ;;  %v5540_v22 = vpop.f32.mrf.mxu0  ;;  %3383 = vmatmul.mubr.bf16.gmra.mxu0 %v1196_v25 }
 0x2ad   : > { %v2994_v49 = vadd.f32 %v5539_v12, %v7334_v42  ;;  %v5651_v34 = vadd.f32 %v5650_v23, %v5649_v28  ;;  %3390 = vmatprep.mubr.bf16.mxu0 %v1213_v0 }
 0x2ae   : > { %v5652_v30 = vpop.f32.mrf.mxu1  ;;  %3544 = vmatmul.mubr.bf16.gmra.mxu1 %v1198_v35  ;;  %v5541_v50 = vpop.f32.mrf.mxu0 }
 0x2af   : > { %v7595_v51 = vadd.f32 %v5651_v34, %v2994_v49  ;;  %v5542_v24 = vadd.f32 %v5541_v50, %v5540_v22  ;;  %4984 = vmatprep.mubr.msk.bf16.mxu1 %vm2223_vm0, %v1215_v61 }
 0x2b0   : > { %v5653_v47 = vpop.f32.mrf.mxu1  ;;  %v5543_v13 = vpop.f32.mrf.mxu0 }
 0x2b1   : > { %v2999_v41 = vadd.f32 %v5542_v24, %v7341_v6  ;;  %v5654_v42 = vadd.f32 %v5653_v47, %v5652_v30 }
 0x2b2   : > { %v5655_v16 = vpop.f32.mrf.mxu1  ;;  %v5544_v53 = vpop.f32.mrf.mxu0 }
 0x2b3   : > { %v7601_v52 = vadd.f32 %v5654_v42, %v2999_v41  ;;  %v5545_v54 = vadd.f32 %v5544_v53, %v5543_v13 }
 0x2b4   : > { %v5656_v25 = vpop.f32.mrf.mxu1  ;;  %v5546_v63 = vpop.f32.mrf.mxu0  ;;  %3391 = vmatmul.mubr.bf16.gmra.mxu0 %v1212_v18 }
 0x2b5   : > { %v3002_v33 = vadd.f32 %v5545_v54, %v7348_v27  ;;  %v5657_v29 = vadd.f32 %v5656_v25, %v5655_v16 }
 0x2b6   : > { %v5658_v21 = vpop.f32.mrf.mxu1  ;;  %3552 = vmatmul.mubr.bf16.gmra.mxu1 %v1214_v57  ;;  %v5547_v0 = vpop.f32.mrf.mxu0 }
 0x2b7   : > { %v7604_v28 = vadd.f32 %v5657_v29, %v3002_v33  ;;  %v5548_v19 = vadd.f32 %v5547_v0, %v5546_v63 }
 0x2b8   : > { %v5659_v6 = vpop.f32.mrf.mxu1  ;;  %v5549_v35 = vpop.f32.mrf.mxu0 }
 0x2b9   : > { %v3007_v12 = vadd.f32 %v5548_v19, %v7356_v58  ;;  %v5660_v61 = vadd.f32 %v5659_v6, %v5658_v21 }
 0x2ba   : > { %v5661_v23 = vpop.f32.mrf.mxu1  ;;  %v5550_v22 = vpop.f32.mrf.mxu0 }
 0x2bb   : > { %v7607_v49 = vadd.f32 %v5660_v61, %v3007_v12  ;;  %v5551_v34 = vadd.f32 %v5550_v22, %v5549_v35 }
 0x2bc   : > { %v5662_v15 = vpop.f32.mrf.mxu1  ;;  %v5552_v31 = vpop.f32.mrf.mxu0 }
 0x2bd   : > { %v3010_v27 = vadd.f32 %v5551_v34, %v7363_v17  ;;  %v5663_v30 = vadd.f32 %v5662_v15, %v5661_v23 }
 0x2be   : > { %v5664_v50 = vpop.f32.mrf.mxu1  ;;  %v5553_v24 = vpop.f32.mrf.mxu0 }
 0x2bf   : > { %v7610_v1 = vadd.f32 %v5663_v30, %v3010_v27  ;;  %v5554_v46 = vadd.f32 %v5553_v24, %v5552_v31 }
 0x2c0   : > { %v5665_v47 = vpop.f32.mrf.mxu1  ;;  %v5555_v13 = vpop.f32.mrf.mxu0 }
 0x2c1   : > { %v3015_v58 = vadd.f32 %v5554_v46, %v7371_v48  ;;  %v5666_v18 = vadd.f32 %v5665_v47, %v5664_v50 }
 0x2c2   : > { %v5667_v41 = vpop.f32.mrf.mxu1  ;;  %v5556_v42 = vpop.f32.mrf.mxu0 }
 0x2c3   : > { %v7613_v16 = vadd.f32 %v5666_v18, %v3015_v58  ;;  %v5557_v53 = vadd.f32 %v5556_v42, %v5555_v13 }
 0x2c4   : > { %v5668_v57 = vpop.f32.mrf.mxu1  ;;  %v5558_v54 = vpop.f32.mrf.mxu0 }
 0x2c5   : > { %v3018_v17 = vadd.f32 %v5557_v53, %v7378_v9  ;;  %v5669_v25 = vadd.f32 %v5668_v57, %v5667_v41 }
 0x2c6   : > { %v5670_v63 = vpop.f32.mrf.mxu1  ;;  %v5559_v33 = vpop.f32.mrf.mxu0 }
 0x2c7   : > { %v7616_v29 = vadd.f32 %v5669_v25, %v3018_v17  ;;  %v5560_v21 = vadd.f32 %v5559_v33, %v5558_v54 }
 0x2c8   : > { %v5671_v0 = vpop.f32.mrf.mxu1  ;;  %v5561_v19 = vpop.f32.mrf.mxu0 }
 0x2c9   : > { %v3023_v48 = vadd.f32 %v5560_v21, %v7386_v37  ;;  %v5672_v6 = vadd.f32 %v5671_v0, %v5670_v63 }
 0x2ca   : > { %v5673_v35 = vpop.f32.mrf.mxu1  ;;  %v5562_v12 = vpop.f32.mrf.mxu0 }
 0x2cb   : > { %v7619_v61 = vadd.f32 %v5672_v6, %v3023_v48  ;;  %v5563_v23 = vadd.f32 %v5562_v12, %v5561_v19 }
 0x2cc   : > { %v5674_v22 = vpop.f32.mrf.mxu1  ;;  %v5564_v34 = vpop.f32.mrf.mxu0 }
 0x2cd   : > { %v3026_v9 = vadd.f32 %v5563_v23, %v7393_v62  ;;  %v5675_v15 = vadd.f32 %v5674_v22, %v5673_v35 }
 0x2ce   : > { %v5676_v31 = vpop.f32.mrf.mxu1  ;;  %v5565_v27 = vpop.f32.mrf.mxu0 }
 0x2cf   : > { %v7622_v30 = vadd.f32 %v5675_v15, %v3026_v9  ;;  %v5566_v50 = vadd.f32 %v5565_v27, %v5564_v34 }
 0x2d0   : > { %v5677_v24 = vpop.f32.mrf.mxu1  ;;  %v5567_v46 = vpop.f32.mrf.mxu0 }
 0x2d1   : > { %v3031_v37 = vadd.f32 %v5566_v50, %v7404_v26  ;;  %v5678_v47 = vadd.f32 %v5677_v24, %v5676_v31 }
 0x2d2   : > { %v5679_v13 = vpop.f32.mrf.mxu1  ;;  %v5568_v58 = vpop.f32.mrf.mxu0 }
 0x2d3   : > { %v7625_v18 = vadd.f32 %v5678_v47, %v3031_v37  ;;  %v5569_v41 = vadd.f32 %v5568_v58, %v5567_v46 }
 0x2d4   : > { %v5680_v42 = vpop.f32.mrf.mxu1  ;;  %v5570_v53 = vpop.f32.mrf.mxu0 }
 0x2d5   : > { %v3034_v62 = vadd.f32 %v5569_v41, %v7411_v4  ;;  %v5681_v57 = vadd.f32 %v5680_v42, %v5679_v13 }
 0x2d6   : > { %v5682_v54 = vpop.f32.mrf.mxu1  ;;  %v5571_v17 = vpop.f32.mrf.mxu0 }
 0x2d7   : > { %v7628_v25 = vadd.f32 %v5681_v57, %v3034_v62  ;;  %v5572_v63 = vadd.f32 %v5571_v17, %v5570_v53 }
 0x2d8   : > { %v5683_v33 = vpop.f32.mrf.mxu1  ;;  %v5573_v21 = vpop.f32.mrf.mxu0 }
 0x2d9   : > { %v3039_v26 = vadd.f32 %v5572_v63, %v7419_v40  ;;  %v5684_v0 = vadd.f32 %v5683_v33, %v5682_v54 }
 0x2da   : > { %v5685_v19 = vpop.f32.mrf.mxu1  ;;  %v5574_v48 = vpop.f32.mrf.mxu0 }
 0x2db   : > { %v7631_v6 = vadd.f32 %v5684_v0, %v3039_v26  ;;  %v5575_v35 = vadd.f32 %v5574_v48, %v5573_v21 }
 0x2dc   : > { %v5686_v12 = vpop.f32.mrf.mxu1  ;;  %v5576_v23 = vpop.f32.mrf.mxu0 }
 0x2dd   : > { %v3042_v4 = vadd.f32 %v5575_v35, %v7426_v56  ;;  %v5687_v22 = vadd.f32 %v5686_v12, %v5685_v19 }
 0x2de   : > { %v5688_v34 = vpop.f32.mrf.mxu1  ;;  %v5577_v9 = vpop.f32.mrf.mxu0 }
 0x2df   : > { %v7634_v15 = vadd.f32 %v5687_v22, %v3042_v4  ;;  %v5578_v31 = vadd.f32 %v5577_v9, %v5576_v23 }
 0x2e0   : > { %v5689_v27 = vpop.f32.mrf.mxu1  ;;  %v5579_v50 = vpop.f32.mrf.mxu0 }
 0x2e1   : > { %v3047_v40 = vadd.f32 %v5578_v31, %v7437_v3  ;;  %v5690_v24 = vadd.f32 %v5689_v27, %v5688_v34 }
 0x2e2   : > { %v5691_v46 = vpop.f32.mrf.mxu1  ;;  %v5580_v37 = vpop.f32.mrf.mxu0 }
 0x2e3   : > { %v7637_v47 = vadd.f32 %v5690_v24, %v3047_v40  ;;  %v5581_v13 = vadd.f32 %v5580_v37, %v5579_v50 }
 0x2e4   : > { %v5692_v58 = vpop.f32.mrf.mxu1  ;;  %v5582_v41 = vpop.f32.mrf.mxu0 }
 0x2e5   : > { %v3050_v56 = vadd.f32 %v5581_v13, %v7444_v5  ;;  %v5693_v42 = vadd.f32 %v5692_v58, %v5691_v46 }
 0x2e6   : > { %v5694_v53 = vpop.f32.mrf.mxu1  ;;  %v5583_v62 = vpop.f32.mrf.mxu0 }
 0x2e7   : > { %v7640_v57 = vadd.f32 %v5693_v42, %v3050_v56  ;;  %v5584_v54 = vadd.f32 %v5583_v62, %v5582_v41 }
 0x2e8   : > { %v5695_v17 = vpop.f32.mrf.mxu1  ;;  %v5585_v63 = vpop.f32.mrf.mxu0 }
 0x2e9   : > { %v3055_v3 = vadd.f32 %v5584_v54, %v7452_v59  ;;  %v5696_v33 = vadd.f32 %v5695_v17, %v5694_v53 }
 0x2ea   : > { %v5697_v21 = vpop.f32.mrf.mxu1  ;;  %v5586_v26 = vpop.f32.mrf.mxu0 }
 0x2eb   : > { %v7643_v0 = vadd.f32 %v5696_v33, %v3055_v3  ;;  %v5587_v19 = vadd.f32 %v5586_v26, %v5585_v63 }
 0x2ec   : > { %v5698_v48 = vpop.f32.mrf.mxu1  ;;  %v5588_v35 = vpop.f32.mrf.mxu0 }
 0x2ed   : > { %v3058_v5 = vadd.f32 %v5587_v19, %v7459_v14  ;;  %v5699_v12 = vadd.f32 %v5698_v48, %v5697_v21 }
 0x2ee   : > { %v5700_v23 = vpop.f32.mrf.mxu1  ;;  %v5589_v4 = vpop.f32.mrf.mxu0 }
 0x2ef   : > { %v7646_v22 = vadd.f32 %v5699_v12, %v3058_v5  ;;  %v5590_v34 = vadd.f32 %v5589_v4, %v5588_v35 }
 0x2f0   : > { %v5701_v9 = vpop.f32.mrf.mxu1  ;;  %v5591_v31 = vpop.f32.mrf.mxu0 }
 0x2f1   : > { %v3063_v59 = vadd.f32 %v5590_v34, %v7470_v43  ;;  %v5702_v27 = vadd.f32 %v5701_v9, %v5700_v23 }
 0x2f2   : > { %v5703_v50 = vpop.f32.mrf.mxu1  ;;  %v5592_v40 = vpop.f32.mrf.mxu0 }
 0x2f3   : > { %v7649_v24 = vadd.f32 %v5702_v27, %v3063_v59  ;;  %v5593_v46 = vadd.f32 %v5592_v40, %v5591_v31 }
 0x2f4   : > { %v5704_v37 = vpop.f32.mrf.mxu1  ;;  %v5594_v13 = vpop.f32.mrf.mxu0 }
 0x2f5   : > { %v3066_v14 = vadd.f32 %v5593_v46, %v7477_v8  ;;  %v5705_v58 = vadd.f32 %v5704_v37, %v5703_v50  ;;  %v6252_v37 = vld [vmem:[#allocation10 + $0x18] sm:$0xff]  }
 0x2f6   : > { %v5706_v41 = vpop.f32.mrf.mxu1  ;;  %v5595_v56 = vpop.f32.mrf.mxu0  ;;  %5916 = vmatprep.subr.bf16.mxu1 %v6252_v37 }
 0x2f7   : > { %v7652_v42 = vadd.f32 %v5705_v58, %v3066_v14  ;;  %v5596_v53 = vadd.f32 %v5595_v56, %v5594_v13  ;;  %5917 = vmatpush3.bf16.msra.mxu1 %v6252_v37 }
 0x2f8   : > { %v5707_v62 = vpop.f32.mrf.mxu1  ;;  %v5597_v54 = vpop.f32.mrf.mxu0 }
 0x2f9   : > { %v3071_v43 = vadd.f32 %v5596_v53, %v7485_v39  ;;  %v5708_v17 = vadd.f32 %v5707_v62, %v5706_v41 }
 0x2fa   : > { %v5709_v63 = vpop.f32.mrf.mxu1  ;;  %v5598_v3 = vpop.f32.mrf.mxu0 }
 0x2fb   : > { %v7655_v33 = vadd.f32 %v5708_v17, %v3071_v43  ;;  %v5599_v21 = vadd.f32 %v5598_v3, %v5597_v54 }
 0x2fc   : > { %v5710_v26 = vpop.f32.mrf.mxu1  ;;  %v5728_v19 = vpop.f32.mrf.mxu0 }
 0x2fd   : > { %v3074_v8 = vadd.f32 %v5599_v21, %v7492_v38  ;;  %v5711_v48 = vadd.f32 %v5710_v26, %v5709_v63  ;;  %v6253_v38 = vld [vmem:[#allocation10 + $0x10] sm:$0xff]  }
 0x2fe   : > { %v3433_v35 = vpop.f32.mrf.mxu1  ;;  %v5729_v5 = vpop.f32.mrf.mxu0  ;;  %5918 = vmatprep.subr.bf16.mxu1 %v6253_v38 }
 0x2ff   : > { %v7658_v12 = vadd.f32 %v5711_v48, %v3074_v8  ;;  %v5730_v23 = vadd.f32 %v5729_v5, %v5728_v19  ;;  %5919 = vmatpush3.bf16.msra.mxu1 %v6253_v38 }
 0x300   : > { %v3435_v4 = vpop.f32.mrf.mxu1  ;;  %v5731_v34 = vpop.f32.mrf.mxu0 }
 0x301   : > { %v3273_v39 = vadd.f32 %v5730_v23, %v7503_v11 }
 0x302   : > { %v3436_v9 = vpop.f32.mrf.mxu1  ;;  %v5732_v31 = vpop.f32.mrf.mxu0 }
 0x303   : > { %v5733_v59 = vadd.f32 %v5732_v31, %v5731_v34  ;;  %v3434_v40 = vadd.f32 %v3433_v35, %v3273_v39 }
 0x304   : > { %v3438_v27 = vpop.f32.mrf.mxu1  ;;  %v5734_v50 = vpop.f32.mrf.mxu0 }
 0x305   : > { %v3276_v46 = vadd.f32 %v5733_v59, %v7513_v55  ;;  %v3560_v62 = vmax.f32 %v3434_v40, 0.0 }
 0x306   : > { %v3441_v13 = vpop.f32.mrf.mxu1  ;;  %v5735_v14 = vpop.f32.mrf.mxu0 }
 0x307   : > { %v3437_v58 = vadd.f32 %v3436_v9, %v3276_v46  ;;  %v5736_v41 = vadd.f32 %v5735_v14, %v5734_v50 }
 0x308   : > { %v3443_v56 = vpop.f32.mrf.mxu1  ;;  %v5737_v53 = vpop.f32.mrf.mxu0 }
 0x309   : > { %v3561_v11 = vmax.f32 %v3437_v58, 0.0  ;;  %v3281_v54 = vadd.f32 %v5736_v41, %v7524_v44 }
 0x30a   : > { %v3444_v43 = vpop.f32.mrf.mxu1  ;;  %v5738_v17 = vpop.f32.mrf.mxu0 }
 0x30b   : > { %v5739_v63 = vadd.f32 %v5738_v17, %v5737_v53  ;;  %v3592_v3 = vpack.c.bf16 %v3561_v11, %v3560_v62  ;;  %v3442_v26 = vadd.f32 %v3441_v13, %v3281_v54 }
 0x30c   : > { %v3446_v55 = vpop.f32.mrf.mxu1  ;;  %v5740_v21 = vpop.f32.mrf.mxu0 }
 0x30d   : > { %v3284_v19 = vadd.f32 %v5739_v63, %v7534_v32  ;;  %5884 = vmatprep.mubr.bf16.mxu0 %v3592_v3  ;;  %v3562_v34 = vmax.f32 %v3442_v26, 0.0 }
 0x30e   : > { %v3449_v8 = vpop.f32.mrf.mxu1  ;;  %v5741_v48 = vpop.f32.mrf.mxu0 }
 0x30f   : > { %v3445_v35 = vadd.f32 %v3444_v43, %v3284_v19  ;;  %v5742_v5 = vadd.f32 %v5741_v48, %v5740_v21 }
 0x310   : > { %v3451_v23 = vpop.f32.mrf.mxu1  ;;  %v5743_v4 = vpop.f32.mrf.mxu0 }
 0x311   : > { %v3563_v44 = vmax.f32 %v3445_v35, 0.0  ;;  %v3289_v39 = vadd.f32 %v5742_v5, %v7545_v36 }
 0x312   : > { %v3452_v9 = vpop.f32.mrf.mxu1  ;;  %v5744_v31 = vpop.f32.mrf.mxu0 }
 0x313   : > { %v3593_v59 = vpack.c.bf16 %v3563_v44, %v3562_v34  ;;  %v5745_v27 = vadd.f32 %v5744_v31, %v5743_v4  ;;  %v3450_v46 = vadd.f32 %v3449_v8, %v3289_v39 }
 0x314   : > { %v3454_v50 = vpop.f32.mrf.mxu1  ;;  %v5746_v40 = vpop.f32.mrf.mxu0 }
 0x315   : > { %v3292_v32 = vadd.f32 %v5745_v27, %v7552_v10  ;;  %5885 = vmatmul.mubr.bf16.vlgmr.msra.gmra.mxu0 %v3593_v59  ;;  %v3564_v56 = vmax.f32 %v3450_v46, 0.0 }
 0x316   : > { %v3457_v37 = vpop.f32.mrf.mxu1  ;;  %v5747_v38 = vpop.f32.mrf.mxu0 }
 0x317   : > { %v3453_v13 = vadd.f32 %v3452_v9, %v3292_v32  ;;  %v5748_v14 = vadd.f32 %v5747_v38, %v5746_v40 }
 0x318   : > { %v3459_v58 = vpop.f32.mrf.mxu1  ;;  %v5749_v41 = vpop.f32.mrf.mxu0 }
 0x319   : > { %v3565_v53 = vmax.f32 %v3453_v13, 0.0  ;;  %v3297_v36 = vadd.f32 %v5748_v14, %v7560_v2 }
 0x31a   : > { %v3460_v62 = vpop.f32.mrf.mxu1  ;;  %v5750_v11 = vpop.f32.mrf.mxu0 }
 0x31b   : > { %v5751_v54 = vadd.f32 %v5750_v11, %v5749_v41  ;;  %v3594_v43 = vpack.c.bf16 %v3565_v53, %v3564_v56  ;;  %v3458_v3 = vadd.f32 %v3457_v37, %v3297_v36 }
 0x31c   : > { %v3462_v17 = vpop.f32.mrf.mxu1  ;;  %v5752_v63 = vpop.f32.mrf.mxu0 }
 0x31d   : > { %v3300_v10 = vadd.f32 %v5751_v54, %v7567_v7  ;;  %5888 = vmatprep.mubr.bf16.mxu0 %v3594_v43  ;;  %v3566_v35 = vmax.f32 %v3458_v3, 0.0 }
 0x31e   : > { %v3465_v55 = vpop.f32.mrf.mxu1  ;;  %v5753_v21 = vpop.f32.mrf.mxu0 }
 0x31f   : > { %v3461_v26 = vadd.f32 %v3460_v62, %v3300_v10  ;;  %v5754_v19 = vadd.f32 %v5753_v21, %v5752_v63 }
 0x320   : > { %v3467_v8 = vpop.f32.mrf.mxu1  ;;  %v5755_v48 = vpop.f32.mrf.mxu0 }
 0x321   : > { %v3567_v5 = vmax.f32 %v3461_v26, 0.0  ;;  %v3305_v2 = vadd.f32 %v5754_v19, %v7575_v20 }
 0x322   : > { %v3468_v23 = vpop.f32.mrf.mxu1  ;;  %v5756_v4 = vpop.f32.mrf.mxu0 }
 0x323   : > { %v3595_v34 = vpack.c.bf16 %v3567_v5, %v3566_v35  ;;  %v5757_v44 = vadd.f32 %v5756_v4, %v5755_v48  ;;  %v3466_v31 = vadd.f32 %v3465_v55, %v3305_v2 }
 0x324   : > { %v3470_v39 = vpop.f32.mrf.mxu1  ;;  %v5758_v9 = vpop.f32.mrf.mxu0 }
 0x325   : > { %v3308_v7 = vadd.f32 %v5757_v44, %v7582_v60  ;;  %5889 = vmatmul.mubr.bf16.gmra.mxu0 %v3595_v34  ;;  %v3568_v37 = vmax.f32 %v3466_v31, 0.0 }
 0x326   : > { %v3473_v59 = vpop.f32.mrf.mxu1  ;;  %v5759_v27 = vpop.f32.mrf.mxu0 }
 0x327   : > { %v3469_v50 = vadd.f32 %v3468_v23, %v3308_v7  ;;  %v5760_v40 = vadd.f32 %v5759_v27, %v5758_v9 }
 0x328   : > { %v3475_v46 = vpop.f32.mrf.mxu1  ;;  %v5761_v32 = vpop.f32.mrf.mxu0 }
 0x329   : > { %v3569_v38 = vmax.f32 %v3469_v50, 0.0  ;;  %v3313_v20 = vadd.f32 %v5760_v40, %v7590_v45 }
 0x32a   : > { %v3476_v13 = vpop.f32.mrf.mxu1  ;;  %v5762_v14 = vpop.f32.mrf.mxu0 }
 0x32b   : > { %v5763_v58 = vadd.f32 %v5762_v14, %v5761_v32  ;;  %v3596_v41 = vpack.c.bf16 %v3569_v38, %v3568_v37  ;;  %v3474_v36 = vadd.f32 %v3473_v59, %v3313_v20 }
 0x32c   : > { %v3478_v56 = vpop.f32.mrf.mxu1  ;;  %v5764_v53 = vpop.f32.mrf.mxu0 }
 0x32d   : > { %v3316_v60 = vadd.f32 %v5763_v58, %v7595_v51  ;;  %5892 = vmatprep.mubr.bf16.mxu0 %v3596_v41  ;;  %v3570_v3 = vmax.f32 %v3474_v36, 0.0 }
 0x32e   : > { %v3481_v62 = vpop.f32.mrf.mxu1  ;;  %v5765_v11 = vpop.f32.mrf.mxu0 }
 0x32f   : > { %v3477_v54 = vadd.f32 %v3476_v13, %v3316_v60  ;;  %v5766_v43 = vadd.f32 %v5765_v11, %v5764_v53 }
 0x330   : > { %v3483_v17 = vpop.f32.mrf.mxu1  ;;  %v5767_v63 = vpop.f32.mrf.mxu0 }
 0x331   : > { %v3571_v10 = vmax.f32 %v3477_v54, 0.0  ;;  %v3321_v45 = vadd.f32 %v5766_v43, %v7601_v52 }
 0x332   : > { %v3484_v55 = vpop.f32.mrf.mxu1  ;;  %v5768_v21 = vpop.f32.mrf.mxu0 }
 0x333   : > { %v3597_v26 = vpack.c.bf16 %v3571_v10, %v3570_v3  ;;  %v5769_v19 = vadd.f32 %v5768_v21, %v5767_v63  ;;  %v3482_v35 = vadd.f32 %v3481_v62, %v3321_v45 }
 0x334   : > { %v3486_v8 = vpop.f32.mrf.mxu1  ;;  %v5770_v48 = vpop.f32.mrf.mxu0 }
 0x335   : > { %v3324_v51 = vadd.f32 %v5769_v19, %v7604_v28  ;;  %5893 = vmatmul.mubr.bf16.gmra.mxu0 %v3597_v26  ;;  %v3572_v39 = vmax.f32 %v3482_v35, 0.0 }
 0x336   : > { %v3489_v5 = vpop.f32.mrf.mxu1  ;;  %v5771_v2 = vpop.f32.mrf.mxu0 }
 0x337   : > { %v3485_v23 = vadd.f32 %v3484_v55, %v3324_v51  ;;  %v5772_v4 = vadd.f32 %v5771_v2, %v5770_v48 }
 0x338   : > { %v3491_v34 = vpop.f32.mrf.mxu1  ;;  %v5773_v44 = vpop.f32.mrf.mxu0 }
 0x339   : > { %v3573_v9 = vmax.f32 %v3485_v23, 0.0  ;;  %v3329_v52 = vadd.f32 %v5772_v4, %v7607_v49 }
 0x33a   : > { %v3492_v31 = vpop.f32.mrf.mxu1  ;;  %v5774_v7 = vpop.f32.mrf.mxu0 }
 0x33b   : > { %v5775_v59 = vadd.f32 %v5774_v7, %v5773_v44  ;;  %v3598_v27 = vpack.c.bf16 %v3573_v9, %v3572_v39  ;;  %v3490_v46 = vadd.f32 %v3489_v5, %v3329_v52 }
 0x33c   : > { %v3494_v50 = vpop.f32.mrf.mxu1  ;;  %v5776_v40 = vpop.f32.mrf.mxu0 }
 0x33d   : > { %v3332_v28 = vadd.f32 %v5775_v59, %v7610_v1  ;;  %5896 = vmatprep.mubr.bf16.mxu0 %v3598_v27  ;;  %v3574_v58 = vmax.f32 %v3490_v46, 0.0 }
 0x33e   : > { %v3497_v32 = vpop.f32.mrf.mxu1  ;;  %v5777_v37 = vpop.f32.mrf.mxu0 }
 0x33f   : > { %v3493_v38 = vadd.f32 %v3492_v31, %v3332_v28  ;;  %v5778_v20 = vadd.f32 %v5777_v37, %v5776_v40 }
 0x340   : > { %v3499_v13 = vpop.f32.mrf.mxu1  ;;  %v5779_v14 = vpop.f32.mrf.mxu0 }
 0x341   : > { %v3575_v41 = vmax.f32 %v3493_v38, 0.0  ;;  %v3337_v49 = vadd.f32 %v5778_v20, %v7613_v16 }
 0x342   : > { %v3500_v56 = vpop.f32.mrf.mxu1  ;;  %v5780_v53 = vpop.f32.mrf.mxu0 }
 0x343   : > { %v3599_v36 = vpack.c.bf16 %v3575_v41, %v3574_v58  ;;  %v5781_v60 = vadd.f32 %v5780_v53, %v5779_v14  ;;  %v3498_v54 = vadd.f32 %v3497_v32, %v3337_v49 }
 0x344   : > { %v3502_v62 = vpop.f32.mrf.mxu1  ;;  %v5782_v11 = vpop.f32.mrf.mxu0 }
 0x345   : > { %v3340_v1 = vadd.f32 %v5781_v60, %v7616_v29  ;;  %5897 = vmatmul.mubr.bf16.gmra.mxu0 %v3599_v36  ;;  %v3576_v55 = vmax.f32 %v3498_v54, 0.0  ;;  %v6254_v36 = vld [vmem:[#allocation10 + $0x8] sm:$0xff]  }
 0x346   : > { %v3505_v43 = vpop.f32.mrf.mxu1  ;;  %v5783_v17 = vpop.f32.mrf.mxu0  ;;  %5920 = vmatprep.subr.bf16.mxu1 %v6254_v36 }
 0x347   : > { %v3501_v63 = vadd.f32 %v3500_v56, %v3340_v1  ;;  %v5784_v3 = vadd.f32 %v5783_v17, %v5782_v11  ;;  %5921 = vmatpush3.bf16.msra.mxu1 %v6254_v36 }
 0x348   : > { %v3507_v10 = vpop.f32.mrf.mxu1  ;;  %v5785_v45 = vpop.f32.mrf.mxu0 }
 0x349   : > { %v3577_v21 = vmax.f32 %v3501_v63, 0.0  ;;  %v3345_v16 = vadd.f32 %v5784_v3, %v7619_v61  ;;  %v6255_v63 = vld [vmem:[#allocation10] sm:$0xff]  }
 0x34a   : > { %v3508_v26 = vpop.f32.mrf.mxu1  ;;  %v5786_v19 = vpop.f32.mrf.mxu0  ;;  %5922 = vmatprep.subr.bf16.mxu1 %v6255_v63 }
 0x34b   : > { %v5787_v8 = vadd.f32 %v5786_v19, %v5785_v45  ;;  %v3600_v48 = vpack.c.bf16 %v3577_v21, %v3576_v55  ;;  %v3506_v5 = vadd.f32 %v3505_v43, %v3345_v16  ;;  %5923 = vmatpush3.bf16.msra.mxu1 %v6255_v63 }
 0x34c   : > { %v3510_v35 = vpop.f32.mrf.mxu1  ;;  %v5788_v51 = vpop.f32.mrf.mxu0 }
 0x34d   : > { %v3348_v29 = vadd.f32 %v5787_v8, %v7622_v30  ;;  %5900 = vmatprep.mubr.bf16.mxu0 %v3600_v48  ;;  %v3578_v9 = vmax.f32 %v3506_v5, 0.0 }
 0x34e   : > { %v3513_v2 = vpop.f32.mrf.mxu1  ;;  %v5789_v23 = vpop.f32.mrf.mxu0 }
 0x34f   : > { %v3509_v4 = vadd.f32 %v3508_v26, %v3348_v29  ;;  %v5790_v34 = vadd.f32 %v5789_v23, %v5788_v51 }
 0x350   : > { %v3515_v44 = vpop.f32.mrf.mxu1  ;;  %v5791_v39 = vpop.f32.mrf.mxu0 }
 0x351   : > { %v3579_v52 = vmax.f32 %v3509_v4, 0.0  ;;  %v3353_v61 = vadd.f32 %v5790_v34, %v7625_v18 }
 0x352   : > { %v3516_v31 = vpop.f32.mrf.mxu1  ;;  %v5792_v7 = vpop.f32.mrf.mxu0 }
 0x353   : > { %v3601_v59 = vpack.c.bf16 %v3579_v52, %v3578_v9  ;;  %v5793_v27 = vadd.f32 %v5792_v7, %v5791_v39  ;;  %v3514_v46 = vadd.f32 %v3513_v2, %v3353_v61 }
 0x354   : > { %v3518_v50 = vpop.f32.mrf.mxu1  ;;  %v5794_v40 = vpop.f32.mrf.mxu0 }
 0x355   : > { %v3356_v30 = vadd.f32 %v5793_v27, %v7628_v25  ;;  %5901 = vmatmul.mubr.bf16.gmra.mxu0 %v3601_v59  ;;  %v3580_v14 = vmax.f32 %v3514_v46, 0.0 }
 0x356   : > { %v3521_v28 = vpop.f32.mrf.mxu1  ;;  %v5795_v32 = vpop.f32.mrf.mxu0 }
 0x357   : > { %v3517_v37 = vadd.f32 %v3516_v31, %v3356_v30  ;;  %v5796_v38 = vadd.f32 %v5795_v32, %v5794_v40 }
 0x358   : > { %v3523_v20 = vpop.f32.mrf.mxu1  ;;  %v5797_v13 = vpop.f32.mrf.mxu0 }
 0x359   : > { %v3581_v58 = vmax.f32 %v3517_v37, 0.0  ;;  %v3361_v18 = vadd.f32 %v5796_v38, %v7631_v6 }
 0x35a   : > { %v3524_v41 = vpop.f32.mrf.mxu1  ;;  %v5798_v49 = vpop.f32.mrf.mxu0 }
 0x35b   : > { %v5799_v56 = vadd.f32 %v5798_v49, %v5797_v13  ;;  %v3602_v53 = vpack.c.bf16 %v3581_v58, %v3580_v14  ;;  %v3522_v11 = vadd.f32 %v3521_v28, %v3361_v18 }
 0x35c   : > { %v3526_v60 = vpop.f32.mrf.mxu1  ;;  %v5800_v62 = vpop.f32.mrf.mxu0 }
 0x35d   : > { %v3364_v25 = vadd.f32 %v5799_v56, %v7634_v15  ;;  %5904 = vmatprep.mubr.bf16.mxu0 %v3602_v53  ;;  %v3582_v10 = vmax.f32 %v3522_v11, 0.0 }
 0x35e   : > { %v3529_v54 = vpop.f32.mrf.mxu1  ;;  %v5801_v1 = vpop.f32.mrf.mxu0 }
 0x35f   : > { %v3525_v43 = vadd.f32 %v3524_v41, %v3364_v25  ;;  %v5802_v17 = vadd.f32 %v5801_v1, %v5800_v62 }
 0x360   : > { %v3531_v3 = vpop.f32.mrf.mxu1  ;;  %v5803_v6 = vpop.f32.mrf.mxu0 }
 0x361   : > { %v3583_v45 = vmax.f32 %v3525_v43, 0.0  ;;  %v3369_v55 = vadd.f32 %v5802_v17, %v7637_v47 }
 0x362   : > { %v3532_v21 = vpop.f32.mrf.mxu1  ;;  %v5804_v16 = vpop.f32.mrf.mxu0 }
 0x363   : > { %v3603_v26 = vpack.c.bf16 %v3583_v45, %v3582_v10  ;;  %v5805_v15 = vadd.f32 %v5804_v16, %v5803_v6  ;;  %v3530_v48 = vadd.f32 %v3529_v54, %v3369_v55 }
 0x364   : > { %v3534_v19 = vpop.f32.mrf.mxu1  ;;  %v5806_v8 = vpop.f32.mrf.mxu0 }
 0x365   : > { %v3372_v35 = vadd.f32 %v5805_v15, %v7640_v57  ;;  %5905 = vmatmul.mubr.bf16.gmra.mxu0 %v3603_v26  ;;  %v3584_v34 = vmax.f32 %v3530_v48, 0.0  ;;  %v7692_v26 = vld [vmem:[#allocation8] ss:$0 sm:$0xff] }
 0x366   : > { %v3537_v51 = vpop.f32.mrf.mxu1  ;;  %v5807_v5 = vpop.f32.mrf.mxu0 }
 0x367   : > { %v3533_v29 = vadd.f32 %v3532_v21, %v3372_v35  ;;  %v5808_v2 = vadd.f32 %v5807_v5, %v5806_v8 }
 0x368   : > { %v3539_v23 = vpop.f32.mrf.mxu1  ;;  %v5809_v4 = vpop.f32.mrf.mxu0 }
 0x369   : > { %v3585_v47 = vmax.f32 %v3533_v29, 0.0  ;;  %v3377_v44 = vadd.f32 %v5808_v2, %v7643_v0 }
 0x36a   : > { %v3540_v39 = vpop.f32.mrf.mxu1  ;;  %v5810_v9 = vpop.f32.mrf.mxu0 }
 0x36b   : > { %v5811_v52 = vadd.f32 %v5810_v9, %v5809_v4  ;;  %v3604_v61 = vpack.c.bf16 %v3585_v47, %v3584_v34  ;;  %v3538_v59 = vadd.f32 %v3537_v51, %v3377_v44 }
 0x36c   : > { %v3542_v31 = vpop.f32.mrf.mxu1  ;;  %v5812_v7 = vpop.f32.mrf.mxu0 }
 0x36d   : > { %v3380_v57 = vadd.f32 %v5811_v52, %v7646_v22  ;;  %5908 = vmatprep.mubr.bf16.mxu0 %v3604_v61  ;;  %v3586_v32 = vmax.f32 %v3538_v59, 0.0 }
 0x36e   : > { %v3545_v27 = vpop.f32.mrf.mxu1  ;;  %v5813_v50 = vpop.f32.mrf.mxu0 }
 0x36f   : > { %v3541_v40 = vadd.f32 %v3540_v39, %v3380_v57  ;;  %v5814_v46 = vadd.f32 %v5813_v50, %v5812_v7 }
 0x370   : > { %v3547_v30 = vpop.f32.mrf.mxu1  ;;  %v5815_v28 = vpop.f32.mrf.mxu0 }
 0x371   : > { %v3587_v37 = vmax.f32 %v3541_v40, 0.0  ;;  %v3385_v0 = vadd.f32 %v5814_v46, %v7649_v24 }
 0x372   : > { %v3548_v38 = vpop.f32.mrf.mxu1  ;;  %v5816_v20 = vpop.f32.mrf.mxu0 }
 0x373   : > { %v3605_v13 = vpack.c.bf16 %v3587_v37, %v3586_v32  ;;  %v5817_v14 = vadd.f32 %v5816_v20, %v5815_v28  ;;  %v3546_v41 = vadd.f32 %v3545_v27, %v3385_v0 }
 0x374   : > { %v3550_v58 = vpop.f32.mrf.mxu1  ;;  %v5818_v18 = vpop.f32.mrf.mxu0 }
 0x375   : > { %v3388_v22 = vadd.f32 %v5817_v14, %v7652_v42  ;;  %5909 = vmatmul.mubr.bf16.gmra.mxu0 %v3605_v13  ;;  %v3588_v11 = vmax.f32 %v3546_v41, 0.0 }
 0x376   : > { %v3553_v49 = vpop.f32.mrf.mxu1  ;;  %v5819_v56 = vpop.f32.mrf.mxu0 }
 0x377   : > { %v3549_v53 = vadd.f32 %v3548_v38, %v3388_v22  ;;  %v5820_v36 = vadd.f32 %v5819_v56, %v5818_v18 }
 0x378   : > { %v3555_v60 = vpop.f32.mrf.mxu1  ;;  %v5821_v62 = vpop.f32.mrf.mxu0 }
 0x379   : > { %v3589_v25 = vmax.f32 %v3549_v53, 0.0  ;;  %v3393_v24 = vadd.f32 %v5820_v36, %v7655_v33 }
 0x37a   : > { %v3556_v54 = vpop.f32.mrf.mxu1  ;;  %v5822_v1 = vpop.f32.mrf.mxu0 }
 0x37b   : > { %v5823_v43 = vadd.f32 %v5822_v1, %v5821_v62  ;;  %v3606_v17 = vpack.c.bf16 %v3589_v25, %v3588_v11  ;;  %v3554_v3 = vadd.f32 %v3553_v49, %v3393_v24 }
 0x37c   : > { %v3558_v63 = vpop.f32.mrf.mxu1 }
 0x37d   : > { %v3396_v6 = vadd.f32 %v5823_v43, %v7658_v12  ;;  %5912 = vmatprep.mubr.bf16.mxu0 %v3606_v17  ;;  %v3590_v10 = vmax.f32 %v3554_v3, 0.0 }
 0x37f   : > { %v3557_v42 = vadd.f32 %v3556_v54, %v3396_v6 }
 0x381   : > { %v3591_v45 = vmax.f32 %v3557_v42, 0.0 }
 0x383   : > { %v3607_v55 = vpack.c.bf16 %v3591_v45, %v3590_v10 }
 0x385   : > { %5913 = vmatmul.mubr.bf16.gmra.mxu0 %v3607_v55 }
 0x3d5   : > { %v5886_v21 = vpop.f32.mrf.mxu0 }
 0x3d6   : > { %v3722_v8 = vadd.f32 %v5886_v21, %v7692_v26 }
 0x3d7   : > { %v3713_v16 = vpop.f32.mrf.mxu0 }
 0x3d8   : > { %v3714_v33 = vadd.f32 %v7692_v26, %v3713_v16  ;;  %v3842_v29 = vmax.f32 %v3722_v8, 0.0 }
 0x3d9   : > { %v5887_v15 = vpop.f32.mrf.mxu0 }
 0x3da   : > { %v3725_v19 = vadd.f32 %v5887_v15, %v7692_v26  ;;  %v3840_v51 = vmax.f32 %v3714_v33, 0.0 }
 0x3db   : > { %v3716_v48 = vpop.f32.mrf.mxu0 }
 0x3dc   : > { %v3717_v12 = vadd.f32 %v7692_v26, %v3716_v48  ;;  %v3843_v35 = vmax.f32 %v3725_v19, 0.0 }
 0x3de   : > { %v3841_v5 = vmax.f32 %v3717_v12, 0.0  ;;  %v3873_v23 = vpack.c.bf16 %v3843_v35, %v3842_v29 }
 0x3e0   : > { %v3872_v2 = vpack.c.bf16 %v3841_v5, %v3840_v51 }
 0x3e2   : > { %5924 = vmatprep.mubr.msk.bf16.mxu1 %vm3927_vm1, %v3872_v2 }
 0x3e3   : > { %5925 = vmatmul.mubr.msk.bf16.vlgmr.msra.gmra.mxu1 %vm3927_vm1, %v3873_v23 }
 0x3e5   : > { %v5890_v4 = vpop.f32.mrf.mxu0 }
 0x3e6   : > { %v3738_v9 = vadd.f32 %v5890_v4, %v7692_v26 }
 0x3e7   : > { %v3729_v34 = vpop.f32.mrf.mxu0 }
 0x3e8   : > { %v3730_v44 = vadd.f32 %v7692_v26, %v3729_v34  ;;  %v3846_v57 = vmax.f32 %v3738_v9, 0.0 }
 0x3e9   : > { %v5891_v47 = vpop.f32.mrf.mxu0 }
 0x3ea   : > { %v3741_v39 = vadd.f32 %v5891_v47, %v7692_v26  ;;  %v3844_v7 = vmax.f32 %v3730_v44, 0.0 }
 0x3eb   : > { %v3732_v52 = vpop.f32.mrf.mxu0 }
 0x3ec   : > { %v3733_v61 = vadd.f32 %v7692_v26, %v3732_v52  ;;  %v3847_v31 = vmax.f32 %v3741_v39, 0.0 }
 0x3ee   : > { %v3845_v59 = vmax.f32 %v3733_v61, 0.0  ;;  %v3875_v50 = vpack.c.bf16 %v3847_v31, %v3846_v57 }
 0x3f0   : > { %v3874_v27 = vpack.c.bf16 %v3845_v59, %v3844_v7 }
 0x3f2   : > { %5928 = vmatprep.mubr.msk.bf16.mxu1 %vm3927_vm1, %v3874_v27 }
 0x3f3   : > { %5929 = vmatmul.mubr.msk.bf16.gmra.mxu1 %vm3927_vm1, %v3875_v50 }
 0x3f5   : > { %v5894_v40 = vpop.f32.mrf.mxu0 }
 0x3f6   : > { %v3754_v37 = vadd.f32 %v5894_v40, %v7692_v26 }
 0x3f7   : > { %v3745_v46 = vpop.f32.mrf.mxu0 }
 0x3f8   : > { %v3746_v28 = vadd.f32 %v7692_v26, %v3745_v46  ;;  %v3850_v58 = vmax.f32 %v3754_v37, 0.0 }
 0x3f9   : > { %v5895_v30 = vpop.f32.mrf.mxu0 }
 0x3fa   : > { %v3757_v32 = vadd.f32 %v5895_v30, %v7692_v26  ;;  %v3848_v13 = vmax.f32 %v3746_v28, 0.0 }
 0x3fb   : > { %v3748_v0 = vpop.f32.mrf.mxu0 }
 0x3fc   : > { %v3749_v38 = vadd.f32 %v7692_v26, %v3748_v0  ;;  %v3851_v20 = vmax.f32 %v3757_v32, 0.0 }
 0x3fe   : > { %v3849_v14 = vmax.f32 %v3749_v38, 0.0  ;;  %v3877_v41 = vpack.c.bf16 %v3851_v20, %v3850_v58 }
 0x400   : > { %v3876_v18 = vpack.c.bf16 %v3849_v14, %v3848_v13 }
 0x402   : > { %5932 = vmatprep.mubr.msk.bf16.mxu1 %vm3927_vm1, %v3876_v18 }
 0x403   : > { %5933 = vmatmul.mubr.msk.bf16.gmra.mxu1 %vm3927_vm1, %v3877_v41 }
 0x405   : > { %v5898_v22 = vpop.f32.mrf.mxu0 }
 0x406   : > { %v3770_v60 = vadd.f32 %v5898_v22, %v7692_v26 }
 0x407   : > { %v3761_v49 = vpop.f32.mrf.mxu0 }
 0x408   : > { %v3762_v53 = vadd.f32 %v7692_v26, %v3761_v49  ;;  %v3854_v1 = vmax.f32 %v3770_v60, 0.0 }
 0x409   : > { %v5899_v56 = vpop.f32.mrf.mxu0 }
 0x40a   : > { %v3773_v36 = vadd.f32 %v5899_v56, %v7692_v26  ;;  %v3852_v24 = vmax.f32 %v3762_v53, 0.0 }
 0x40b   : > { %v3764_v62 = vpop.f32.mrf.mxu0 }
 0x40c   : > { %v3765_v11 = vadd.f32 %v7692_v26, %v3764_v62  ;;  %v3855_v25 = vmax.f32 %v3773_v36, 0.0 }
 0x40e   : > { %v3853_v54 = vmax.f32 %v3765_v11, 0.0  ;;  %v3879_v17 = vpack.c.bf16 %v3855_v25, %v3854_v1  ;;  %v7742_v11 = vld [vmem:[#allocation11] ss:$0 sm:$0xff]  ;;  %v7745_v1 = vld [vmem:[#allocation13] ss:$0 sm:$0xff] }
 0x410   : > { %v3878_v43 = vpack.c.bf16 %v3853_v54, %v3852_v24 }
 0x412   : > { %5936 = vmatprep.mubr.msk.bf16.mxu1 %vm3927_vm1, %v3878_v43 }
 0x413   : > { %5937 = vmatmul.mubr.msk.bf16.gmra.mxu1 %vm3927_vm1, %v3879_v17 }
 0x415   : > { %v5902_v63 = vpop.f32.mrf.mxu0 }
 0x416   : > { %v3786_v45 = vadd.f32 %v5902_v63, %v7692_v26 }
 0x417   : > { %v3777_v3 = vpop.f32.mrf.mxu0 }
 0x418   : > { %v3778_v42 = vadd.f32 %v7692_v26, %v3777_v3  ;;  %v3858_v19 = vmax.f32 %v3786_v45, 0.0 }
 0x419   : > { %v5903_v6 = vpop.f32.mrf.mxu0 }
 0x41a   : > { %v3789_v10 = vadd.f32 %v5903_v6, %v7692_v26  ;;  %v3856_v15 = vmax.f32 %v3778_v42, 0.0 }
 0x41b   : > { %v3780_v55 = vpop.f32.mrf.mxu0 }
 0x41c   : > { %v3781_v21 = vadd.f32 %v7692_v26, %v3780_v55  ;;  %v3859_v16 = vmax.f32 %v3789_v10, 0.0 }
 0x41e   : > { %v3857_v33 = vmax.f32 %v3781_v21, 0.0  ;;  %v3881_v48 = vpack.c.bf16 %v3859_v16, %v3858_v19 }
 0x420   : > { %v3880_v8 = vpack.c.bf16 %v3857_v33, %v3856_v15 }
 0x422   : > { %5940 = vmatprep.mubr.msk.bf16.mxu1 %vm3927_vm1, %v3880_v8 }
 0x423   : > { %5941 = vmatmul.mubr.msk.bf16.gmra.mxu1 %vm3927_vm1, %v3881_v48 }
 0x425   : > { %v5906_v12 = vpop.f32.mrf.mxu0 }
 0x426   : > { %v3802_v2 = vadd.f32 %v5906_v12, %v7692_v26 }
 0x427   : > { %v3793_v35 = vpop.f32.mrf.mxu0 }
 0x428   : > { %v3794_v5 = vadd.f32 %v7692_v26, %v3793_v35  ;;  %v3862_v39 = vmax.f32 %v3802_v2, 0.0 }
 0x429   : > { %v5907_v51 = vpop.f32.mrf.mxu0 }
 0x42a   : > { %v3805_v29 = vadd.f32 %v5907_v51, %v7692_v26  ;;  %v3860_v47 = vmax.f32 %v3794_v5, 0.0 }
 0x42b   : > { %v3796_v23 = vpop.f32.mrf.mxu0 }
 0x42c   : > { %v3797_v4 = vadd.f32 %v7692_v26, %v3796_v23  ;;  %v3863_v34 = vmax.f32 %v3805_v29, 0.0 }
 0x42e   : > { %v3861_v44 = vmax.f32 %v3797_v4, 0.0  ;;  %v3883_v52 = vpack.c.bf16 %v3863_v34, %v3862_v39 }
 0x430   : > { %v3882_v9 = vpack.c.bf16 %v3861_v44, %v3860_v47 }
 0x432   : > { %5944 = vmatprep.mubr.msk.bf16.mxu1 %vm3927_vm1, %v3882_v9 }
 0x433   : > { %5945 = vmatmul.mubr.msk.bf16.gmra.mxu1 %vm3927_vm1, %v3883_v52 }
 0x435   : > { %v5910_v61 = vpop.f32.mrf.mxu0 }
 0x436   : > { %v3818_v27 = vadd.f32 %v5910_v61, %v7692_v26 }
 0x437   : > { %v3809_v31 = vpop.f32.mrf.mxu0 }
 0x438   : > { %v3810_v59 = vadd.f32 %v7692_v26, %v3809_v31  ;;  %v3866_v32 = vmax.f32 %v3818_v27, 0.0 }
 0x439   : > { %v5911_v7 = vpop.f32.mrf.mxu0 }
 0x43a   : > { %v3821_v57 = vadd.f32 %v5911_v7, %v7692_v26  ;;  %v3864_v30 = vmax.f32 %v3810_v59, 0.0 }
 0x43b   : > { %v3812_v50 = vpop.f32.mrf.mxu0 }
 0x43c   : > { %v3813_v40 = vadd.f32 %v7692_v26, %v3812_v50  ;;  %v3867_v46 = vmax.f32 %v3821_v57, 0.0 }
 0x43e   : > { %v3865_v28 = vmax.f32 %v3813_v40, 0.0  ;;  %v3885_v0 = vpack.c.bf16 %v3867_v46, %v3866_v32 }
 0x440   : > { %v3884_v37 = vpack.c.bf16 %v3865_v28, %v3864_v30 }
 0x442   : > { %5948 = vmatprep.mubr.msk.bf16.mxu1 %vm3927_vm1, %v3884_v37 }
 0x443   : > { %5949 = vmatmul.mubr.msk.bf16.gmra.mxu1 %vm3927_vm1, %v3885_v0 }
 0x445   : > { %v5914_v38 = vpop.f32.mrf.mxu0 }
 0x446   : > { %v3834_v18 = vadd.f32 %v5914_v38, %v7692_v26 }
 0x447   : > { %v3825_v20 = vpop.f32.mrf.mxu0 }
 0x448   : > { %v3826_v14 = vadd.f32 %v7692_v26, %v3825_v20  ;;  %v3870_v36 = vmax.f32 %v3834_v18, 0.0 }
 0x449   : > { %v5915_v13 = vpop.f32.mrf.mxu0 }
 0x44a   : > { %v3837_v58 = vadd.f32 %v5915_v13, %v7692_v26  ;;  %v3868_v56 = vmax.f32 %v3826_v14, 0.0 }
 0x44b   : > { %v3828_v41 = vpop.f32.mrf.mxu0 }
 0x44c   : > { %v3829_v22 = vadd.f32 %v7692_v26, %v3828_v41  ;;  %v3871_v49 = vmax.f32 %v3837_v58, 0.0 }
 0x44e   : > { %v3869_v53 = vmax.f32 %v3829_v22, 0.0  ;;  %v3887_v62 = vpack.c.bf16 %v3871_v49, %v3870_v36 }
 0x450   : > { %v3886_v60 = vpack.c.bf16 %v3869_v53, %v3868_v56 }
 0x452   : > { %5952 = vmatprep.mubr.msk.bf16.mxu1 %vm3927_vm1, %v3886_v60 }
 0x453   : > { %5953 = vmatmul.mubr.msk.bf16.gmra.mxu1 %vm3927_vm1, %v3887_v62 }
 0x4a3   : > { %v5926_v25 = vpop.f32.mrf.mxu1 }
 0x4a4   : > { %v4019_v24 = vadd.f32 %v5926_v25, %v7742_v11 }
 0x4a5   : > { %v4010_v54 = vpop.f32.mrf.mxu1 }
 0x4a6   : > { %v4139_v43 = vmax.f32 %v4019_v24, 0.0  ;;  %v4011_v26 = vadd.f32 %v7742_v11, %v4010_v54 }
 0x4a7   : > { %v5927_v17 = vpop.f32.mrf.mxu1 }
 0x4a8   : > { %v4137_v63 = vmax.f32 %v4011_v26, 0.0  ;;  %v4022_v3 = vadd.f32 %v5927_v17, %v7742_v11  ;;  %v4178_v6 = vmul.f32 %v7745_v1, %v4139_v43 }
 0x4a9   : > { %v4013_v42 = vpop.f32.mrf.mxu1 }
 0x4aa   : > { %v4140_v10 = vmax.f32 %v4022_v3, 0.0  ;;  %v4014_v45 = vadd.f32 %v7742_v11, %v4013_v42  ;;  %v4214_v55 = vsel %vm3927_vm1, %v4178_v6, 0.0  ;;  %v4176_v21 = vmul.f32 %v7745_v1, %v4137_v63 }
 0x4ab   : > { %4215 = vadd.xlane.f32.xlu1 %v4214_v55 }
 0x4ac   : > { %v4138_v16 = vmax.f32 %v4014_v45, 0.0  ;;  %v4208_v15 = vsel %vm3927_vm1, %v4176_v21, 0.0  ;;  %v4179_v33 = vmul.f32 %v7745_v1, %v4140_v10 }
 0x4ad   : > { %4209 = vadd.xlane.f32.xlu0 %v4208_v15 }
 0x4ae   : > { %v4217_v19 = vsel %vm3927_vm1, %v4179_v33, 0.0  ;;  %v4177_v8 = vmul.f32 %v7745_v1, %v4138_v16 }
 0x4af   : > { %4218 = vadd.xlane.f32.xlu1 %v4217_v19 }
 0x4b0   : > { %v4211_v48 = vsel %vm3927_vm1, %v4177_v8, 0.0 }
 0x4b1   : > { %4212 = vadd.xlane.f32.xlu0 %v4211_v48 }
 0x4b3   : > { %v5930_v12 = vpop.f32.mrf.mxu1 }
 0x4b4   : > { %v4035_v35 = vadd.f32 %v5930_v12, %v7742_v11 }
 0x4b5   : > { %v4026_v51 = vpop.f32.mrf.mxu1 }
 0x4b6   : > { %v4143_v5 = vmax.f32 %v4035_v35, 0.0  ;;  %v4027_v29 = vadd.f32 %v7742_v11, %v4026_v51 }
 0x4b7   : > { %v5931_v2 = vpop.f32.mrf.mxu1 }
 0x4b8   : > { %v4141_v23 = vmax.f32 %v4027_v29, 0.0  ;;  %v4038_v4 = vadd.f32 %v5931_v2, %v7742_v11  ;;  %v4182_v34 = vmul.f32 %v7745_v1, %v4143_v5 }
 0x4b9   : > { %v4029_v47 = vpop.f32.mrf.mxu1 }
 0x4ba   : > { %v4144_v44 = vmax.f32 %v4038_v4, 0.0  ;;  %v4030_v39 = vadd.f32 %v7742_v11, %v4029_v47  ;;  %v4226_v9 = vsel %vm3927_vm1, %v4182_v34, 0.0  ;;  %v4180_v52 = vmul.f32 %v7745_v1, %v4141_v23 }
 0x4bb   : > { %4227 = vadd.xlane.f32.xlu0 %v4226_v9 }
 0x4bc   : > { %v4142_v61 = vmax.f32 %v4030_v39, 0.0  ;;  %v4183_v31 = vmul.f32 %v7745_v1, %v4144_v44  ;;  %v4220_v59 = vsel %vm3927_vm1, %v4180_v52, 0.0 }
 0x4be   : > { %v4229_v7 = vsel %vm3927_vm1, %v4183_v31, 0.0  ;;  %v4181_v57 = vmul.f32 %v7745_v1, %v4142_v61 }
 0x4bf   : > { %4230 = vadd.xlane.f32.xlu1 %v4229_v7  ;;  %4221 = vadd.xlane.f32.xlu0 %v4220_v59 }
 0x4c0   : > { %v4223_v27 = vsel %vm3927_vm1, %v4181_v57, 0.0 }
 0x4c3   : > { %v5934_v50 = vpop.f32.mrf.mxu1  ;;  %4224 = vadd.xlane.f32.xlu1 %v4223_v27 }
 0x4c4   : > { %v4051_v40 = vadd.f32 %v5934_v50, %v7742_v11 }
 0x4c5   : > { %v4042_v46 = vpop.f32.mrf.mxu1 }
 0x4c6   : > { %v4147_v30 = vmax.f32 %v4051_v40, 0.0  ;;  %v4043_v28 = vadd.f32 %v7742_v11, %v4042_v46 }
 0x4c7   : > { %v5935_v32 = vpop.f32.mrf.mxu1 }
 0x4c8   : > { %v4145_v37 = vmax.f32 %v4043_v28, 0.0  ;;  %v4054_v0 = vadd.f32 %v5935_v32, %v7742_v11  ;;  %v4186_v38 = vmul.f32 %v7745_v1, %v4147_v30 }
 0x4c9   : > { %v4045_v20 = vpop.f32.mrf.mxu1 }
 0x4ca   : > { %v4148_v13 = vmax.f32 %v4054_v0, 0.0  ;;  %v4046_v14 = vadd.f32 %v7742_v11, %v4045_v20  ;;  %v4238_v58 = vsel %vm3927_vm1, %v4186_v38, 0.0  ;;  %v4184_v18 = vmul.f32 %v7745_v1, %v4145_v37 }
 0x4cb   : > { %4239 = vadd.xlane.f32.xlu0 %v4238_v58 }
 0x4cc   : > { %v4146_v41 = vmax.f32 %v4046_v14, 0.0  ;;  %v4187_v22 = vmul.f32 %v7745_v1, %v4148_v13  ;;  %v4232_v56 = vsel %vm3927_vm1, %v4184_v18, 0.0 }
 0x4ce   : > { %v4241_v49 = vsel %vm3927_vm1, %v4187_v22, 0.0  ;;  %v4185_v53 = vmul.f32 %v7745_v1, %v4146_v41 }
 0x4cf   : > { %4242 = vadd.xlane.f32.xlu1 %v4241_v49  ;;  %4233 = vadd.xlane.f32.xlu0 %v4232_v56 }
 0x4d0   : > { %v4235_v36 = vsel %vm3927_vm1, %v4185_v53, 0.0 }
 0x4d3   : > { %v5938_v60 = vpop.f32.mrf.mxu1  ;;  %4236 = vadd.xlane.f32.xlu1 %v4235_v36 }
 0x4d4   : > { %v4067_v62 = vadd.f32 %v5938_v60, %v7742_v11 }
 0x4d5   : > { %v4058_v25 = vpop.f32.mrf.mxu1 }
 0x4d6   : > { %v4151_v24 = vmax.f32 %v4067_v62, 0.0  ;;  %v4059_v54 = vadd.f32 %v7742_v11, %v4058_v25 }
 0x4d7   : > { %v5939_v43 = vpop.f32.mrf.mxu1 }
 0x4d8   : > { %v4149_v26 = vmax.f32 %v4059_v54, 0.0  ;;  %v4070_v17 = vadd.f32 %v5939_v43, %v7742_v11  ;;  %v4190_v63 = vmul.f32 %v7745_v1, %v4151_v24 }
 0x4d9   : > { %v4061_v3 = vpop.f32.mrf.mxu1 }
 0x4da   : > { %v4152_v6 = vmax.f32 %v4070_v17, 0.0  ;;  %v4062_v42 = vadd.f32 %v7742_v11, %v4061_v3  ;;  %v4250_v10 = vsel %vm3927_vm1, %v4190_v63, 0.0  ;;  %v4188_v45 = vmul.f32 %v7745_v1, %v4149_v26 }
 0x4db   : > { %4251 = vadd.xlane.f32.xlu0 %v4250_v10 }
 0x4dc   : > { %v4150_v55 = vmax.f32 %v4062_v42, 0.0  ;;  %v4191_v21 = vmul.f32 %v7745_v1, %v4152_v6  ;;  %v4244_v15 = vsel %vm3927_vm1, %v4188_v45, 0.0 }
 0x4de   : > { %v4253_v16 = vsel %vm3927_vm1, %v4191_v21, 0.0  ;;  %v4189_v33 = vmul.f32 %v7745_v1, %v4150_v55 }
 0x4df   : > { %4254 = vadd.xlane.f32.xlu1 %v4253_v16  ;;  %4245 = vadd.xlane.f32.xlu0 %v4244_v15 }
 0x4e0   : > { %v4247_v19 = vsel %vm3927_vm1, %v4189_v33, 0.0 }
 0x4e3   : > { %v5942_v8 = vpop.f32.mrf.mxu1  ;;  %4248 = vadd.xlane.f32.xlu1 %v4247_v19 }
 0x4e4   : > { %v4083_v48 = vadd.f32 %v5942_v8, %v7742_v11 }
 0x4e5   : > { %v4074_v12 = vpop.f32.mrf.mxu1 }
 0x4e6   : > { %v4155_v35 = vmax.f32 %v4083_v48, 0.0  ;;  %v4075_v51 = vadd.f32 %v7742_v11, %v4074_v12 }
 0x4e7   : > { %v5943_v5 = vpop.f32.mrf.mxu1 }
 0x4e8   : > { %v4153_v29 = vmax.f32 %v4075_v51, 0.0  ;;  %v4086_v2 = vadd.f32 %v5943_v5, %v7742_v11  ;;  %v4194_v23 = vmul.f32 %v7745_v1, %v4155_v35 }
 0x4e9   : > { %v4077_v4 = vpop.f32.mrf.mxu1 }
 0x4ea   : > { %v4156_v34 = vmax.f32 %v4086_v2, 0.0  ;;  %v4078_v47 = vadd.f32 %v7742_v11, %v4077_v4  ;;  %v4262_v44 = vsel %vm3927_vm1, %v4194_v23, 0.0  ;;  %v4192_v39 = vmul.f32 %v7745_v1, %v4153_v29 }
 0x4eb   : > { %4263 = vadd.xlane.f32.xlu0 %v4262_v44 }
 0x4ec   : > { %v4154_v9 = vmax.f32 %v4078_v47, 0.0  ;;  %v4195_v52 = vmul.f32 %v7745_v1, %v4156_v34  ;;  %v4256_v31 = vsel %vm3927_vm1, %v4192_v39, 0.0 }
 0x4ee   : > { %v4265_v61 = vsel %vm3927_vm1, %v4195_v52, 0.0  ;;  %v4193_v7 = vmul.f32 %v7745_v1, %v4154_v9 }
 0x4ef   : > { %4266 = vadd.xlane.f32.xlu1 %v4265_v61  ;;  %4257 = vadd.xlane.f32.xlu0 %v4256_v31  ;;  %v7842_v31 = vld [vmem:[#allocation2] ss:$0 sm:$0xff] }
 0x4f0   : > { %v4259_v59 = vsel %vm3927_vm1, %v4193_v7, 0.0 }
 0x4f3   : > { %v5946_v57 = vpop.f32.mrf.mxu1  ;;  %4260 = vadd.xlane.f32.xlu1 %v4259_v59 }
 0x4f4   : > { %v4099_v27 = vadd.f32 %v5946_v57, %v7742_v11 }
 0x4f5   : > { %v4090_v50 = vpop.f32.mrf.mxu1 }
 0x4f6   : > { %v4159_v40 = vmax.f32 %v4099_v27, 0.0  ;;  %v4091_v46 = vadd.f32 %v7742_v11, %v4090_v50 }
 0x4f7   : > { %v5947_v30 = vpop.f32.mrf.mxu1 }
 0x4f8   : > { %v4157_v28 = vmax.f32 %v4091_v46, 0.0  ;;  %v4102_v32 = vadd.f32 %v5947_v30, %v7742_v11  ;;  %v4198_v37 = vmul.f32 %v7745_v1, %v4159_v40 }
 0x4f9   : > { %v4093_v0 = vpop.f32.mrf.mxu1 }
 0x4fa   : > { %v4160_v38 = vmax.f32 %v4102_v32, 0.0  ;;  %v4094_v20 = vadd.f32 %v7742_v11, %v4093_v0  ;;  %v4274_v13 = vsel %vm3927_vm1, %v4198_v37, 0.0  ;;  %v4196_v14 = vmul.f32 %v7745_v1, %v4157_v28 }
 0x4fb   : > { %4275 = vadd.xlane.f32.xlu0 %v4274_v13 }
 0x4fc   : > { %v4158_v58 = vmax.f32 %v4094_v20, 0.0  ;;  %v4199_v18 = vmul.f32 %v7745_v1, %v4160_v38  ;;  %v4268_v22 = vsel %vm3927_vm1, %v4196_v14, 0.0 }
 0x4fe   : > { %v4277_v41 = vsel %vm3927_vm1, %v4199_v18, 0.0  ;;  %v4197_v49 = vmul.f32 %v7745_v1, %v4158_v58 }
 0x4ff   : > { %4278 = vadd.xlane.f32.xlu1 %v4277_v41  ;;  %4269 = vadd.xlane.f32.xlu0 %v4268_v22 }
 0x500   : > { %v4271_v56 = vsel %vm3927_vm1, %v4197_v49, 0.0 }
 0x503   : > { %v5950_v53 = vpop.f32.mrf.mxu1  ;;  %4272 = vadd.xlane.f32.xlu1 %v4271_v56 }
 0x504   : > { %v4115_v36 = vadd.f32 %v5950_v53, %v7742_v11 }
 0x505   : > { %v4106_v60 = vpop.f32.mrf.mxu1 }
 0x506   : > { %v4163_v62 = vmax.f32 %v4115_v36, 0.0  ;;  %v4107_v25 = vadd.f32 %v7742_v11, %v4106_v60 }
 0x507   : > { %v5951_v24 = vpop.f32.mrf.mxu1 }
 0x508   : > { %v4161_v54 = vmax.f32 %v4107_v25, 0.0  ;;  %v4118_v43 = vadd.f32 %v5951_v24, %v7742_v11  ;;  %v4202_v26 = vmul.f32 %v7745_v1, %v4163_v62 }
 0x509   : > { %v4109_v17 = vpop.f32.mrf.mxu1 }
 0x50a   : > { %v4164_v63 = vmax.f32 %v4118_v43, 0.0  ;;  %v4110_v3 = vadd.f32 %v7742_v11, %v4109_v17  ;;  %v4286_v6 = vsel %vm3927_vm1, %v4202_v26, 0.0  ;;  %v4200_v42 = vmul.f32 %v7745_v1, %v4161_v54 }
 0x50b   : > { %4287 = vadd.xlane.f32.xlu0 %v4286_v6 }
 0x50c   : > { %v4162_v10 = vmax.f32 %v4110_v3, 0.0  ;;  %v4203_v45 = vmul.f32 %v7745_v1, %v4164_v63  ;;  %v4280_v21 = vsel %vm3927_vm1, %v4200_v42, 0.0 }
 0x50e   : > { %v4289_v55 = vsel %vm3927_vm1, %v4203_v45, 0.0  ;;  %v4201_v16 = vmul.f32 %v7745_v1, %v4162_v10 }
 0x50f   : > { %4290 = vadd.xlane.f32.xlu1 %v4289_v55  ;;  %4281 = vadd.xlane.f32.xlu0 %v4280_v21 }
 0x510   : > { %v4283_v15 = vsel %vm3927_vm1, %v4201_v16, 0.0 }
 0x513   : > { %v5954_v33 = vpop.f32.mrf.mxu1  ;;  %4284 = vadd.xlane.f32.xlu1 %v4283_v15 }
 0x514   : > { %v4131_v19 = vadd.f32 %v5954_v33, %v7742_v11 }
 0x515   : > { %v4122_v8 = vpop.f32.mrf.mxu1 }
 0x516   : > { %v4123_v48 = vadd.f32 %v7742_v11, %v4122_v8  ;;  %v4167_v35 = vmax.f32 %v4131_v19, 0.0 }
 0x517   : > { %v5955_v12 = vpop.f32.mrf.mxu1 }
 0x518   : > { %v4165_v51 = vmax.f32 %v4123_v48, 0.0  ;;  %v4134_v5 = vadd.f32 %v5955_v12, %v7742_v11  ;;  %v4206_v44 = vmul.f32 %v7745_v1, %v4167_v35 }
 0x519   : > { %v4125_v29 = vpop.f32.mrf.mxu1 }
 0x51a   : > { %v4126_v2 = vadd.f32 %v7742_v11, %v4125_v29  ;;  %v4204_v23 = vmul.f32 %v7745_v1, %v4165_v51  ;;  %v4168_v4 = vmax.f32 %v4134_v5, 0.0  ;;  %v4298_v52 = vsel %vm3927_vm1, %v4206_v44, 0.0 }
 0x51c   : > { %v4166_v34 = vmax.f32 %v4126_v2, 0.0  ;;  %v4292_v47 = vsel %vm3927_vm1, %v4204_v23, 0.0  ;;  %v4207_v61 = vmul.f32 %v7745_v1, %v4168_v4 }
 0x51d   : > { %4293 = vadd.xlane.f32.xlu0 %v4292_v47 }
 0x51e   : > { %v4205_v39 = vmul.f32 %v7745_v1, %v4166_v34  ;;  %v4301_v11 = vsel %vm3927_vm1, %v4207_v61, 0.0 }
 0x520   : > { %v4295_v9 = vsel %vm3927_vm1, %v4205_v39, 0.0 }
 0x521   : > { %4296 = vadd.xlane.f32.xlu1 %v4295_v9  ;;  %4299 = vadd.xlane.f32.xlu0 %v4298_v52 }
 0x525   : > { %4302 = vadd.xlane.f32.xlu1 %v4301_v11 }
 0x534   : > { %v4216_v7 = vpop.xlane.xlu1 %4215 }
 0x535   : > { %v4313_v59 = vadd.f32 %v7842_v31, %v4216_v7 }
 0x536   : > { %v4210_v57 = vpop.xlane.xlu0 %4209 }
 0x537   : > { %v4345_v27 = vmax.f32 %v4313_v59, 0.0  ;;  %v4311_v50 = vadd.f32 %v7842_v31, %v4210_v57 }
 0x538   : > { %v4219_v40 = vpop.xlane.xlu1 %4218 }
 0x539   : > { %4378 = vst.msk [vmem:[%s7847_s22 + $0x10] sm:$0xff] %vm4375_vm2, %v4345_v27  ;;  %v4343_v1 = vmax.f32 %v4311_v50, 0.0  ;;  %v4314_v46 = vadd.f32 %v7842_v31, %v4219_v40 }
 0x53a   : > { %v4213_v30 = vpop.xlane.xlu0 %4212 }
 0x53b   : > { %4376 = vst.msk [vmem:[%s7847_s22] sm:$0xff] %vm4375_vm2, %v4343_v1  ;;  %v4346_v28 = vmax.f32 %v4314_v46, 0.0  ;;  %v4312_v32 = vadd.f32 %v7842_v31, %v4213_v30 }
 0x53d   : > { %4379 = vst.msk [vmem:[%s7847_s22 + $0x18] sm:$0xff] %vm4375_vm2, %v4346_v28  ;;  %v4344_v37 = vmax.f32 %v4312_v32, 0.0 }
 0x53f   : > { %4377 = vst.msk [vmem:[%s7847_s22 + $0x8] sm:$0xff] %vm4375_vm2, %v4344_v37 }
 0x544   : > { %v4228_v0 = vpop.xlane.xlu0 %4227 }
 0x545   : > { %v4317_v38 = vadd.f32 %v7842_v31, %v4228_v0 }
 0x547   : > { %v4349_v20 = vmax.f32 %v4317_v38, 0.0 }
 0x548   : > { %v4231_v13 = vpop.xlane.xlu1 %4230  ;;  %v4222_v14 = vpop.xlane.xlu0 %4221 }
 0x549   : > { %4382 = vst.msk [vmem:[%s7847_s22 + $0x30] sm:$0xff] %vm4375_vm2, %v4349_v20  ;;  %v4318_v58 = vadd.f32 %v7842_v31, %v4231_v13  ;;  %v4315_v18 = vadd.f32 %v7842_v31, %v4222_v14 }
 0x54b   : > { %v4350_v41 = vmax.f32 %v4318_v58, 0.0  ;;  %v4347_v22 = vmax.f32 %v4315_v18, 0.0 }
 0x54c   : > { %v4225_v49 = vpop.xlane.xlu1 %4224 }
 0x54d   : > { %4383 = vst.msk [vmem:[%s7847_s22 + $0x38] sm:$0xff] %vm4375_vm2, %v4350_v41  ;;  %4380 = vst.msk [vmem:[%s7847_s22 + $0x20] sm:$0xff] %vm4375_vm2, %v4347_v22  ;;  %v4316_v56 = vadd.f32 %v7842_v31, %v4225_v49 }
 0x54f   : > { %v4348_v53 = vmax.f32 %v4316_v56, 0.0 }
 0x551   : > { %4381 = vst.msk [vmem:[%s7847_s22 + $0x28] sm:$0xff] %vm4375_vm2, %v4348_v53 }
 0x554   : > { %v4240_v36 = vpop.xlane.xlu0 %4239 }
 0x555   : > { %v4321_v60 = vadd.f32 %v7842_v31, %v4240_v36 }
 0x557   : > { %v4353_v62 = vmax.f32 %v4321_v60, 0.0 }
 0x558   : > { %v4243_v25 = vpop.xlane.xlu1 %4242  ;;  %v4234_v24 = vpop.xlane.xlu0 %4233 }
 0x559   : > { %4386 = vst.msk [vmem:[%s7847_s22 + $0x50] sm:$0xff] %vm4375_vm2, %v4353_v62  ;;  %v4322_v54 = vadd.f32 %v7842_v31, %v4243_v25  ;;  %v4319_v43 = vadd.f32 %v7842_v31, %v4234_v24 }
 0x55b   : > { %v4354_v26 = vmax.f32 %v4322_v54, 0.0  ;;  %v4351_v17 = vmax.f32 %v4319_v43, 0.0 }
 0x55c   : > { %v4237_v63 = vpop.xlane.xlu1 %4236 }
 0x55d   : > { %4387 = vst.msk [vmem:[%s7847_s22 + $0x58] sm:$0xff] %vm4375_vm2, %v4354_v26  ;;  %4384 = vst.msk [vmem:[%s7847_s22 + $0x40] sm:$0xff] %vm4375_vm2, %v4351_v17  ;;  %v4320_v3 = vadd.f32 %v7842_v31, %v4237_v63 }
 0x55f   : > { %v4352_v6 = vmax.f32 %v4320_v3, 0.0 }
 0x561   : > { %4385 = vst.msk [vmem:[%s7847_s22 + $0x48] sm:$0xff] %vm4375_vm2, %v4352_v6 }
 0x564   : > { %v4252_v42 = vpop.xlane.xlu0 %4251 }
 0x565   : > { %v4325_v10 = vadd.f32 %v7842_v31, %v4252_v42 }
 0x567   : > { %v4357_v45 = vmax.f32 %v4325_v10, 0.0 }
 0x568   : > { %v4255_v55 = vpop.xlane.xlu1 %4254  ;;  %v4246_v21 = vpop.xlane.xlu0 %4245 }
 0x569   : > { %4390 = vst.msk [vmem:[%s7847_s22 + $0x70] sm:$0xff] %vm4375_vm2, %v4357_v45  ;;  %v4326_v16 = vadd.f32 %v7842_v31, %v4255_v55  ;;  %v4323_v15 = vadd.f32 %v7842_v31, %v4246_v21 }
 0x56b   : > { %v4358_v33 = vmax.f32 %v4326_v16, 0.0  ;;  %v4355_v19 = vmax.f32 %v4323_v15, 0.0 }
 0x56c   : > { %v4249_v8 = vpop.xlane.xlu1 %4248 }
 0x56d   : > { %4391 = vst.msk [vmem:[%s7847_s22 + $0x78] sm:$0xff] %vm4375_vm2, %v4358_v33  ;;  %4388 = vst.msk [vmem:[%s7847_s22 + $0x60] sm:$0xff] %vm4375_vm2, %v4355_v19  ;;  %v4324_v48 = vadd.f32 %v7842_v31, %v4249_v8 }
 0x56f   : > { %v4356_v12 = vmax.f32 %v4324_v48, 0.0 }
 0x571   : > { %4389 = vst.msk [vmem:[%s7847_s22 + $0x68] sm:$0xff] %vm4375_vm2, %v4356_v12 }
 0x574   : > { %v4264_v35 = vpop.xlane.xlu0 %4263 }
 0x575   : > { %v4329_v51 = vadd.f32 %v7842_v31, %v4264_v35 }
 0x577   : > { %v4361_v5 = vmax.f32 %v4329_v51, 0.0 }
 0x578   : > { %v4267_v29 = vpop.xlane.xlu1 %4266  ;;  %v4258_v2 = vpop.xlane.xlu0 %4257 }
 0x579   : > { %4394 = vst.msk [vmem:[%s7847_s22 + $0x90] sm:$0xff] %vm4375_vm2, %v4361_v5  ;;  %v4330_v23 = vadd.f32 %v7842_v31, %v4267_v29  ;;  %v4327_v4 = vadd.f32 %v7842_v31, %v4258_v2 }
 0x57b   : > { %v4362_v34 = vmax.f32 %v4330_v23, 0.0  ;;  %v4359_v47 = vmax.f32 %v4327_v4, 0.0 }
 0x57c   : > { %v4261_v44 = vpop.xlane.xlu1 %4260 }
 0x57d   : > { %4395 = vst.msk [vmem:[%s7847_s22 + $0x98] sm:$0xff] %vm4375_vm2, %v4362_v34  ;;  %4392 = vst.msk [vmem:[%s7847_s22 + $0x80] sm:$0xff] %vm4375_vm2, %v4359_v47  ;;  %v4328_v39 = vadd.f32 %v7842_v31, %v4261_v44 }
 0x57f   : > { %v4360_v9 = vmax.f32 %v4328_v39, 0.0 }
 0x581   : > { %4393 = vst.msk [vmem:[%s7847_s22 + $0x88] sm:$0xff] %vm4375_vm2, %v4360_v9 }
 0x584   : > { %v4276_v52 = vpop.xlane.xlu0 %4275 }
 0x585   : > { %v4333_v61 = vadd.f32 %v7842_v31, %v4276_v52 }
 0x587   : > { %v4365_v11 = vmax.f32 %v4333_v61, 0.0 }
 0x588   : > { %v4279_v7 = vpop.xlane.xlu1 %4278  ;;  %v4270_v59 = vpop.xlane.xlu0 %4269 }
 0x589   : > { %4398 = vst.msk [vmem:[%s7847_s22 + $0xb0] sm:$0xff] %vm4375_vm2, %v4365_v11  ;;  %v4334_v57 = vadd.f32 %v7842_v31, %v4279_v7  ;;  %v4331_v27 = vadd.f32 %v7842_v31, %v4270_v59 }
 0x58b   : > { %v4366_v50 = vmax.f32 %v4334_v57, 0.0  ;;  %v4363_v40 = vmax.f32 %v4331_v27, 0.0 }
 0x58c   : > { %v4273_v1 = vpop.xlane.xlu1 %4272 }
 0x58d   : > { %4399 = vst.msk [vmem:[%s7847_s22 + $0xb8] sm:$0xff] %vm4375_vm2, %v4366_v50  ;;  %4396 = vst.msk [vmem:[%s7847_s22 + $0xa0] sm:$0xff] %vm4375_vm2, %v4363_v40  ;;  %v4332_v46 = vadd.f32 %v7842_v31, %v4273_v1 }
 0x58f   : > { %v4364_v30 = vmax.f32 %v4332_v46, 0.0 }
 0x591   : > { %4397 = vst.msk [vmem:[%s7847_s22 + $0xa8] sm:$0xff] %vm4375_vm2, %v4364_v30 }
 0x594   : > { %v4288_v28 = vpop.xlane.xlu0 %4287 }
 0x595   : > { %v4337_v32 = vadd.f32 %v7842_v31, %v4288_v28 }
 0x597   : > { %v4369_v37 = vmax.f32 %v4337_v32, 0.0 }
 0x598   : > { %v4291_v0 = vpop.xlane.xlu1 %4290  ;;  %v4282_v38 = vpop.xlane.xlu0 %4281 }
 0x599   : > { %4402 = vst.msk [vmem:[%s7847_s22 + $0xd0] sm:$0xff] %vm4375_vm2, %v4369_v37  ;;  %v4338_v20 = vadd.f32 %v7842_v31, %v4291_v0  ;;  %v4335_v13 = vadd.f32 %v7842_v31, %v4282_v38 }
 0x59b   : > { %v4370_v14 = vmax.f32 %v4338_v20, 0.0  ;;  %v4367_v58 = vmax.f32 %v4335_v13, 0.0 }
 0x59c   : > { %v4285_v18 = vpop.xlane.xlu1 %4284 }
 0x59d   : > { %4403 = vst.msk [vmem:[%s7847_s22 + $0xd8] sm:$0xff] %vm4375_vm2, %v4370_v14  ;;  %4400 = vst.msk [vmem:[%s7847_s22 + $0xc0] sm:$0xff] %vm4375_vm2, %v4367_v58  ;;  %v4336_v41 = vadd.f32 %v7842_v31, %v4285_v18 }
 0x59f   : > { %v4368_v22 = vmax.f32 %v4336_v41, 0.0 }
 0x5a1   : > { %4401 = vst.msk [vmem:[%s7847_s22 + $0xc8] sm:$0xff] %vm4375_vm2, %v4368_v22 }
 0x5a6   : > { %v4294_v49 = vpop.xlane.xlu0 %4293 }
 0x5a7   : > { %v4339_v56 = vadd.f32 %v7842_v31, %v4294_v49 }
 0x5a9   : > { %v4371_v53 = vmax.f32 %v4339_v56, 0.0 }
 0x5aa   : > { %v4297_v36 = vpop.xlane.xlu1 %4296  ;;  %v4300_v60 = vpop.xlane.xlu0 %4299 }
 0x5ab   : > { %4404 = vst.msk [vmem:[%s7847_s22 + $0xe0] sm:$0xff] %vm4375_vm2, %v4371_v53  ;;  %v4340_v62 = vadd.f32 %v7842_v31, %v4297_v36  ;;  %v4341_v25 = vadd.f32 %v7842_v31, %v4300_v60 }
 0x5ad   : > { %v4372_v24 = vmax.f32 %v4340_v62, 0.0  ;;  %v4373_v54 = vmax.f32 %v4341_v25, 0.0 }
 0x5ae   : > { %v4303_v43 = vpop.xlane.xlu1 %4302 }
 0x5af   : > { %4405 = vst.msk [vmem:[%s7847_s22 + $0xe8] sm:$0xff] %vm4375_vm2, %v4372_v24  ;;  %4406 = vst.msk [vmem:[%s7847_s22 + $0xf0] sm:$0xff] %vm4375_vm2, %v4373_v54  ;;  %v4342_v26 = vadd.f32 %v7842_v31, %v4303_v43  ;;  %4414 = sbr.rel (!%p8116_p9) target bundleno = 1508 (0x5e4), region = 88 }
 0x5b1   : > { %v4374_v17 = vmax.f32 %v4342_v26, 0.0 }
 0x5b3   : > { %4407 = vst.msk [vmem:[%s7847_s22 + $0xf8] sm:$0xff] %vm4375_vm2, %v4374_v17 }
 0x5b4   : > { %s8130_s18 = smov (!%p4417_p12, %s4416_s18), 32 }
 0x5b5   : > { %s5019_s25 = sshll.u32 %s8130_s18, 7 }
 0x5b6   : > { %p5022_p1 = scmp.eq.s32.totalorder %s5019_s25, 0 }
 0x5b7   : > { %s7956_s21 = sshrl.u32 (!%p5022_p1), %s8130_s18, 5 }
 0x5b8   : > { %4425 = sbr.rel (%p5022_p1) target bundleno = 1508 (0x5e4), region = 92  ;;  %p5023_p2 = scmp.le.s32.totalorder (!%p5022_p1), %s7956_s21, 0 }
 0x5bd   : > { %4715 = sbr.rel (%p5023_p2) target bundleno = 1491 (0x5d3), region = 174  ;;  %s8117_s8 = smov (!%p5023_p2), %s7950_s11 }
 0x5be   : > { %s8118_s27 = smov (!%p5023_p2), %s7847_s22  ;;  %s7965_s19 = smov (!%p5023_p2), 0  }
 0x5bf   : > { %s7967_s28 = smov (!%p5023_p2), 0  }
 0x5c2 LB: >> { %v4550_v31 = vld [vmem:[%s6525_s27] sm:$0xff]  ;;  %v4552_v63 = vld [vmem:[%s6525_s27 + $0x8] sm:$0xff]  ;;  %v4554_v3 = vld [vmem:[%s6525_s27 + $0x10] sm:$0xff]  ;;  %s4614_s24 = sadd.s32 1, %s6529_s19  ;;  %s4544_s28 = sadd.s32 1, %s6533_s28   ;;  %s6533_s28 = sphi %s7967_s28, %s4544_s28   ;;  %s6529_s19 = sphi %s7965_s19, %s8121_s19   ;;  %s6525_s27 = sphi %s8118_s27, %s8120_s27   ;;  %s6521_s8 = sphi %s8117_s8, %s8119_s8  }
 0x5c3   : >> { %4551 = vst [vmem:[%s6521_s8] sm:$0xff] %v4550_v31  ;;  %4553 = vst [vmem:[%s6521_s8 + $0x8] sm:$0xff] %v4552_v63  ;;  %v4556_v6 = vld [vmem:[%s6525_s27 + $0x18] sm:$0xff]  ;;  %v4558_v42 = vld [vmem:[%s6525_s27 + $0x20] sm:$0xff]  ;;  %p4615_p0 = scmp.ge.s32.totalorder %s4614_s24, %s7956_s21  ;;  %p4543_p3 = scmp.ge.s32.totalorder %s4544_s28, %s7956_s21 }
 0x5c4   : >> { %4555 = vst [vmem:[%s6521_s8 + $0x10] sm:$0xff] %v4554_v3  ;;  %v4560_v10 = vld [vmem:[%s6525_s27 + $0x28] sm:$0xff]  ;;  %4557 = vst [vmem:[%s6521_s8 + $0x18] sm:$0xff] %v4556_v6  ;;  %v4562_v45 = vld [vmem:[%s6525_s27 + $0x30] sm:$0xff] }
 0x5c5   : >> { %4559 = vst [vmem:[%s6521_s8 + $0x20] sm:$0xff] %v4558_v42  ;;  %4561 = vst [vmem:[%s6521_s8 + $0x28] sm:$0xff] %v4560_v10  ;;  %v4564_v55 = vld [vmem:[%s6525_s27 + $0x38] sm:$0xff]  ;;  %v4566_v21 = vld [vmem:[%s6525_s27 + $0x40] sm:$0xff]  ;;  %s8132_s24 = smov (%p4615_p0, %s4614_s24), 0 }
 0x5c6   : >> { %4563 = vst [vmem:[%s6521_s8 + $0x30] sm:$0xff] %v4562_v45  ;;  %4565 = vst [vmem:[%s6521_s8 + $0x38] sm:$0xff] %v4564_v55  ;;  %v4568_v16 = vld [vmem:[%s6525_s27 + $0x48] sm:$0xff]  ;;  %v4570_v15 = vld [vmem:[%s6525_s27 + $0x50] sm:$0xff]  ;;  %s5024_s23 = sshll.u32 %s8132_s24, 8  ;;  %s8121_s19 = smov %s8132_s24 }
 0x5c7   : >> { %4567 = vst [vmem:[%s6521_s8 + $0x40] sm:$0xff] %v4566_v21  ;;  %v4572_v33 = vld [vmem:[%s6525_s27 + $0x58] sm:$0xff]  ;;  %4569 = vst [vmem:[%s6521_s8 + $0x48] sm:$0xff] %v4568_v16  ;;  %v4574_v19 = vld [vmem:[%s6525_s27 + $0x60] sm:$0xff]  ;;  %s8023_s16 = scalar_lea.vmem %s7847_s22, %s5024_s23 [#allocation14]   ;;  %s4620_s14 = scalar_lea.vmem %s7950_s11, %s5024_s23  }
 0x5c8   : >> { %4571 = vst [vmem:[%s6521_s8 + $0x50] sm:$0xff] %v4570_v15  ;;  %4573 = vst [vmem:[%s6521_s8 + $0x58] sm:$0xff] %v4572_v33  ;;  %v4576_v8 = vld [vmem:[%s6525_s27 + $0x68] sm:$0xff]  ;;  %v4578_v48 = vld [vmem:[%s6525_s27 + $0x70] sm:$0xff] }
 0x5c9   : >> { %4575 = vst [vmem:[%s6521_s8 + $0x60] sm:$0xff] %v4574_v19  ;;  %4577 = vst [vmem:[%s6521_s8 + $0x68] sm:$0xff] %v4576_v8  ;;  %v4580_v12 = vld [vmem:[%s6525_s27 + $0x78] sm:$0xff]  ;;  %v4582_v35 = vld [vmem:[%s6525_s27 + $0x80] sm:$0xff] }
 0x5ca   : >> { %4579 = vst [vmem:[%s6521_s8 + $0x70] sm:$0xff] %v4578_v48  ;;  %v4584_v51 = vld [vmem:[%s6525_s27 + $0x88] sm:$0xff]  ;;  %4581 = vst [vmem:[%s6521_s8 + $0x78] sm:$0xff] %v4580_v12  ;;  %v4586_v5 = vld [vmem:[%s6525_s27 + $0x90] sm:$0xff] }
 0x5cb   : >> { %4583 = vst [vmem:[%s6521_s8 + $0x80] sm:$0xff] %v4582_v35  ;;  %4585 = vst [vmem:[%s6521_s8 + $0x88] sm:$0xff] %v4584_v51  ;;  %v4588_v29 = vld [vmem:[%s6525_s27 + $0x98] sm:$0xff]  ;;  %v4590_v2 = vld [vmem:[%s6525_s27 + $0xa0] sm:$0xff] }
 0x5cc   : >> { %4587 = vst [vmem:[%s6521_s8 + $0x90] sm:$0xff] %v4586_v5  ;;  %4589 = vst [vmem:[%s6521_s8 + $0x98] sm:$0xff] %v4588_v29  ;;  %v4592_v23 = vld [vmem:[%s6525_s27 + $0xa8] sm:$0xff]  ;;  %v4594_v4 = vld [vmem:[%s6525_s27 + $0xb0] sm:$0xff] }
 0x5cd   : >> { %4591 = vst [vmem:[%s6521_s8 + $0xa0] sm:$0xff] %v4590_v2  ;;  %v4596_v34 = vld [vmem:[%s6525_s27 + $0xb8] sm:$0xff]  ;;  %4593 = vst [vmem:[%s6521_s8 + $0xa8] sm:$0xff] %v4592_v23  ;;  %v4598_v47 = vld [vmem:[%s6525_s27 + $0xc0] sm:$0xff] }
 0x5ce   : >> { %4595 = vst [vmem:[%s6521_s8 + $0xb0] sm:$0xff] %v4594_v4  ;;  %4597 = vst [vmem:[%s6521_s8 + $0xb8] sm:$0xff] %v4596_v34  ;;  %v4600_v44 = vld [vmem:[%s6525_s27 + $0xc8] sm:$0xff]  ;;  %v4602_v39 = vld [vmem:[%s6525_s27 + $0xd0] sm:$0xff]  ;;  %4546 = sbr.rel (!%p4543_p3) target bundleno = 1474 (0x5c2), region = 180 }
 0x5cf   : >> { %4599 = vst [vmem:[%s6521_s8 + $0xc0] sm:$0xff] %v4598_v47  ;;  %4601 = vst [vmem:[%s6521_s8 + $0xc8] sm:$0xff] %v4600_v44  ;;  %v4604_v9 = vld [vmem:[%s6525_s27 + $0xd8] sm:$0xff]  ;;  %v4606_v52 = vld [vmem:[%s6525_s27 + $0xe0] sm:$0xff] }
 0x5d0   : >> { %4603 = vst [vmem:[%s6521_s8 + $0xd0] sm:$0xff] %v4602_v39  ;;  %v4608_v61 = vld [vmem:[%s6525_s27 + $0xe8] sm:$0xff]  ;;  %4605 = vst [vmem:[%s6521_s8 + $0xd8] sm:$0xff] %v4604_v9  ;;  %v4610_v11 = vld [vmem:[%s6525_s27 + $0xf0] sm:$0xff] }
 0x5d1   : >> { %4607 = vst [vmem:[%s6521_s8 + $0xe0] sm:$0xff] %v4606_v52  ;;  %4609 = vst [vmem:[%s6521_s8 + $0xe8] sm:$0xff] %v4608_v61  ;;  %v4612_v7 = vld [vmem:[%s6525_s27 + $0xf8] sm:$0xff]  ;;  %s8120_s27 = smov %s8023_s16 }
 0x5d2   : >> { %4611 = vst [vmem:[%s6521_s8 + $0xf0] sm:$0xff] %v4610_v11  ;;  %4613 = vst [vmem:[%s6521_s8 + $0xf8] sm:$0xff] %v4612_v7  ;;  %s8119_s8 = smov %s4620_s14 }
 0x5d3 PF: > { %s8064_s20 = sand.u32 31, %s8130_s18   ;;  %s5038_s10 = sshll.u32 %s7956_s21, 8 }
 0x5d4   : > { %s4625_s30 = scalar_lea.vmem %s7847_s22, %s5038_s10 [#allocation14]   ;;  %s4627_s26 = scalar_lea.vmem %s7950_s11, %s5038_s10  }
 0x5d5   : > { %p5029_p5 = scmp.le.s32.totalorder %s8064_s20, 0 }
 0x5d6   : > { %s6535_s17 = smov (!%p5029_p5), %s4627_s26   ;;  %s6539_s29 = smov (!%p5029_p5), %s4625_s30  }
 0x5d7   : > { %4729 = sbr.rel (%p5029_p5) target bundleno = 1508 (0x5e4), region = 185  ;;  %s6543_s25 = smov (!%p5029_p5), 0  }
 0x5d8   : > { %s6547_s24 = smov (!%p5029_p5), 0  }
 0x5dc LB: >> { %v4637_v59 = vld [vmem:[%s6541_s29] sm:$0xff]  ;;  %s4639_s18 = sadd.s32 1, %s6545_s25  ;;  %s4631_s24 = sadd.s32 1, %s6549_s24   ;;  %s6549_s24 = sphi %s6547_s24, %s4631_s24   ;;  %s6545_s25 = sphi %s6543_s25, %s6544_s25   ;;  %s6541_s29 = sphi %s6539_s29, %s4644_s29   ;;  %s6537_s17 = sphi %s6535_s17, %s4645_s17  }
 0x5dd   : >> { %4638 = vst [vmem:[%s6537_s17] sm:$0xff] %v4637_v59  ;;  %p4640_p10 = scmp.ge.s32.totalorder %s4639_s18, %s8064_s20  ;;  %p4630_p13 = scmp.ge.s32.totalorder %s4631_s24, %s8064_s20 }
 0x5df   : >> { %s8134_s18 = smov (%p4640_p10, %s4639_s18), 0  ;;  %4633 = sbr.rel (!%p4630_p13) target bundleno = 1500 (0x5dc), region = 191 }
 0x5e0   : >> { %s5030_s22 = sshll.u32 %s8134_s18, 3  ;;  %s6544_s25 = smov %s8134_s18  }
 0x5e1   : >> { %s4644_s29 = scalar_lea.vmem %s4625_s30, %s5030_s22 [#allocation14]   ;;  %s4645_s17 = scalar_lea.vmem %s4627_s26, %s5030_s22  }
 0x5e4 PF: > { %s8122_s21 = sld [smem:[#allocation19_spill]]  ;;  %p24_p6 = scmp.ge.s32.totalorder %s6638_s15, 4  }
 0x5e5   : > { %s8123_s11 = smov %s6509_s12  ;;  %s8124_s12 = smov %s6513_s13 }
 0x5e6   : > { %s8126_s14 = smov %s6638_s15  ;;  %26 = sbr.rel (!%p24_p6) target bundleno = 9 (0x9), region = 202 }
 0x5ea   : > { %s8125_s13 = smov %s8122_s21 }
 0x5eb   :  { %4661 = vsyncpa [#allocation4], 1 }
 0x5ec   :  { %4663 = vsyncpa [#allocation4 + $0x1], 1 }
 0x5ed   :  { %4664 = vsyncpa [#allocation6], 1 }
 0x5ee   :  { %4665 = vsyncpa [#allocation9], 1 }
 0x5ef   :  { %4666 = vsyncpa [#allocation12], 1 }

</bundles_post_ra>
